<compile_context>
chip_gen: v6e
topology: v6e:2x2x1
jax: 0.10.0
libtpu: 0.0.40
codegen_flags: <defaults>
</compile_context>

<pallas_src>
import functools

import jax
import jax.numpy as jnp
import numpy as np
from jax import lax
from jax.experimental import pallas as pl
from jax.experimental.pallas import tpu as pltpu


# ----------------- Fused kernel: input proj + GRU + FC + Viterbi DP -----------------
def _gru_crf_kernel(x_ref, wihT_ref, whhT_ref, wfcT_ref, b_ref, crf_ref,
                    em_ref, hist_ref, score_ref, *, T, B):
    H = whhT_ref.shape[0]
    K = wfcT_ref.shape[1]

    # ---- Small params: load once. ----
    whhT = whhT_ref[...]                      # (H, 3H)   r|z|n recurrent weights
    b = b_ref[...]                            # (1, 4H)   [bih_r+bhh_r | bih_z+bhh_z | bih_n | bhh_n]
    b_rzn = b[:, :3 * H]
    bhh_n = b[:, 3 * H:]

    # ---- Non-recurrent input projection for ALL timesteps: one MXU op. ----
    gx = jnp.dot(x_ref[...], wihT_ref[...],
                 preferred_element_type=jnp.float32) + b_rzn      # (T*B, 3H)
    gx_rz = gx[:, :2 * H]                                         # (T*B, 2H)
    gx_n = gx[:, 2 * H:]                                          # (T*B, H)

    # ---- Serial GRU recurrence, fully unrolled; h history stays in registers. ----
    h = jnp.zeros((B, H), jnp.float32)
    h_steps = []
    for t in range(T):
        gh = jnp.dot(h, whhT, preferred_element_type=jnp.float32)  # (B, 3H): 1 MXU op/step
        rz = jax.nn.sigmoid(gx_rz[t * B:(t + 1) * B] + gh[:, :2 * H])
        r = rz[:, :H]
        z = rz[:, H:]
        n = jnp.tanh(gx_n[t * B:(t + 1) * B] + r * (gh[:, 2 * H:] + bhh_n))
        h = (1.0 - z) * n + z * h
        h_steps.append(h)
    h_all = jnp.concatenate(h_steps, axis=0)                       # (T*B, H)

    # ---- Deferred FC projection: one (T*B, H) x (H, K) matmul for all steps. ----
    crf = crf_ref[...]                                             # (K+3, K)
    transT = crf[:K]                                               # transT[j, i] = trans[i, j]
    start = crf[K:K + 1]                                           # (1, K)
    end = crf[K + 1:K + 2]                                         # (1, K)
    bfc = crf[K + 2:K + 3]                                         # (1, K)
    em_all = jnp.dot(h_all, wfcT_ref[...],
                     preferred_element_type=jnp.float32) + bfc     # (T*B, K)
    em_ref[...] = em_all

    # ---- CRF Viterbi forward DP (max-plus), fully unrolled over T. ----
    transT_b = jnp.broadcast_to(transT[None, :, :], (B, K, K))     # hoisted (no per-iter bcast)
    iot = lax.broadcasted_iota(jnp.int32, (B, K, K), 2)            # hoisted
    score = start + em_all[:B]                                     # (B, K)
    bp_steps = [jnp.zeros((B, K), jnp.int32)]                      # dummy slot for t=0
    for t in range(1, T):
        em_t = em_all[t * B:(t + 1) * B]                           # (B, K)
        # ns[b, j, i] = score[b, i] + trans[i, j] + em_t[b, j]
        ns = score[:, None, :] + transT_b + em_t[:, :, None]
        best = jnp.max(ns, axis=-1)                                # (B, K)
        # first index attaining the max (matches jnp.argmax tie-breaking)
        idx = jnp.min(jnp.where(ns == best[..., None], iot, K), axis=-1)
        bp_steps.append(idx.astype(jnp.int32))
        score = best
    hist_ref[...] = jnp.concatenate(bp_steps, axis=0)              # (T*B, K), single store
    score_ref[...] = score + end


def gru_crf_fused(x_flat, wihT, whhT, wfcT, b_pack, crf_pack, *, T, B):
    TB, E = x_flat.shape
    H = whhT.shape[0]
    K = wfcT.shape[1]
    kernel = functools.partial(_gru_crf_kernel, T=T, B=B)
    return pl.pallas_call(
        kernel,
        out_shape=(jax.ShapeDtypeStruct((TB, K), jnp.float32),   # emissions (time-major, flat)
                   jax.ShapeDtypeStruct((TB, K), jnp.int32),     # backpointers (flat)
                   jax.ShapeDtypeStruct((B, K), jnp.float32)),   # final Viterbi score
        grid_spec=pltpu.PrefetchScalarGridSpec(
            num_scalar_prefetch=0,
            grid=(1,),
            in_specs=[
                pl.BlockSpec((TB, E), lambda i: (0, 0)),         # x_flat
                pl.BlockSpec((E, 3 * H), lambda i: (0, 0)),      # wihT
                pl.BlockSpec((H, 3 * H), lambda i: (0, 0)),      # whhT
                pl.BlockSpec((H, K), lambda i: (0, 0)),          # wfcT
                pl.BlockSpec((1, 4 * H), lambda i: (0, 0)),      # packed biases
                pl.BlockSpec((K + 3, K), lambda i: (0, 0)),      # packed CRF (transT|start|end|bfc)
            ],
            out_specs=(pl.BlockSpec((TB, K), lambda i: (0, 0)),
                       pl.BlockSpec((TB, K), lambda i: (0, 0)),
                       pl.BlockSpec((B, K), lambda i: (0, 0))),
        ),
        compiler_params=pltpu.CompilerParams(dimension_semantics=("arbitrary",)),
    )(x_flat, wihT, whhT, wfcT, b_pack, crf_pack)


# ------------------------------- Full model forward ------------------------------
def gru_crf_forward(params, x_tokens):
    # Embedding lookup (gather) — plain-JAX glue.
    emb = jnp.take(params["emb"], x_tokens, axis=0)              # (B, T, E)
    B, T, E = emb.shape
    H = params["whhT"].shape[0]
    K = params["wfcT"].shape[1]

    x_flat = jnp.transpose(emb, (1, 0, 2)).reshape(T * B, E).astype(jnp.float32)

    em_flat, hist_flat, final_score = gru_crf_fused(
        x_flat, params["wihT"], params["whhT"], params["wfcT"],
        params["b_pack"], params["crf_pack"], T=T, B=B)

    em_tm = em_flat.reshape(T, B, K)                             # (T, B, K)
    hist = hist_flat.reshape(T, B, K)

    # Viterbi backtracking (data-dependent per-batch gather) stays in plain JAX.
    best_last = jnp.argmax(final_score, axis=-1).astype(jnp.int32)   # (B,)
    if T == 1:
        return best_last[:, None], em_tm

    hist_rev = hist[1:][::-1]                                    # (T-1, B, K)

    def step(tag, hist_t):
        prev = jnp.take_along_axis(hist_t, tag[:, None], axis=1)[:, 0]
        return prev, prev

    _, prevs = lax.scan(step, best_last, hist_rev)               # (T-1, B)
    path = jnp.concatenate([prevs[::-1], best_last[None, :]], axis=0)  # (T, B)
    return path.T, em_tm                                         # (B, T), (T, B, K)


# ------------------------------ Deterministic params ------------------------------
def init_params(key, vocab, E, H, K):
    ks = jax.random.split(key, 10)
    bnd = 1.0 / np.sqrt(H)
    emb = jax.random.normal(ks[0], (vocab, E), jnp.float32)
    wih = jax.random.uniform(ks[1], (3 * H, E), jnp.float32, -bnd, bnd)
    whh = jax.random.uniform(ks[2], (3 * H, H), jnp.float32, -bnd, bnd)
    bih = jax.random.uniform(ks[3], (3 * H,), jnp.float32, -bnd, bnd)
    bhh = jax.random.uniform(ks[4], (3 * H,), jnp.float32, -bnd, bnd)
    wfc = jax.random.uniform(ks[5], (K, H), jnp.float32, -bnd, bnd)
    bfc = jax.random.uniform(ks[6], (K,), jnp.float32, -bnd, bnd)
    start = jax.random.uniform(ks[7], (K,), jnp.float32, -0.1, 0.1)
    end = jax.random.uniform(ks[8], (K,), jnp.float32, -0.1, 0.1)
    trans = jax.random.uniform(ks[9], (K, K), jnp.float32, -0.1, 0.1)

    # One-time kernel-side packing (done here so the forward pays zero prep ops):
    #  * r/z hidden biases fold into the input biases (they sit outside r*()).
    #  * all biases in one (1, 4H) lane tile: [bih_r+bhh_r | bih_z+bhh_z | bih_n | bhh_n]
    #  * CRF tensors + FC bias in one (K+3, K) tile: [trans^T ; start ; end ; bfc]
    b_pack = jnp.concatenate(
        [bih[:2 * H] + bhh[:2 * H], bih[2 * H:], bhh[2 * H:]]).reshape(1, 4 * H)
    crf_pack = jnp.concatenate(
        [trans.T, start.reshape(1, K), end.reshape(1, K), bfc.reshape(1, K)], axis=0)

    return dict(
        emb=emb,
        wihT=jnp.asarray(wih.T), whhT=jnp.asarray(whh.T),
        bih=bih.reshape(1, -1), bhh=bhh.reshape(1, -1),
        wfcT=jnp.asarray(wfc.T), bfc=bfc.reshape(1, -1),
        start=start, end=end, trans=trans,
        b_pack=b_pack, crf_pack=crf_pack)


# --------------------------------- Pure-JAX reference -----------------------------
def reference(params, x_tokens):
    emb = jnp.take(params["emb"], x_tokens, axis=0)
    B, T, _ = emb.shape
    H = params["whhT"].shape[0]
    h = jnp.zeros((B, H), jnp.float32)
    outs = []
    for t in range(T):
        gx = emb[:, t] @ params["wihT"] + params["bih"]
        gh = h @ params["whhT"] + params["bhh"]
        r = jax.nn.sigmoid(gx[:, :H] + gh[:, :H])
        z = jax.nn.sigmoid(gx[:, H:2 * H] + gh[:, H:2 * H])
        n = jnp.tanh(gx[:, 2 * H:] + r * gh[:, 2 * H:])
        h = (1.0 - z) * n + z * h
        outs.append(h)
    gru_out = jnp.stack(outs, axis=1)                       # (B, T, H)
    em = gru_out @ params["wfcT"] + params["bfc"]           # (B, T, K)

    start, end, trans = params["start"], params["end"], params["trans"]
    score = start + em[:, 0]
    hist = []
    for t in range(1, T):
        ns = score[:, :, None] + trans[None] + em[:, t][:, None, :]
        hist.append(jnp.argmax(ns, axis=1))
        score = jnp.max(ns, axis=1)
    score = score + end
    best = jnp.argmax(score, axis=1)
    tags = [best]
    for h_t in reversed(hist):
        best = jnp.take_along_axis(h_t, best[:, None], axis=1)[:, 0]
        tags.append(best)
    tags.reverse()
    return jnp.stack(tags, axis=1), em


# -------------------------------------- Main --------------------------------------
if __name__ == "__main__":
    vocab_size, embedding_dim, hidden_dim, tagset_size = 50, 32, 32, 8
    B, T = 2, 8

    key = jax.random.PRNGKey(0)
    kp, kx = jax.random.split(key)
    params = init_params(kp, vocab_size, embedding_dim, hidden_dim, tagset_size)
    x = jax.random.randint(kx, (B, T), 0, vocab_size, dtype=jnp.int32)

    forward = jax.jit(gru_crf_forward)
    tags, em_tm = forward(params, x)
    tags = jax.block_until_ready(tags)
    em_tm = jax.block_until_ready(em_tm)

    tags_ref, em_ref = reference(params, x)
    np.testing.assert_allclose(np.asarray(em_tm).transpose(1, 0, 2),
                               np.asarray(em_ref), rtol=1e-4, atol=1e-4)
    assert np.array_equal(np.asarray(tags), np.asarray(tags_ref))
    assert tags.shape == (B, T)

    print("KERNEL_OK")
</pallas_src>

<mosaic_0001>
module attributes {stable_mosaic.version = 11 : i64} {
  func.func @_gru_crf_kernel(%arg0: i32, %arg1: memref<16x32xf32, #tpu.memory_space<vmem>>, %arg2: memref<32x96xf32, #tpu.memory_space<vmem>>, %arg3: memref<32x96xf32, #tpu.memory_space<vmem>>, %arg4: memref<32x8xf32, #tpu.memory_space<vmem>>, %arg5: memref<1x128xf32, #tpu.memory_space<vmem>>, %arg6: memref<11x8xf32, #tpu.memory_space<vmem>>, %arg7: memref<16x8xf32, #tpu.memory_space<vmem>>, %arg8: memref<16x8xi32, #tpu.memory_space<vmem>>, %arg9: memref<2x8xf32, #tpu.memory_space<vmem>>) attributes {dimension_semantics = [#tpu.dimension_semantics<arbitrary>], iteration_bounds = array<i64: 1>, scalar_prefetch = 0 : i64, scratch_operands = 0 : i64, tpu.core_type = #tpu.core_type<tc>, window_params = [{pipeline_mode = #tpu.pipeline_mode<synchronous>, transform_indices = @transform_0, window_bounds = array<i64: 16, 32>}, {pipeline_mode = #tpu.pipeline_mode<synchronous>, transform_indices = @transform_1, window_bounds = array<i64: 32, 96>}, {pipeline_mode = #tpu.pipeline_mode<synchronous>, transform_indices = @transform_2, window_bounds = array<i64: 32, 96>}, {pipeline_mode = #tpu.pipeline_mode<synchronous>, transform_indices = @transform_3, window_bounds = array<i64: 32, 8>}, {pipeline_mode = #tpu.pipeline_mode<synchronous>, transform_indices = @transform_4, window_bounds = array<i64: 1, 128>}, {pipeline_mode = #tpu.pipeline_mode<synchronous>, transform_indices = @transform_5, window_bounds = array<i64: 11, 8>}, {pipeline_mode = #tpu.pipeline_mode<synchronous>, transform_indices = @transform_6, window_bounds = array<i64: 16, 8>}, {pipeline_mode = #tpu.pipeline_mode<synchronous>, transform_indices = @transform_7, window_bounds = array<i64: 16, 8>}, {pipeline_mode = #tpu.pipeline_mode<synchronous>, transform_indices = @transform_8, window_bounds = array<i64: 2, 8>}]} {
    %c0 = arith.constant 0 : index
    %c0_0 = arith.constant 0 : index
    %0 = vector.load %arg3[%c0, %c0_0] : memref<32x96xf32, #tpu.memory_space<vmem>>, vector<32x96xf32>
    %c0_1 = arith.constant 0 : index
    %c0_2 = arith.constant 0 : index
    %1 = vector.load %arg5[%c0_1, %c0_2] : memref<1x128xf32, #tpu.memory_space<vmem>>, vector<1x128xf32>
    %2 = vector.extract_strided_slice %1 {offsets = [0, 0], sizes = [1, 96], strides = [1, 1]} : vector<1x128xf32> to vector<1x96xf32>
    %3 = vector.extract_strided_slice %1 {offsets = [0, 96], sizes = [1, 32], strides = [1, 1]} : vector<1x128xf32> to vector<1x32xf32>
    %c0_3 = arith.constant 0 : index
    %c0_4 = arith.constant 0 : index
    %4 = vector.load %arg1[%c0_3, %c0_4] : memref<16x32xf32, #tpu.memory_space<vmem>>, vector<16x32xf32>
    %c0_5 = arith.constant 0 : index
    %c0_6 = arith.constant 0 : index
    %5 = vector.load %arg2[%c0_5, %c0_6] : memref<32x96xf32, #tpu.memory_space<vmem>>, vector<32x96xf32>
    %cst = arith.constant dense<0.000000e+00> : vector<16x96xf32>
    %6 = tpu.matmul %4, %5, %cst {dimension_numbers = #tpu.dot_dimension_numbers<[1], [0], [0], [1], [0, 0, 1, 1], [], []>} : vector<16x32xf32>, vector<32x96xf32>, vector<16x96xf32> -> vector<16x96xf32>
    %7 = vector.broadcast %2 : vector<1x96xf32> to vector<16x96xf32>
    %8 = arith.addf %6, %7 : vector<16x96xf32>
    %9 = vector.extract_strided_slice %8 {offsets = [0, 0], sizes = [16, 64], strides = [1, 1]} : vector<16x96xf32> to vector<16x64xf32>
    %10 = vector.extract_strided_slice %8 {offsets = [0, 64], sizes = [16, 32], strides = [1, 1]} : vector<16x96xf32> to vector<16x32xf32>
    %cst_7 = arith.constant 0.000000e+00 : f32
    %11 = vector.broadcast %cst_7 : f32 to vector<2x32xf32>
    %cst_8 = arith.constant dense<0.000000e+00> : vector<2x96xf32>
    %12 = tpu.matmul %11, %0, %cst_8 {dimension_numbers = #tpu.dot_dimension_numbers<[1], [0], [0], [1], [0, 0, 1, 1], [], []>} : vector<2x32xf32>, vector<32x96xf32>, vector<2x96xf32> -> vector<2x96xf32>
    %13 = vector.extract_strided_slice %9 {offsets = [0, 0], sizes = [2, 64], strides = [1, 1]} : vector<16x64xf32> to vector<2x64xf32>
    %14 = vector.extract_strided_slice %12 {offsets = [0, 0], sizes = [2, 64], strides = [1, 1]} : vector<2x96xf32> to vector<2x64xf32>
    %15 = arith.addf %13, %14 : vector<2x64xf32>
    %16 = arith.negf %15 : vector<2x64xf32>
    %17 = math.exp %16 : vector<2x64xf32>
    %cst_9 = arith.constant 1.000000e+00 : f32
    %18 = vector.broadcast %cst_9 : f32 to vector<2x64xf32>
    %19 = arith.addf %18, %17 : vector<2x64xf32>
    %20 = arith.divf %18, %19 : vector<2x64xf32>
    %21 = vector.extract_strided_slice %20 {offsets = [0, 0], sizes = [2, 32], strides = [1, 1]} : vector<2x64xf32> to vector<2x32xf32>
    %22 = vector.extract_strided_slice %20 {offsets = [0, 32], sizes = [2, 32], strides = [1, 1]} : vector<2x64xf32> to vector<2x32xf32>
    %23 = vector.extract_strided_slice %10 {offsets = [0, 0], sizes = [2, 32], strides = [1, 1]} : vector<16x32xf32> to vector<2x32xf32>
    %24 = vector.extract_strided_slice %12 {offsets = [0, 64], sizes = [2, 32], strides = [1, 1]} : vector<2x96xf32> to vector<2x32xf32>
    %25 = vector.broadcast %3 : vector<1x32xf32> to vector<2x32xf32>
    %26 = arith.addf %24, %25 : vector<2x32xf32>
    %27 = arith.mulf %21, %26 : vector<2x32xf32>
    %28 = arith.addf %23, %27 : vector<2x32xf32>
    %29 = math.tanh %28 : vector<2x32xf32>
    %cst_10 = arith.constant 1.000000e+00 : f32
    %30 = vector.broadcast %cst_10 : f32 to vector<2x32xf32>
    %31 = arith.subf %30, %22 : vector<2x32xf32>
    %32 = arith.mulf %31, %29 : vector<2x32xf32>
    %33 = arith.mulf %22, %11 : vector<2x32xf32>
    %34 = arith.addf %32, %33 : vector<2x32xf32>
    %cst_11 = arith.constant dense<0.000000e+00> : vector<2x96xf32>
    %35 = tpu.matmul %34, %0, %cst_11 {dimension_numbers = #tpu.dot_dimension_numbers<[1], [0], [0], [1], [0, 0, 1, 1], [], []>} : vector<2x32xf32>, vector<32x96xf32>, vector<2x96xf32> -> vector<2x96xf32>
    %36 = vector.extract_strided_slice %9 {offsets = [2, 0], sizes = [2, 64], strides = [1, 1]} : vector<16x64xf32> to vector<2x64xf32>
    %37 = vector.extract_strided_slice %35 {offsets = [0, 0], sizes = [2, 64], strides = [1, 1]} : vector<2x96xf32> to vector<2x64xf32>
    %38 = arith.addf %36, %37 : vector<2x64xf32>
    %39 = arith.negf %38 : vector<2x64xf32>
    %40 = math.exp %39 : vector<2x64xf32>
    %cst_12 = arith.constant 1.000000e+00 : f32
    %41 = vector.broadcast %cst_12 : f32 to vector<2x64xf32>
    %42 = arith.addf %41, %40 : vector<2x64xf32>
    %43 = arith.divf %41, %42 : vector<2x64xf32>
    %44 = vector.extract_strided_slice %43 {offsets = [0, 0], sizes = [2, 32], strides = [1, 1]} : vector<2x64xf32> to vector<2x32xf32>
    %45 = vector.extract_strided_slice %43 {offsets = [0, 32], sizes = [2, 32], strides = [1, 1]} : vector<2x64xf32> to vector<2x32xf32>
    %46 = vector.extract_strided_slice %10 {offsets = [2, 0], sizes = [2, 32], strides = [1, 1]} : vector<16x32xf32> to vector<2x32xf32>
    %47 = vector.extract_strided_slice %35 {offsets = [0, 64], sizes = [2, 32], strides = [1, 1]} : vector<2x96xf32> to vector<2x32xf32>
    %48 = vector.broadcast %3 : vector<1x32xf32> to vector<2x32xf32>
    %49 = arith.addf %47, %48 : vector<2x32xf32>
    %50 = arith.mulf %44, %49 : vector<2x32xf32>
    %51 = arith.addf %46, %50 : vector<2x32xf32>
    %52 = math.tanh %51 : vector<2x32xf32>
    %cst_13 = arith.constant 1.000000e+00 : f32
    %53 = vector.broadcast %cst_13 : f32 to vector<2x32xf32>
    %54 = arith.subf %53, %45 : vector<2x32xf32>
    %55 = arith.mulf %54, %52 : vector<2x32xf32>
    %56 = arith.mulf %45, %34 : vector<2x32xf32>
    %57 = arith.addf %55, %56 : vector<2x32xf32>
    %cst_14 = arith.constant dense<0.000000e+00> : vector<2x96xf32>
    %58 = tpu.matmul %57, %0, %cst_14 {dimension_numbers = #tpu.dot_dimension_numbers<[1], [0], [0], [1], [0, 0, 1, 1], [], []>} : vector<2x32xf32>, vector<32x96xf32>, vector<2x96xf32> -> vector<2x96xf32>
    %59 = vector.extract_strided_slice %9 {offsets = [4, 0], sizes = [2, 64], strides = [1, 1]} : vector<16x64xf32> to vector<2x64xf32>
    %60 = vector.extract_strided_slice %58 {offsets = [0, 0], sizes = [2, 64], strides = [1, 1]} : vector<2x96xf32> to vector<2x64xf32>
    %61 = arith.addf %59, %60 : vector<2x64xf32>
    %62 = arith.negf %61 : vector<2x64xf32>
    %63 = math.exp %62 : vector<2x64xf32>
    %cst_15 = arith.constant 1.000000e+00 : f32
    %64 = vector.broadcast %cst_15 : f32 to vector<2x64xf32>
    %65 = arith.addf %64, %63 : vector<2x64xf32>
    %66 = arith.divf %64, %65 : vector<2x64xf32>
    %67 = vector.extract_strided_slice %66 {offsets = [0, 0], sizes = [2, 32], strides = [1, 1]} : vector<2x64xf32> to vector<2x32xf32>
    %68 = vector.extract_strided_slice %66 {offsets = [0, 32], sizes = [2, 32], strides = [1, 1]} : vector<2x64xf32> to vector<2x32xf32>
    %69 = vector.extract_strided_slice %10 {offsets = [4, 0], sizes = [2, 32], strides = [1, 1]} : vector<16x32xf32> to vector<2x32xf32>
    %70 = vector.extract_strided_slice %58 {offsets = [0, 64], sizes = [2, 32], strides = [1, 1]} : vector<2x96xf32> to vector<2x32xf32>
    %71 = vector.broadcast %3 : vector<1x32xf32> to vector<2x32xf32>
    %72 = arith.addf %70, %71 : vector<2x32xf32>
    %73 = arith.mulf %67, %72 : vector<2x32xf32>
    %74 = arith.addf %69, %73 : vector<2x32xf32>
    %75 = math.tanh %74 : vector<2x32xf32>
    %cst_16 = arith.constant 1.000000e+00 : f32
    %76 = vector.broadcast %cst_16 : f32 to vector<2x32xf32>
    %77 = arith.subf %76, %68 : vector<2x32xf32>
    %78 = arith.mulf %77, %75 : vector<2x32xf32>
    %79 = arith.mulf %68, %57 : vector<2x32xf32>
    %80 = arith.addf %78, %79 : vector<2x32xf32>
    %cst_17 = arith.constant dense<0.000000e+00> : vector<2x96xf32>
    %81 = tpu.matmul %80, %0, %cst_17 {dimension_numbers = #tpu.dot_dimension_numbers<[1], [0], [0], [1], [0, 0, 1, 1], [], []>} : vector<2x32xf32>, vector<32x96xf32>, vector<2x96xf32> -> vector<2x96xf32>
    %82 = vector.extract_strided_slice %9 {offsets = [6, 0], sizes = [2, 64], strides = [1, 1]} : vector<16x64xf32> to vector<2x64xf32>
    %83 = vector.extract_strided_slice %81 {offsets = [0, 0], sizes = [2, 64], strides = [1, 1]} : vector<2x96xf32> to vector<2x64xf32>
    %84 = arith.addf %82, %83 : vector<2x64xf32>
    %85 = arith.negf %84 : vector<2x64xf32>
    %86 = math.exp %85 : vector<2x64xf32>
    %cst_18 = arith.constant 1.000000e+00 : f32
    %87 = vector.broadcast %cst_18 : f32 to vector<2x64xf32>
    %88 = arith.addf %87, %86 : vector<2x64xf32>
    %89 = arith.divf %87, %88 : vector<2x64xf32>
    %90 = vector.extract_strided_slice %89 {offsets = [0, 0], sizes = [2, 32], strides = [1, 1]} : vector<2x64xf32> to vector<2x32xf32>
    %91 = vector.extract_strided_slice %89 {offsets = [0, 32], sizes = [2, 32], strides = [1, 1]} : vector<2x64xf32> to vector<2x32xf32>
    %92 = vector.extract_strided_slice %10 {offsets = [6, 0], sizes = [2, 32], strides = [1, 1]} : vector<16x32xf32> to vector<2x32xf32>
    %93 = vector.extract_strided_slice %81 {offsets = [0, 64], sizes = [2, 32], strides = [1, 1]} : vector<2x96xf32> to vector<2x32xf32>
    %94 = vector.broadcast %3 : vector<1x32xf32> to vector<2x32xf32>
    %95 = arith.addf %93, %94 : vector<2x32xf32>
    %96 = arith.mulf %90, %95 : vector<2x32xf32>
    %97 = arith.addf %92, %96 : vector<2x32xf32>
    %98 = math.tanh %97 : vector<2x32xf32>
    %cst_19 = arith.constant 1.000000e+00 : f32
    %99 = vector.broadcast %cst_19 : f32 to vector<2x32xf32>
    %100 = arith.subf %99, %91 : vector<2x32xf32>
    %101 = arith.mulf %100, %98 : vector<2x32xf32>
    %102 = arith.mulf %91, %80 : vector<2x32xf32>
    %103 = arith.addf %101, %102 : vector<2x32xf32>
    %cst_20 = arith.constant dense<0.000000e+00> : vector<2x96xf32>
    %104 = tpu.matmul %103, %0, %cst_20 {dimension_numbers = #tpu.dot_dimension_numbers<[1], [0], [0], [1], [0, 0, 1, 1], [], []>} : vector<2x32xf32>, vector<32x96xf32>, vector<2x96xf32> -> vector<2x96xf32>
    %105 = vector.extract_strided_slice %9 {offsets = [8, 0], sizes = [2, 64], strides = [1, 1]} : vector<16x64xf32> to vector<2x64xf32>
    %106 = vector.extract_strided_slice %104 {offsets = [0, 0], sizes = [2, 64], strides = [1, 1]} : vector<2x96xf32> to vector<2x64xf32>
    %107 = arith.addf %105, %106 : vector<2x64xf32>
    %108 = arith.negf %107 : vector<2x64xf32>
    %109 = math.exp %108 : vector<2x64xf32>
    %cst_21 = arith.constant 1.000000e+00 : f32
    %110 = vector.broadcast %cst_21 : f32 to vector<2x64xf32>
    %111 = arith.addf %110, %109 : vector<2x64xf32>
    %112 = arith.divf %110, %111 : vector<2x64xf32>
    %113 = vector.extract_strided_slice %112 {offsets = [0, 0], sizes = [2, 32], strides = [1, 1]} : vector<2x64xf32> to vector<2x32xf32>
    %114 = vector.extract_strided_slice %112 {offsets = [0, 32], sizes = [2, 32], strides = [1, 1]} : vector<2x64xf32> to vector<2x32xf32>
    %115 = vector.extract_strided_slice %10 {offsets = [8, 0], sizes = [2, 32], strides = [1, 1]} : vector<16x32xf32> to vector<2x32xf32>
    %116 = vector.extract_strided_slice %104 {offsets = [0, 64], sizes = [2, 32], strides = [1, 1]} : vector<2x96xf32> to vector<2x32xf32>
    %117 = vector.broadcast %3 : vector<1x32xf32> to vector<2x32xf32>
    %118 = arith.addf %116, %117 : vector<2x32xf32>
    %119 = arith.mulf %113, %118 : vector<2x32xf32>
    %120 = arith.addf %115, %119 : vector<2x32xf32>
    %121 = math.tanh %120 : vector<2x32xf32>
    %cst_22 = arith.constant 1.000000e+00 : f32
    %122 = vector.broadcast %cst_22 : f32 to vector<2x32xf32>
    %123 = arith.subf %122, %114 : vector<2x32xf32>
    %124 = arith.mulf %123, %121 : vector<2x32xf32>
    %125 = arith.mulf %114, %103 : vector<2x32xf32>
    %126 = arith.addf %124, %125 : vector<2x32xf32>
    %cst_23 = arith.constant dense<0.000000e+00> : vector<2x96xf32>
    %127 = tpu.matmul %126, %0, %cst_23 {dimension_numbers = #tpu.dot_dimension_numbers<[1], [0], [0], [1], [0, 0, 1, 1], [], []>} : vector<2x32xf32>, vector<32x96xf32>, vector<2x96xf32> -> vector<2x96xf32>
    %128 = vector.extract_strided_slice %9 {offsets = [10, 0], sizes = [2, 64], strides = [1, 1]} : vector<16x64xf32> to vector<2x64xf32>
    %129 = vector.extract_strided_slice %127 {offsets = [0, 0], sizes = [2, 64], strides = [1, 1]} : vector<2x96xf32> to vector<2x64xf32>
    %130 = arith.addf %128, %129 : vector<2x64xf32>
    %131 = arith.negf %130 : vector<2x64xf32>
    %132 = math.exp %131 : vector<2x64xf32>
    %cst_24 = arith.constant 1.000000e+00 : f32
    %133 = vector.broadcast %cst_24 : f32 to vector<2x64xf32>
    %134 = arith.addf %133, %132 : vector<2x64xf32>
    %135 = arith.divf %133, %134 : vector<2x64xf32>
    %136 = vector.extract_strided_slice %135 {offsets = [0, 0], sizes = [2, 32], strides = [1, 1]} : vector<2x64xf32> to vector<2x32xf32>
    %137 = vector.extract_strided_slice %135 {offsets = [0, 32], sizes = [2, 32], strides = [1, 1]} : vector<2x64xf32> to vector<2x32xf32>
    %138 = vector.extract_strided_slice %10 {offsets = [10, 0], sizes = [2, 32], strides = [1, 1]} : vector<16x32xf32> to vector<2x32xf32>
    %139 = vector.extract_strided_slice %127 {offsets = [0, 64], sizes = [2, 32], strides = [1, 1]} : vector<2x96xf32> to vector<2x32xf32>
    %140 = vector.broadcast %3 : vector<1x32xf32> to vector<2x32xf32>
    %141 = arith.addf %139, %140 : vector<2x32xf32>
    %142 = arith.mulf %136, %141 : vector<2x32xf32>
    %143 = arith.addf %138, %142 : vector<2x32xf32>
    %144 = math.tanh %143 : vector<2x32xf32>
    %cst_25 = arith.constant 1.000000e+00 : f32
    %145 = vector.broadcast %cst_25 : f32 to vector<2x32xf32>
    %146 = arith.subf %145, %137 : vector<2x32xf32>
    %147 = arith.mulf %146, %144 : vector<2x32xf32>
    %148 = arith.mulf %137, %126 : vector<2x32xf32>
    %149 = arith.addf %147, %148 : vector<2x32xf32>
    %cst_26 = arith.constant dense<0.000000e+00> : vector<2x96xf32>
    %150 = tpu.matmul %149, %0, %cst_26 {dimension_numbers = #tpu.dot_dimension_numbers<[1], [0], [0], [1], [0, 0, 1, 1], [], []>} : vector<2x32xf32>, vector<32x96xf32>, vector<2x96xf32> -> vector<2x96xf32>
    %151 = vector.extract_strided_slice %9 {offsets = [12, 0], sizes = [2, 64], strides = [1, 1]} : vector<16x64xf32> to vector<2x64xf32>
    %152 = vector.extract_strided_slice %150 {offsets = [0, 0], sizes = [2, 64], strides = [1, 1]} : vector<2x96xf32> to vector<2x64xf32>
    %153 = arith.addf %151, %152 : vector<2x64xf32>
    %154 = arith.negf %153 : vector<2x64xf32>
    %155 = math.exp %154 : vector<2x64xf32>
    %cst_27 = arith.constant 1.000000e+00 : f32
    %156 = vector.broadcast %cst_27 : f32 to vector<2x64xf32>
    %157 = arith.addf %156, %155 : vector<2x64xf32>
    %158 = arith.divf %156, %157 : vector<2x64xf32>
    %159 = vector.extract_strided_slice %158 {offsets = [0, 0], sizes = [2, 32], strides = [1, 1]} : vector<2x64xf32> to vector<2x32xf32>
    %160 = vector.extract_strided_slice %158 {offsets = [0, 32], sizes = [2, 32], strides = [1, 1]} : vector<2x64xf32> to vector<2x32xf32>
    %161 = vector.extract_strided_slice %10 {offsets = [12, 0], sizes = [2, 32], strides = [1, 1]} : vector<16x32xf32> to vector<2x32xf32>
    %162 = vector.extract_strided_slice %150 {offsets = [0, 64], sizes = [2, 32], strides = [1, 1]} : vector<2x96xf32> to vector<2x32xf32>
    %163 = vector.broadcast %3 : vector<1x32xf32> to vector<2x32xf32>
    %164 = arith.addf %162, %163 : vector<2x32xf32>
    %165 = arith.mulf %159, %164 : vector<2x32xf32>
    %166 = arith.addf %161, %165 : vector<2x32xf32>
    %167 = math.tanh %166 : vector<2x32xf32>
    %cst_28 = arith.constant 1.000000e+00 : f32
    %168 = vector.broadcast %cst_28 : f32 to vector<2x32xf32>
    %169 = arith.subf %168, %160 : vector<2x32xf32>
    %170 = arith.mulf %169, %167 : vector<2x32xf32>
    %171 = arith.mulf %160, %149 : vector<2x32xf32>
    %172 = arith.addf %170, %171 : vector<2x32xf32>
    %cst_29 = arith.constant dense<0.000000e+00> : vector<2x96xf32>
    %173 = tpu.matmul %172, %0, %cst_29 {dimension_numbers = #tpu.dot_dimension_numbers<[1], [0], [0], [1], [0, 0, 1, 1], [], []>} : vector<2x32xf32>, vector<32x96xf32>, vector<2x96xf32> -> vector<2x96xf32>
    %174 = vector.extract_strided_slice %9 {offsets = [14, 0], sizes = [2, 64], strides = [1, 1]} : vector<16x64xf32> to vector<2x64xf32>
    %175 = vector.extract_strided_slice %173 {offsets = [0, 0], sizes = [2, 64], strides = [1, 1]} : vector<2x96xf32> to vector<2x64xf32>
    %176 = arith.addf %174, %175 : vector<2x64xf32>
    %177 = arith.negf %176 : vector<2x64xf32>
    %178 = math.exp %177 : vector<2x64xf32>
    %cst_30 = arith.constant 1.000000e+00 : f32
    %179 = vector.broadcast %cst_30 : f32 to vector<2x64xf32>
    %180 = arith.addf %179, %178 : vector<2x64xf32>
    %181 = arith.divf %179, %180 : vector<2x64xf32>
    %182 = vector.extract_strided_slice %181 {offsets = [0, 0], sizes = [2, 32], strides = [1, 1]} : vector<2x64xf32> to vector<2x32xf32>
    %183 = vector.extract_strided_slice %181 {offsets = [0, 32], sizes = [2, 32], strides = [1, 1]} : vector<2x64xf32> to vector<2x32xf32>
    %184 = vector.extract_strided_slice %10 {offsets = [14, 0], sizes = [2, 32], strides = [1, 1]} : vector<16x32xf32> to vector<2x32xf32>
    %185 = vector.extract_strided_slice %173 {offsets = [0, 64], sizes = [2, 32], strides = [1, 1]} : vector<2x96xf32> to vector<2x32xf32>
    %186 = vector.broadcast %3 : vector<1x32xf32> to vector<2x32xf32>
    %187 = arith.addf %185, %186 : vector<2x32xf32>
    %188 = arith.mulf %182, %187 : vector<2x32xf32>
    %189 = arith.addf %184, %188 : vector<2x32xf32>
    %190 = math.tanh %189 : vector<2x32xf32>
    %cst_31 = arith.constant 1.000000e+00 : f32
    %191 = vector.broadcast %cst_31 : f32 to vector<2x32xf32>
    %192 = arith.subf %191, %183 : vector<2x32xf32>
    %193 = arith.mulf %192, %190 : vector<2x32xf32>
    %194 = arith.mulf %183, %172 : vector<2x32xf32>
    %195 = arith.addf %193, %194 : vector<2x32xf32>
    %196 = tpu.concatenate %34, %57, %80, %103, %126, %149, %172, %195 in 0 : vector<2x32xf32>, vector<2x32xf32>, vector<2x32xf32>, vector<2x32xf32>, vector<2x32xf32>, vector<2x32xf32>, vector<2x32xf32>, vector<2x32xf32> -> vector<16x32xf32>
    %c0_32 = arith.constant 0 : index
    %c0_33 = arith.constant 0 : index
    %197 = vector.load %arg6[%c0_32, %c0_33] : memref<11x8xf32, #tpu.memory_space<vmem>>, vector<11x8xf32>
    %198 = vector.extract_strided_slice %197 {offsets = [0, 0], sizes = [8, 8], strides = [1, 1]} : vector<11x8xf32> to vector<8x8xf32>
    %199 = vector.extract_strided_slice %197 {offsets = [8, 0], sizes = [1, 8], strides = [1, 1]} : vector<11x8xf32> to vector<1x8xf32>
    %200 = vector.extract_strided_slice %197 {offsets = [9, 0], sizes = [1, 8], strides = [1, 1]} : vector<11x8xf32> to vector<1x8xf32>
    %201 = vector.extract_strided_slice %197 {offsets = [10, 0], sizes = [1, 8], strides = [1, 1]} : vector<11x8xf32> to vector<1x8xf32>
    %c0_34 = arith.constant 0 : index
    %c0_35 = arith.constant 0 : index
    %202 = vector.load %arg4[%c0_34, %c0_35] : memref<32x8xf32, #tpu.memory_space<vmem>>, vector<32x8xf32>
    %cst_36 = arith.constant dense<0.000000e+00> : vector<16x8xf32>
    %203 = tpu.matmul %196, %202, %cst_36 {dimension_numbers = #tpu.dot_dimension_numbers<[1], [0], [0], [1], [0, 0, 1, 1], [], []>} : vector<16x32xf32>, vector<32x8xf32>, vector<16x8xf32> -> vector<16x8xf32>
    %204 = vector.broadcast %201 : vector<1x8xf32> to vector<16x8xf32>
    %205 = arith.addf %203, %204 : vector<16x8xf32>
    %c0_37 = arith.constant 0 : index
    %c0_38 = arith.constant 0 : index
    %206 = vector.load %arg7[%c0_37, %c0_38] : memref<16x8xf32, #tpu.memory_space<vmem>>, vector<16x8xf32>
    tpu.vector_store %arg7[%c0_37, %c0_38], %205 {strides = array<i32>} : memref<16x8xf32, #tpu.memory_space<vmem>>, vector<16x8xf32>,
    %207 = vector.shape_cast %198 : vector<8x8xf32> to vector<1x8x8xf32>
    %208 = vector.shape_cast %207 : vector<1x8x8xf32> to vector<1x8x8xf32>
    %209 = vector.broadcast %208 : vector<1x8x8xf32> to vector<2x8x8xf32>
    %210 = tpu.iota {dimensions = array<i32: 2>} : vector<2x8x8xi32>
    %211 = vector.extract_strided_slice %205 {offsets = [0, 0], sizes = [2, 8], strides = [1, 1]} : vector<16x8xf32> to vector<2x8xf32>
    %212 = vector.broadcast %199 : vector<1x8xf32> to vector<2x8xf32>
    %213 = arith.addf %212, %211 : vector<2x8xf32>
    %c0_i32 = arith.constant 0 : i32
    %214 = vector.broadcast %c0_i32 : i32 to vector<2x8xi32>
    %215 = vector.extract_strided_slice %205 {offsets = [2, 0], sizes = [2, 8], strides = [1, 1]} : vector<16x8xf32> to vector<2x8xf32>
    %216 = vector.shape_cast %213 : vector<2x8xf32> to vector<2x1x8xf32>
    %217 = vector.broadcast %216 : vector<2x1x8xf32> to vector<2x8x8xf32>
    %218 = arith.addf %217, %209 : vector<2x8x8xf32>
    %219 = vector.shape_cast %215 : vector<2x8xf32> to vector<2x8x1xf32>
    %220 = vector.broadcast %219 : vector<2x8x1xf32> to vector<2x8x8xf32>
    %221 = arith.addf %218, %220 : vector<2x8x8xf32>
    %cst_39 = arith.constant dense<0xFF800000> : vector<2x8xf32>
    %222 = vector.multi_reduction <maximumf>, %221, %cst_39 [2] : vector<2x8x8xf32> to vector<2x8xf32>
    %223 = vector.shape_cast %222 : vector<2x8xf32> to vector<2x8x1xf32>
    %224 = vector.broadcast %223 : vector<2x8x1xf32> to vector<2x8x8xf32>
    %225 = arith.cmpf oeq, %221, %224 : vector<2x8x8xf32>
    %c8_i32 = arith.constant 8 : i32
    %226 = vector.broadcast %c8_i32 : i32 to vector<2x8x8xi32>
    %227 = arith.select %225, %210, %226 : vector<2x8x8xi1>, vector<2x8x8xi32>
    %cst_40 = arith.constant dense<2147483647> : vector<2x8xi32>
    %228 = vector.multi_reduction <minsi>, %227, %cst_40 [2] : vector<2x8x8xi32> to vector<2x8xi32>
    %229 = vector.extract_strided_slice %205 {offsets = [4, 0], sizes = [2, 8], strides = [1, 1]} : vector<16x8xf32> to vector<2x8xf32>
    %230 = vector.shape_cast %222 : vector<2x8xf32> to vector<2x1x8xf32>
    %231 = vector.broadcast %230 : vector<2x1x8xf32> to vector<2x8x8xf32>
    %232 = arith.addf %231, %209 : vector<2x8x8xf32>
    %233 = vector.shape_cast %229 : vector<2x8xf32> to vector<2x8x1xf32>
    %234 = vector.broadcast %233 : vector<2x8x1xf32> to vector<2x8x8xf32>
    %235 = arith.addf %232, %234 : vector<2x8x8xf32>
    %cst_41 = arith.constant dense<0xFF800000> : vector<2x8xf32>
    %236 = vector.multi_reduction <maximumf>, %235, %cst_41 [2] : vector<2x8x8xf32> to vector<2x8xf32>
    %237 = vector.shape_cast %236 : vector<2x8xf32> to vector<2x8x1xf32>
    %238 = vector.broadcast %237 : vector<2x8x1xf32> to vector<2x8x8xf32>
    %239 = arith.cmpf oeq, %235, %238 : vector<2x8x8xf32>
    %c8_i32_42 = arith.constant 8 : i32
    %240 = vector.broadcast %c8_i32_42 : i32 to vector<2x8x8xi32>
    %241 = arith.select %239, %210, %240 : vector<2x8x8xi1>, vector<2x8x8xi32>
    %cst_43 = arith.constant dense<2147483647> : vector<2x8xi32>
    %242 = vector.multi_reduction <minsi>, %241, %cst_43 [2] : vector<2x8x8xi32> to vector<2x8xi32>
    %243 = vector.extract_strided_slice %205 {offsets = [6, 0], sizes = [2, 8], strides = [1, 1]} : vector<16x8xf32> to vector<2x8xf32>
    %244 = vector.shape_cast %236 : vector<2x8xf32> to vector<2x1x8xf32>
    %245 = vector.broadcast %244 : vector<2x1x8xf32> to vector<2x8x8xf32>
    %246 = arith.addf %245, %209 : vector<2x8x8xf32>
    %247 = vector.shape_cast %243 : vector<2x8xf32> to vector<2x8x1xf32>
    %248 = vector.broadcast %247 : vector<2x8x1xf32> to vector<2x8x8xf32>
    %249 = arith.addf %246, %248 : vector<2x8x8xf32>
    %cst_44 = arith.constant dense<0xFF800000> : vector<2x8xf32>
    %250 = vector.multi_reduction <maximumf>, %249, %cst_44 [2] : vector<2x8x8xf32> to vector<2x8xf32>
    %251 = vector.shape_cast %250 : vector<2x8xf32> to vector<2x8x1xf32>
    %252 = vector.broadcast %251 : vector<2x8x1xf32> to vector<2x8x8xf32>
    %253 = arith.cmpf oeq, %249, %252 : vector<2x8x8xf32>
    %c8_i32_45 = arith.constant 8 : i32
    %254 = vector.broadcast %c8_i32_45 : i32 to vector<2x8x8xi32>
    %255 = arith.select %253, %210, %254 : vector<2x8x8xi1>, vector<2x8x8xi32>
    %cst_46 = arith.constant dense<2147483647> : vector<2x8xi32>
    %256 = vector.multi_reduction <minsi>, %255, %cst_46 [2] : vector<2x8x8xi32> to vector<2x8xi32>
    %257 = vector.extract_strided_slice %205 {offsets = [8, 0], sizes = [2, 8], strides = [1, 1]} : vector<16x8xf32> to vector<2x8xf32>
    %258 = vector.shape_cast %250 : vector<2x8xf32> to vector<2x1x8xf32>
    %259 = vector.broadcast %258 : vector<2x1x8xf32> to vector<2x8x8xf32>
    %260 = arith.addf %259, %209 : vector<2x8x8xf32>
    %261 = vector.shape_cast %257 : vector<2x8xf32> to vector<2x8x1xf32>
    %262 = vector.broadcast %261 : vector<2x8x1xf32> to vector<2x8x8xf32>
    %263 = arith.addf %260, %262 : vector<2x8x8xf32>
    %cst_47 = arith.constant dense<0xFF800000> : vector<2x8xf32>
    %264 = vector.multi_reduction <maximumf>, %263, %cst_47 [2] : vector<2x8x8xf32> to vector<2x8xf32>
    %265 = vector.shape_cast %264 : vector<2x8xf32> to vector<2x8x1xf32>
    %266 = vector.broadcast %265 : vector<2x8x1xf32> to vector<2x8x8xf32>
    %267 = arith.cmpf oeq, %263, %266 : vector<2x8x8xf32>
    %c8_i32_48 = arith.constant 8 : i32
    %268 = vector.broadcast %c8_i32_48 : i32 to vector<2x8x8xi32>
    %269 = arith.select %267, %210, %268 : vector<2x8x8xi1>, vector<2x8x8xi32>
    %cst_49 = arith.constant dense<2147483647> : vector<2x8xi32>
    %270 = vector.multi_reduction <minsi>, %269, %cst_49 [2] : vector<2x8x8xi32> to vector<2x8xi32>
    %271 = vector.extract_strided_slice %205 {offsets = [10, 0], sizes = [2, 8], strides = [1, 1]} : vector<16x8xf32> to vector<2x8xf32>
    %272 = vector.shape_cast %264 : vector<2x8xf32> to vector<2x1x8xf32>
    %273 = vector.broadcast %272 : vector<2x1x8xf32> to vector<2x8x8xf32>
    %274 = arith.addf %273, %209 : vector<2x8x8xf32>
    %275 = vector.shape_cast %271 : vector<2x8xf32> to vector<2x8x1xf32>
    %276 = vector.broadcast %275 : vector<2x8x1xf32> to vector<2x8x8xf32>
    %277 = arith.addf %274, %276 : vector<2x8x8xf32>
    %cst_50 = arith.constant dense<0xFF800000> : vector<2x8xf32>
    %278 = vector.multi_reduction <maximumf>, %277, %cst_50 [2] : vector<2x8x8xf32> to vector<2x8xf32>
    %279 = vector.shape_cast %278 : vector<2x8xf32> to vector<2x8x1xf32>
    %280 = vector.broadcast %279 : vector<2x8x1xf32> to vector<2x8x8xf32>
    %281 = arith.cmpf oeq, %277, %280 : vector<2x8x8xf32>
    %c8_i32_51 = arith.constant 8 : i32
    %282 = vector.broadcast %c8_i32_51 : i32 to vector<2x8x8xi32>
    %283 = arith.select %281, %210, %282 : vector<2x8x8xi1>, vector<2x8x8xi32>
    %cst_52 = arith.constant dense<2147483647> : vector<2x8xi32>
    %284 = vector.multi_reduction <minsi>, %283, %cst_52 [2] : vector<2x8x8xi32> to vector<2x8xi32>
    %285 = vector.extract_strided_slice %205 {offsets = [12, 0], sizes = [2, 8], strides = [1, 1]} : vector<16x8xf32> to vector<2x8xf32>
    %286 = vector.shape_cast %278 : vector<2x8xf32> to vector<2x1x8xf32>
    %287 = vector.broadcast %286 : vector<2x1x8xf32> to vector<2x8x8xf32>
    %288 = arith.addf %287, %209 : vector<2x8x8xf32>
    %289 = vector.shape_cast %285 : vector<2x8xf32> to vector<2x8x1xf32>
    %290 = vector.broadcast %289 : vector<2x8x1xf32> to vector<2x8x8xf32>
    %291 = arith.addf %288, %290 : vector<2x8x8xf32>
    %cst_53 = arith.constant dense<0xFF800000> : vector<2x8xf32>
    %292 = vector.multi_reduction <maximumf>, %291, %cst_53 [2] : vector<2x8x8xf32> to vector<2x8xf32>
    %293 = vector.shape_cast %292 : vector<2x8xf32> to vector<2x8x1xf32>
    %294 = vector.broadcast %293 : vector<2x8x1xf32> to vector<2x8x8xf32>
    %295 = arith.cmpf oeq, %291, %294 : vector<2x8x8xf32>
    %c8_i32_54 = arith.constant 8 : i32
    %296 = vector.broadcast %c8_i32_54 : i32 to vector<2x8x8xi32>
    %297 = arith.select %295, %210, %296 : vector<2x8x8xi1>, vector<2x8x8xi32>
    %cst_55 = arith.constant dense<2147483647> : vector<2x8xi32>
    %298 = vector.multi_reduction <minsi>, %297, %cst_55 [2] : vector<2x8x8xi32> to vector<2x8xi32>
    %299 = vector.extract_strided_slice %205 {offsets = [14, 0], sizes = [2, 8], strides = [1, 1]} : vector<16x8xf32> to vector<2x8xf32>
    %300 = vector.shape_cast %292 : vector<2x8xf32> to vector<2x1x8xf32>
    %301 = vector.broadcast %300 : vector<2x1x8xf32> to vector<2x8x8xf32>
    %302 = arith.addf %301, %209 : vector<2x8x8xf32>
    %303 = vector.shape_cast %299 : vector<2x8xf32> to vector<2x8x1xf32>
    %304 = vector.broadcast %303 : vector<2x8x1xf32> to vector<2x8x8xf32>
    %305 = arith.addf %302, %304 : vector<2x8x8xf32>
    %cst_56 = arith.constant dense<0xFF800000> : vector<2x8xf32>
    %306 = vector.multi_reduction <maximumf>, %305, %cst_56 [2] : vector<2x8x8xf32> to vector<2x8xf32>
    %307 = vector.shape_cast %306 : vector<2x8xf32> to vector<2x8x1xf32>
    %308 = vector.broadcast %307 : vector<2x8x1xf32> to vector<2x8x8xf32>
    %309 = arith.cmpf oeq, %305, %308 : vector<2x8x8xf32>
    %c8_i32_57 = arith.constant 8 : i32
    %310 = vector.broadcast %c8_i32_57 : i32 to vector<2x8x8xi32>
    %311 = arith.select %309, %210, %310 : vector<2x8x8xi1>, vector<2x8x8xi32>
    %cst_58 = arith.constant dense<2147483647> : vector<2x8xi32>
    %312 = vector.multi_reduction <minsi>, %311, %cst_58 [2] : vector<2x8x8xi32> to vector<2x8xi32>
    %313 = tpu.concatenate %214, %228, %242, %256, %270, %284, %298, %312 in 0 : vector<2x8xi32>, vector<2x8xi32>, vector<2x8xi32>, vector<2x8xi32>, vector<2x8xi32>, vector<2x8xi32>, vector<2x8xi32>, vector<2x8xi32> -> vector<16x8xi32>
    %c0_59 = arith.constant 0 : index
    %c0_60 = arith.constant 0 : index
    %314 = vector.load %arg8[%c0_59, %c0_60] : memref<16x8xi32, #tpu.memory_space<vmem>>, vector<16x8xi32>
    tpu.vector_store %arg8[%c0_59, %c0_60], %313 {strides = array<i32>} : memref<16x8xi32, #tpu.memory_space<vmem>>, vector<16x8xi32>,
    %315 = vector.broadcast %200 : vector<1x8xf32> to vector<2x8xf32>
    %316 = arith.addf %306, %315 : vector<2x8xf32>
    %c0_61 = arith.constant 0 : index
    %c0_62 = arith.constant 0 : index
    %317 = vector.load %arg9[%c0_61, %c0_62] : memref<2x8xf32, #tpu.memory_space<vmem>>, vector<2x8xf32>
    tpu.vector_store %arg9[%c0_61, %c0_62], %316 {strides = array<i32>} : memref<2x8xf32, #tpu.memory_space<vmem>>, vector<2x8xf32>,
    return
  }
  func.func @transform_0(%arg0: i32) -> (i32, i32) {
    %c0_i32 = arith.constant 0 : i32
    %c0_i32_0 = arith.constant 0 : i32
    %c0_i32_1 = arith.constant 0 : i32
    return %c0_i32, %c0_i32_0 : i32, i32
  }
  func.func @transform_1(%arg0: i32) -> (i32, i32) {
    %c0_i32 = arith.constant 0 : i32
    %c0_i32_0 = arith.constant 0 : i32
    %c0_i32_1 = arith.constant 0 : i32
    return %c0_i32, %c0_i32_0 : i32, i32
  }
  func.func @transform_2(%arg0: i32) -> (i32, i32) {
    %c0_i32 = arith.constant 0 : i32
    %c0_i32_0 = arith.constant 0 : i32
    %c0_i32_1 = arith.constant 0 : i32
    return %c0_i32, %c0_i32_0 : i32, i32
  }
  func.func @transform_3(%arg0: i32) -> (i32, i32) {
    %c0_i32 = arith.constant 0 : i32
    %c0_i32_0 = arith.constant 0 : i32
    %c0_i32_1 = arith.constant 0 : i32
    return %c0_i32, %c0_i32_0 : i32, i32
  }
  func.func @transform_4(%arg0: i32) -> (i32, i32) {
    %c0_i32 = arith.constant 0 : i32
    %c0_i32_0 = arith.constant 0 : i32
    %c0_i32_1 = arith.constant 0 : i32
    return %c0_i32, %c0_i32_0 : i32, i32
  }
  func.func @transform_5(%arg0: i32) -> (i32, i32) {
    %c0_i32 = arith.constant 0 : i32
    %c0_i32_0 = arith.constant 0 : i32
    %c0_i32_1 = arith.constant 0 : i32
    return %c0_i32, %c0_i32_0 : i32, i32
  }
  func.func @transform_6(%arg0: i32) -> (i32, i32) {
    %c0_i32 = arith.constant 0 : i32
    %c0_i32_0 = arith.constant 0 : i32
    %c0_i32_1 = arith.constant 0 : i32
    return %c0_i32, %c0_i32_0 : i32, i32
  }
  func.func @transform_7(%arg0: i32) -> (i32, i32) {
    %c0_i32 = arith.constant 0 : i32
    %c0_i32_0 = arith.constant 0 : i32
    %c0_i32_1 = arith.constant 0 : i32
    return %c0_i32, %c0_i32_0 : i32, i32
  }
  func.func @transform_8(%arg0: i32) -> (i32, i32) {
    %c0_i32 = arith.constant 0 : i32
    %c0_i32_0 = arith.constant 0 : i32
    %c0_i32_1 = arith.constant 0 : i32
    return %c0_i32, %c0_i32_0 : i32, i32
  }
}

</mosaic_0001>

<bundles_post_ra>
// kernel: custom-call.4
= control target key start
LH: loop header
LB: loop body
LE: loop exit
PB: predicated region body
PF: predicated region fallthrough
CT: control target
= control target key end

     0   :  { %s6_s0 = inlined_call_operand.vmem [shape: s32[7,2], index: 0, kind: output, shape index: {}]  }

// kernel: gru_crf_forward.1
= control target key start
LH: loop header
LB: loop body
LE: loop exit
PB: predicated region body
PF: predicated region fallthrough
CT: control target
= control target key end

     0   :  { %v4943_v3 = vmov 0.0   ;;  %s7116_s0 = inlined_call_operand.vmem [shape: f32[16,32], index: 0, kind: input, shape index: {}]   ;;  %s7117_s1 = inlined_call_operand.vmem [shape: f32[32,96], index: 1, kind: input, shape index: {}]   ;;  %s7118_s2 = inlined_call_operand.vmem [shape: f32[32,96], index: 2, kind: input, shape index: {}]   ;;  %s7119_s3 = inlined_call_operand.vmem [shape: f32[32,8], index: 3, kind: input, shape index: {}]   ;;  %s7120_s4 = inlined_call_operand.vmem [shape: f32[1,128], index: 4, kind: input, shape index: {}]   ;;  %s7121_s5 = inlined_call_operand.vmem [shape: f32[11,8], index: 5, kind: input, shape index: {}]   ;;  %s7122_s6 = inlined_call_operand.hbm [shape: f32[16,8], index: 6, kind: output, shape index: {0}]   ;;  %s7123_s7 = inlined_call_operand.vmem [shape: s32[16,8], index: 7, kind: output, shape index: {1}]   ;;  %s7124_s8 = inlined_call_operand.vmem [shape: f32[2,8], index: 8, kind: output, shape index: {2}]  }
   0x1   :  { %v37_v0 = vld [vmem:[%s7117_s1 + $0x18] sm:$0xff]  ;;  %v36_v2 = vld [vmem:[%s7117_s1 + $0x10] sm:$0xff]  ;;  %4762 = vmatprep.subr.mxu1 %v4943_v3  ;;  %v35_v5 = vld [vmem:[%s7117_s1 + $0x8] sm:$0xff] }
   0x2   :  { %v5003_v1 = vld [vmem:[%s7118_s2 + $0x18] sm:$0xff]  ;;  %4751 = vmatprep.subr.mxu0 %v37_v0  ;;  %v5012_v4 = vld [vmem:[%s7118_s2 + $0x10] sm:$0xff]  ;;  %v5022_v6 = vld [vmem:[%s7118_s2 + $0x8] sm:$0xff] }
   0x3   :  { %4752 = vmatpush3.msra.mxu0 %v37_v0  ;;  %4763 = vmatpush3.msra.mxu1 %v5003_v1 }
   0x4   :  { %4753 = vmatprep.subr.mxu0 %v36_v2  ;;  %4764 = vmatprep.subr.mxu1 %v4943_v3 }
   0x5   :  { %14 = vsyncpa [#allocation3], 0  ;;  %4754 = vmatpush3.msra.mxu0 %v36_v2  ;;  %4765 = vmatpush3.msra.mxu1 %v5012_v4  ;;  %v34_v7 = vld [vmem:[%s7117_s1] sm:$0xff]  ;;  %vm44_vm0 = vcmask 261120   ;;  %v33_v10 = vld [vmem:[%s7116_s0 + $0x8] sm:$0xff]  ;;  %vm4944_vm1 = vmmov 0  }
   0x6   :  { %4755 = vmatprep.subr.mxu0 %v35_v5  ;;  %4766 = vmatprep.subr.mxu1 %v4943_v3  ;;  %v32_v8 = vld [vmem:[%s7116_s0] sm:$0xff]  ;;  %s4946_s0 = smov 64   ;;  %vm985_vm2 = vcmask 1041408   ;;  %vm987_vm3 = vcmask 1043456   ;;  %vm989_vm4 = vcmask 1045504   ;;  %vm1089_vm5 = vcmask 64512  }
   0x7   :  { %4756 = vmatpush3.msra.mxu0 %v35_v5  ;;  %4767 = vmatpush3.msra.mxu1 %v5022_v6  ;;  %v5036_v9 = vld [vmem:[%s7118_s2] sm:$0xff]  ;;  %s4945_s2 = smov 96   ;;  %vm1511_vm8 = vcmask 1041409   ;;  %vm1513_vm9 = vcmask 1042434   ;;  %vm1515_vm10 = vcmask 1043459   ;;  %vm1517_vm11 = vcmask 1044484  }
   0x8   :  { %4757 = vmatprep.subr.mxu0 %v34_v7  ;;  %4768 = vmatprep.subr.mxu1 %v4943_v3  ;;  %v5046_v11 = vld [vmem:[%s7120_s4] ss:$0 sm:$0xff]  ;;  %vm1519_vm12 = vcmask 1045509   ;;  %vm1521_vm13 = vcmask 1046534   ;;  %vm1523_vm14 = vcmask 1047559  }
   0x9   :  { %4758 = vmatpush3.msra.mxu0 %v34_v7  ;;  %4759 = vmatprep.mubr.msk.f32.mxu0 %vm44_vm0, %v32_v8 }
   0xa   :  { %4769 = vmatpush3.msra.mxu1 %v5036_v9  ;;  %4770 = vmatprep.mubr.msk.f32.mxu1 %vm4944_vm1, %v4943_v3 }
   0xb   :  { %4760 = vmatmul.mubr.msk.f32.vlgmr.msra.gmra.mxu0 %vm44_vm0, %v33_v10  ;;  %4771 = vmatmul.mubr.f32.vlgmr.msra.gmra.mxu1 %v4943_v3 }
   0xc   :  { %206 = vrot.lane.b32.xlu0 %v5046_v11, %s4945_s2  ;;  %4773 = vmatprep.subr.mxu0 %v4943_v3 }
   0xd   :  { %4774 = vmatpush3.msra.mxu0 %v5003_v1  ;;  %4781 = vmatprep.mubr.msk.f32.mxu0 %vm4944_vm1, %v4943_v3 }
   0xe   :  { %4775 = vmatprep.subr.mxu0 %v4943_v3  ;;  %4784 = vmatprep.subr.mxu1 %v4943_v3 }
   0xf   :  { %4776 = vmatpush3.msra.mxu0 %v5012_v4  ;;  %4785 = vmatpush3.msra.mxu1 %v5003_v1 }
  0x10   :  { %4777 = vmatprep.subr.mxu0 %v4943_v3  ;;  %4786 = vmatprep.subr.mxu1 %v4943_v3 }
  0x11   :  { %4778 = vmatpush3.msra.mxu0 %v5022_v6  ;;  %4787 = vmatpush3.msra.mxu1 %v5012_v4 }
  0x12   :  { %4779 = vmatprep.subr.mxu0 %v4943_v3  ;;  %4788 = vmatprep.subr.mxu1 %v4943_v3 }
  0x13   :  { %4780 = vmatpush3.msra.mxu0 %v5036_v9  ;;  %4789 = vmatpush3.msra.mxu1 %v5022_v6 }
  0x14   :  { %4790 = vmatprep.subr.mxu1 %v4943_v3  ;;  %4792 = vmatprep.mubr.msk.f32.mxu1 %vm4944_vm1, %v4943_v3 }
  0x15   :  { %4791 = vmatpush3.msra.mxu1 %v5036_v9  ;;  %4795 = vmatprep.subr.mxu0 %v4943_v3 }
  0x16   :  { %4806 = vmatprep.subr.mxu1 %v4943_v3 }
  0x7e   :  { %v5077_v12 = vpop.permute.xlu0 %206 }
  0xcb   :  { %v195_v13 = vpop.f32.mrf.mxu1  ;;  %v5081_v16 = vpop.f32.mrf.mxu0 }
  0xcc   :  { %v209_v14 = vadd.f32 %v5077_v12, %v195_v13 }
  0xcd   :  { %v4772_v15 = vpop.f32.mrf.mxu1  ;;  %v117_v17 = vpop.f32.mrf.mxu0 }
  0xce   :  { %211 = vrot.lane.b32.xlu0 %v209_v14, %s4946_s0  ;;  %v5084_v18 = vadd.f32 %v5046_v11, %v117_v17 }
  0xd0   :  { %v199_v19 = vadd.f32 %v195_v13, %v5084_v18 }
  0xd2   :  { %v4682_v20 = vmul.f32 -1.442695, %v199_v19 }
  0xd4   :  { %4872 = vpow2.f32 %v4682_v20 }
  0xe1   :  { %v4873_v21 = vpop.eup %4872 }
  0xe2   :  { %v203_v22 = vadd.f32 1.0, %v4873_v21 }
  0xe4   :  { %4874 = vrcp.f32 %v203_v22 }
  0xf1   :  { %v4875_v23 = vpop.eup %4874 }
  0xf2   :  { %v221_v29 = vsub.f32 1.0, %v4875_v23  ;;  %v227_v31 = vmul.f32 0.0, %v4875_v23 }
 0x140   :  { %v212_v24 = vpop.permute.xlu0 %211 }
 0x141   :  { %v214_v25 = vmul.f32 %v4875_v23, %v212_v24 }
 0x143   :  { %216 = vrot.lane.b32.xlu1 %v214_v25, %s4946_s0 }
 0x1b5   :  { %v217_v26 = vpop.permute.xlu1 %216 }
 0x1b6   :  { %v219_v27 = vadd.f32 %v217_v26, %v5084_v18 }
 0x1b8   :  { %4876 = vtanh.f32 %v219_v27 }
 0x1c5   :  { %v4877_v28 = vpop.eup %4876 }
 0x1c6   :  { %223 = vrot.lane.b32.xlu1 %v4877_v28, %s4945_s2 }
 0x238   :  { %v224_v30 = vpop.permute.xlu1 %223 }
 0x239   :  { %v226_v32 = vmul.f32 %v224_v30, %v221_v29 }
 0x23b   :  { %v5090_v33 = vadd.f32 %v227_v31, %v226_v32 }
 0x23d   :  { %230 = vrot.lane.b32.xlu0 %v5090_v33, %s4945_s2  ;;  %v333_v51 = vrot.slane %v5090_v33, 6 }
 0x2af   :  { %v231_v34 = vpop.permute.xlu0 %230 }
 0x2b0   :  { %4782 = vmatmul.mubr.msk.f32.vlgmr.msra.gmra.mxu0 %vm44_vm0, %v231_v34 }
 0x2b1   :  { %4796 = vmatpush3.msra.mxu0 %v5003_v1  ;;  %4803 = vmatprep.mubr.msk.f32.mxu0 %vm4944_vm1, %v4943_v3 }
 0x2b2   :  { %4797 = vmatprep.subr.mxu0 %v4943_v3 }
 0x2b3   :  { %4798 = vmatpush3.msra.mxu0 %v5012_v4 }
 0x2b4   :  { %4799 = vmatprep.subr.mxu0 %v4943_v3 }
 0x2b5   :  { %4800 = vmatpush3.msra.mxu0 %v5022_v6 }
 0x2b6   :  { %4801 = vmatprep.subr.mxu0 %v4943_v3 }
 0x2b7   :  { %4802 = vmatpush3.msra.mxu0 %v5036_v9 }
 0x2b8   :  { %4817 = vmatprep.subr.mxu0 %v4943_v3 }
 0x370   :  { %v300_v35 = vpop.f32.mrf.mxu0 }
 0x371   :  { %v314_v36 = vadd.f32 %v300_v35, %v5077_v12  ;;  %v305_v39 = vrot.slane %v300_v35, 6 }
 0x372   :  { %v4783_v37 = vpop.f32.mrf.mxu0 }
 0x373   :  { %v316_v38 = vrot.slane %v314_v36, 6  ;;  %v307_v40 = vadd.f32 %v305_v39, %v5084_v18 }
 0x375   :  { %317 = vrot.lane.b32.xlu1 %v316_v38, %s4946_s0  ;;  %v4684_v41 = vmul.f32 -1.442695, %v307_v40 }
 0x377   :  { %4878 = vpow2.f32 %v4684_v41 }
 0x384   :  { %v4879_v42 = vpop.eup %4878 }
 0x385   :  { %v311_v43 = vadd.f32 1.0, %v4879_v42 }
 0x387   :  { %4880 = vrcp.f32 %v311_v43 }
 0x394   :  { %v4881_v44 = vpop.eup %4880 }
 0x395   :  { %v327_v50 = vsub.f32 1.0, %v4881_v44  ;;  %v335_v54 = vmul.f32 %v4881_v44, %v333_v51 }
 0x3e7   :  { %v318_v45 = vpop.permute.xlu1 %317 }
 0x3e8   :  { %v320_v46 = vmul.f32 %v4881_v44, %v318_v45 }
 0x3ea   :  { %322 = vrot.lane.b32.xlu0 %v320_v46, %s4946_s0 }
 0x45c   :  { %v323_v47 = vpop.permute.xlu0 %322 }
 0x45d   :  { %v325_v48 = vadd.f32 %v323_v47, %v5084_v18 }
 0x45f   :  { %4882 = vtanh.f32 %v325_v48 }
 0x46c   :  { %v4883_v49 = vpop.eup %4882 }
 0x46d   :  { %329 = vrot.lane.b32.xlu1 %v4883_v49, %s4945_s2 }
 0x4df   :  { %v330_v52 = vpop.permute.xlu1 %329 }
 0x4e0   :  { %v332_v53 = vmul.f32 %v330_v52, %v327_v50 }
 0x4e2   :  { %v336_v55 = vadd.f32 %v335_v54, %v332_v53  ;;  %v5169_v54 = vadd.f32 %v5081_v16, %v5046_v11 }
 0x4e4   :  { %v338_v56 = vrot.slane %v336_v55, 2  ;;  %v442_v19 = vrot.slane %v336_v55, 6  ;;  %v986_v24 = vsel %vm985_vm2, %v5090_v33, %v336_v55 }
 0x4e6   :  { %339 = vrot.lane.b32.xlu0 %v338_v56, %s4945_s2 }
 0x558   :  { %v340_v57 = vpop.permute.xlu0 %339 }
 0x559   :  { %4793 = vmatmul.mubr.msk.f32.vlgmr.msra.gmra.mxu1 %vm44_vm0, %v340_v57 }
 0x55a   :  { %4807 = vmatpush3.msra.mxu1 %v5003_v1  ;;  %4814 = vmatprep.mubr.msk.f32.mxu1 %vm4944_vm1, %v4943_v3 }
 0x55b   :  { %4808 = vmatprep.subr.mxu1 %v4943_v3 }
 0x55c   :  { %4809 = vmatpush3.msra.mxu1 %v5012_v4 }
 0x55d   :  { %4810 = vmatprep.subr.mxu1 %v4943_v3 }
 0x55e   :  { %4811 = vmatpush3.msra.mxu1 %v5022_v6 }
 0x55f   :  { %4812 = vmatprep.subr.mxu1 %v4943_v3 }
 0x560   :  { %4813 = vmatpush3.msra.mxu1 %v5036_v9 }
 0x561   :  { %4828 = vmatprep.subr.mxu1 %v4943_v3 }
 0x619   :  { %v409_v58 = vpop.f32.mrf.mxu1 }
 0x61a   :  { %v423_v59 = vadd.f32 %v409_v58, %v5077_v12  ;;  %v414_v62 = vrot.slane %v409_v58, 4 }
 0x61b   :  { %v4794_v60 = vpop.f32.mrf.mxu1 }
 0x61c   :  { %v425_v61 = vrot.slane %v423_v59, 4  ;;  %v416_v63 = vadd.f32 %v414_v62, %v5084_v18 }
 0x61e   :  { %426 = vrot.lane.b32.xlu1 %v425_v61, %s4946_s0  ;;  %v4686_v0 = vmul.f32 -1.442695, %v416_v63 }
 0x620   :  { %4884 = vpow2.f32 %v4686_v0 }
 0x62d   :  { %v4885_v2 = vpop.eup %4884 }
 0x62e   :  { %v420_v5 = vadd.f32 1.0, %v4885_v2 }
 0x630   :  { %4886 = vrcp.f32 %v420_v5 }
 0x63d   :  { %v4887_v7 = vpop.eup %4886 }
 0x63e   :  { %v436_v17 = vsub.f32 1.0, %v4887_v7  ;;  %v444_v21 = vmul.f32 %v4887_v7, %v442_v19 }
 0x690   :  { %v427_v8 = vpop.permute.xlu1 %426 }
 0x691   :  { %v429_v10 = vmul.f32 %v4887_v7, %v427_v8 }
 0x693   :  { %431 = vrot.lane.b32.xlu0 %v429_v10, %s4946_s0 }
 0x705   :  { %v432_v13 = vpop.permute.xlu0 %431 }
 0x706   :  { %v434_v14 = vadd.f32 %v432_v13, %v5084_v18 }
 0x708   :  { %4888 = vtanh.f32 %v434_v14 }
 0x715   :  { %v4889_v15 = vpop.eup %4888 }
 0x716   :  { %438 = vrot.lane.b32.xlu1 %v4889_v15, %s4945_s2 }
 0x788   :  { %v439_v20 = vpop.permute.xlu1 %438 }
 0x789   :  { %v441_v22 = vmul.f32 %v439_v20, %v436_v17 }
 0x78b   :  { %v445_v23 = vadd.f32 %v444_v21, %v441_v22 }
 0x78d   :  { %v447_v25 = vrot.slane %v445_v23, 4  ;;  %v988_v26 = vsel %vm987_vm3, %v986_v24, %v445_v23  ;;  %v551_v44 = vrot.slane %v445_v23, 6 }
 0x78f   :  { %448 = vrot.lane.b32.xlu0 %v447_v25, %s4945_s2 }
 0x801   :  { %v449_v27 = vpop.permute.xlu0 %448 }
 0x802   :  { %4804 = vmatmul.mubr.msk.f32.vlgmr.msra.gmra.mxu0 %vm44_vm0, %v449_v27 }
 0x803   :  { %4818 = vmatpush3.msra.mxu0 %v5003_v1  ;;  %4825 = vmatprep.mubr.msk.f32.mxu0 %vm4944_vm1, %v4943_v3 }
 0x804   :  { %4819 = vmatprep.subr.mxu0 %v4943_v3 }
 0x805   :  { %4820 = vmatpush3.msra.mxu0 %v5012_v4 }
 0x806   :  { %4821 = vmatprep.subr.mxu0 %v4943_v3 }
 0x807   :  { %4822 = vmatpush3.msra.mxu0 %v5022_v6 }
 0x808   :  { %4823 = vmatprep.subr.mxu0 %v4943_v3 }
 0x809   :  { %4824 = vmatpush3.msra.mxu0 %v5036_v9 }
 0x80a   :  { %4839 = vmatprep.subr.mxu0 %v4943_v3 }
 0x8c2   :  { %v518_v28 = vpop.f32.mrf.mxu0 }
 0x8c3   :  { %v532_v29 = vadd.f32 %v518_v28, %v5077_v12  ;;  %v523_v32 = vrot.slane %v518_v28, 2 }
 0x8c4   :  { %v4805_v30 = vpop.f32.mrf.mxu0 }
 0x8c5   :  { %v534_v31 = vrot.slane %v532_v29, 2  ;;  %v525_v33 = vadd.f32 %v523_v32, %v5084_v18 }
 0x8c7   :  { %535 = vrot.lane.b32.xlu1 %v534_v31, %s4946_s0  ;;  %v4688_v34 = vmul.f32 -1.442695, %v525_v33 }
 0x8c9   :  { %4890 = vpow2.f32 %v4688_v34 }
 0x8d6   :  { %v4891_v35 = vpop.eup %4890 }
 0x8d7   :  { %v529_v36 = vadd.f32 1.0, %v4891_v35 }
 0x8d9   :  { %4892 = vrcp.f32 %v529_v36 }
 0x8e6   :  { %v4893_v37 = vpop.eup %4892 }
 0x8e7   :  { %v545_v43 = vsub.f32 1.0, %v4893_v37  ;;  %v553_v46 = vmul.f32 %v4893_v37, %v551_v44 }
 0x939   :  { %v536_v38 = vpop.permute.xlu1 %535 }
 0x93a   :  { %v538_v39 = vmul.f32 %v4893_v37, %v536_v38 }
 0x93c   :  { %540 = vrot.lane.b32.xlu0 %v538_v39, %s4946_s0 }
 0x9ae   :  { %v541_v40 = vpop.permute.xlu0 %540 }
 0x9af   :  { %v543_v41 = vadd.f32 %v541_v40, %v5084_v18 }
 0x9b1   :  { %4894 = vtanh.f32 %v543_v41 }
 0x9be   :  { %v4895_v42 = vpop.eup %4894 }
 0x9bf   :  { %547 = vrot.lane.b32.xlu1 %v4895_v42, %s4945_s2 }
 0xa31   :  { %v548_v45 = vpop.permute.xlu1 %547 }
 0xa32   :  { %v550_v47 = vmul.f32 %v548_v45, %v545_v43 }
 0xa34   :  { %v554_v48 = vadd.f32 %v553_v46, %v550_v47 }
 0xa36   :  { %v556_v49 = vrot.slane %v554_v48, 6  ;;  %v5152_v50 = vsel %vm989_vm4, %v988_v26, %v554_v48 }
 0xa38   :  { %557 = vrot.lane.b32.xlu0 %v556_v49, %s4945_s2 }
 0xaaa   :  { %v558_v51 = vpop.permute.xlu0 %557 }
 0xaab   :  { %4815 = vmatmul.mubr.msk.f32.vlgmr.msra.gmra.mxu1 %vm44_vm0, %v558_v51 }
 0xaac   :  { %4829 = vmatpush3.msra.mxu1 %v5003_v1  ;;  %4836 = vmatprep.mubr.msk.f32.mxu1 %vm4944_vm1, %v4943_v3 }
 0xaad   :  { %4830 = vmatprep.subr.mxu1 %v4943_v3 }
 0xaae   :  { %4831 = vmatpush3.msra.mxu1 %v5012_v4 }
 0xaaf   :  { %4832 = vmatprep.subr.mxu1 %v4943_v3 }
 0xab0   :  { %4833 = vmatpush3.msra.mxu1 %v5022_v6 }
 0xab1   :  { %4834 = vmatprep.subr.mxu1 %v4943_v3 }
 0xab2   :  { %4835 = vmatpush3.msra.mxu1 %v5036_v9 }
 0xb6b   :  { %v627_v18 = vpop.f32.mrf.mxu1 }
 0xb6c   :  { %v638_v52 = vadd.f32 %v627_v18, %v5077_v12  ;;  %v631_v55 = vadd.f32 %v627_v18, %v5169_v54 }
 0xb6d   :  { %v4816_v53 = vpop.f32.mrf.mxu1 }
 0xb6e   :  { %640 = vrot.lane.b32.xlu1 %v638_v52, %s4946_s0  ;;  %v4690_v56 = vmul.f32 -1.442695, %v631_v55 }
 0xb70   :  { %4896 = vpow2.f32 %v4690_v56 }
 0xb7d   :  { %v4897_v57 = vpop.eup %4896 }
 0xb7e   :  { %v635_v58 = vadd.f32 1.0, %v4897_v57 }
 0xb80   :  { %4898 = vrcp.f32 %v635_v58 }
 0xb8d   :  { %v4899_v59 = vpop.eup %4898 }
 0xb8e   :  { %v650_v11 = vsub.f32 1.0, %v4899_v59  ;;  %v657_v2 = vmul.f32 %v4899_v59, %v556_v49 }
 0xbe0   :  { %v641_v60 = vpop.permute.xlu1 %640 }
 0xbe1   :  { %v643_v61 = vmul.f32 %v4899_v59, %v641_v60 }
 0xbe3   :  { %645 = vrot.lane.b32.xlu0 %v643_v61, %s4946_s0 }
 0xc55   :  { %v646_v62 = vpop.permute.xlu0 %645 }
 0xc56   :  { %v648_v63 = vadd.f32 %v646_v62, %v5169_v54 }
 0xc58   :  { %4900 = vtanh.f32 %v648_v63 }
 0xc65   :  { %v4901_v0 = vpop.eup %4900 }
 0xc66   :  { %652 = vrot.lane.b32.xlu1 %v4901_v0, %s4945_s2 }
 0xcd8   :  { %v653_v16 = vpop.permute.xlu1 %652 }
 0xcd9   :  { %v655_v5 = vmul.f32 %v653_v16, %v650_v11 }
 0xcdb   :  { %v5175_v7 = vadd.f32 %v657_v2, %v655_v5 }
 0xcdd   :  { %660 = vrot.lane.b32.xlu0 %v5175_v7, %s4945_s2  ;;  %v763_v25 = vrot.slane %v5175_v7, 6 }
 0xd4f   :  { %v661_v8 = vpop.permute.xlu0 %660 }
 0xd50   :  { %4826 = vmatmul.mubr.msk.f32.vlgmr.msra.gmra.mxu0 %vm44_vm0, %v661_v8 }
 0xd51   :  { %4840 = vmatpush3.msra.mxu0 %v5003_v1  ;;  %4847 = vmatprep.mubr.msk.f32.mxu0 %vm4944_vm1, %v4943_v3 }
 0xd52   :  { %4841 = vmatprep.subr.mxu0 %v4943_v3 }
 0xd53   :  { %4842 = vmatpush3.msra.mxu0 %v5012_v4 }
 0xd54   :  { %4843 = vmatprep.subr.mxu0 %v4943_v3 }
 0xd55   :  { %4844 = vmatpush3.msra.mxu0 %v5022_v6 }
 0xd56   :  { %4845 = vmatprep.subr.mxu0 %v4943_v3 }
 0xd57   :  { %4846 = vmatpush3.msra.mxu0 %v5036_v9 }
 0xe10   :  { %v730_v10 = vpop.f32.mrf.mxu0 }
 0xe11   :  { %v744_v13 = vadd.f32 %v730_v10, %v5077_v12  ;;  %v735_v15 = vrot.slane %v730_v10, 6 }
 0xe12   :  { %v4827_v14 = vpop.f32.mrf.mxu0 }
 0xe13   :  { %v746_v1 = vrot.slane %v744_v13, 6  ;;  %v737_v17 = vadd.f32 %v735_v15, %v5169_v54  ;;  %v999_v13 = vld [vmem:[%s7119_s3 + $0x18] sm:$0xff]  ;;  %v998_v14 = vld [vmem:[%s7119_s3 + $0x10] sm:$0xff] }
 0xe14   :  { %4850 = vmatprep.subr.mxu1 %v999_v13 }
 0xe15   :  { %747 = vrot.lane.b32.xlu1 %v746_v1, %s4946_s0  ;;  %v4692_v19 = vmul.f32 -1.442695, %v737_v17 }
 0xe17   :  { %4902 = vpow2.f32 %v4692_v19 }
 0xe24   :  { %v4903_v4 = vpop.eup %4902 }
 0xe25   :  { %v741_v20 = vadd.f32 1.0, %v4903_v4 }
 0xe27   :  { %4904 = vrcp.f32 %v741_v20 }
 0xe34   :  { %v4905_v6 = vpop.eup %4904 }
 0xe35   :  { %v757_v24 = vsub.f32 1.0, %v4905_v6  ;;  %v765_v28 = vmul.f32 %v4905_v6, %v763_v25 }
 0xe87   :  { %v748_v21 = vpop.permute.xlu1 %747 }
 0xe88   :  { %v750_v3 = vmul.f32 %v4905_v6, %v748_v21 }
 0xe8a   :  { %752 = vrot.lane.b32.xlu0 %v750_v3, %s4946_s0 }
 0xefc   :  { %v753_v9 = vpop.permute.xlu0 %752 }
 0xefd   :  { %v755_v22 = vadd.f32 %v753_v9, %v5169_v54  ;;  %v1000_v9 = vlaneseq }
 0xeff   :  { %4906 = vtanh.f32 %v755_v22  ;;  %v5234_v22 = vshrl.u32 %v1000_v9, 7 }
 0xf0c   :  { %v4907_v23 = vpop.eup %4906 }
 0xf0d   :  { %759 = vrot.lane.b32.xlu1 %v4907_v23, %s4945_s2  ;;  %v5237_v23 = vsub.s32 2, %v5234_v22 }
 0xf7f   :  { %v760_v26 = vpop.permute.xlu1 %759 }
 0xf80   :  { %v762_v27 = vmul.f32 %v760_v26, %v757_v24  ;;  %v995_v24 = vld [vmem:[%s7121_s5 + $0x8] sm:$0x7] }
 0xf81   :  { %v1003_v25 = vrot.slane %v995_v24, %v5237_v23 }
 0xf82   :  { %v766_v29 = vadd.f32 %v765_v28, %v762_v27 }
 0xf84   :  { %v768_v30 = vrot.slane %v766_v29, 2  ;;  %v872_v48 = vrot.slane %v766_v29, 6  ;;  %v991_v53 = vsel %vm985_vm2, %v5175_v7, %v766_v29 }
 0xf86   :  { %769 = vrot.lane.b32.xlu0 %v768_v30, %s4945_s2  ;;  %v5248_v30 = vsub.s32 3, %v5234_v22 }
 0xff8   :  { %v770_v31 = vpop.permute.xlu0 %769 }
 0xff9   :  { %4837 = vmatmul.mubr.msk.f32.vlgmr.msra.gmra.mxu1 %vm44_vm0, %v770_v31  ;;  %v5253_v31 = vsub.s32 0, %v5234_v22 }
 0xffa   :  { %4851 = vmatpush3.msra.mxu1 %v999_v13 }
 0xffb   :  { %4852 = vmatprep.subr.mxu1 %v998_v14 }
 0xffc   :  { %4853 = vmatpush3.msra.mxu1 %v998_v14 }
0x10b9   :  { %v839_v32 = vpop.f32.mrf.mxu1 }
0x10ba   :  { %v853_v33 = vadd.f32 %v839_v32, %v5077_v12  ;;  %v844_v36 = vrot.slane %v839_v32, 4 }
0x10bb   :  { %v4838_v34 = vpop.f32.mrf.mxu1 }
0x10bc   :  { %v855_v35 = vrot.slane %v853_v33, 4  ;;  %v846_v37 = vadd.f32 %v844_v36, %v5169_v54  ;;  %v5260_v34 = vsub.s32 1, %v5234_v22 }
0x10be   :  { %856 = vrot.lane.b32.xlu1 %v855_v35, %s4946_s0  ;;  %v4694_v38 = vmul.f32 -1.442695, %v846_v37  ;;  %v994_v35 = vld [vmem:[%s7121_s5] sm:$0xff] }
0x10bf   :  { %v1194_v36 = vrot.slane %v994_v35, %v5253_v31  ;;  %v1201_v37 = vrot.slane %v994_v35, %v5260_v34 }
0x10c0   :  { %4908 = vpow2.f32 %v4694_v38  ;;  %v5270_v38 = vsub.s32 4, %v5234_v22 }
0x10cd   :  { %v4909_v39 = vpop.eup %4908 }
0x10ce   :  { %v850_v40 = vadd.f32 1.0, %v4909_v39  ;;  %v1208_v39 = vrot.slane %v994_v35, %v5237_v23 }
0x10d0   :  { %4910 = vrcp.f32 %v850_v40  ;;  %v1222_v40 = vrot.slane %v994_v35, %v5270_v38 }
0x10dd   :  { %v4911_v41 = vpop.eup %4910 }
0x10de   :  { %v866_v47 = vsub.f32 1.0, %v4911_v41  ;;  %v874_v51 = vmul.f32 %v4911_v41, %v872_v48  ;;  %v4947_v48 = vmov 1966171168  }
0x1130   :  { %v857_v42 = vpop.permute.xlu1 %856 }
0x1131   :  { %v859_v43 = vmul.f32 %v4911_v41, %v857_v42  ;;  %v5275_v41 = vsub.s32 6, %v5234_v22  ;;  %v1215_v42 = vrot.slane %v994_v35, %v5248_v30 }
0x1133   :  { %861 = vrot.lane.b32.xlu0 %v859_v43, %s4946_s0  ;;  %v1236_v43 = vrot.slane %v994_v35, %v5275_v41 }
0x11a5   :  { %v862_v44 = vpop.permute.xlu0 %861 }
0x11a6   :  { %v864_v45 = vadd.f32 %v862_v44, %v5169_v54  ;;  %v5280_v44 = vsub.s32 5, %v5234_v22 }
0x11a8   :  { %4912 = vtanh.f32 %v864_v45  ;;  %v1229_v45 = vrot.slane %v994_v35, %v5280_v44 }
0x11b5   :  { %v4913_v46 = vpop.eup %4912 }
0x11b6   :  { %868 = vrot.lane.b32.xlu1 %v4913_v46, %s4945_s2  ;;  %v5284_v46 = vsub.s32 7, %v5234_v22 }
0x1228   :  { %v869_v49 = vpop.permute.xlu1 %868 }
0x1229   :  { %v871_v18 = vmul.f32 %v869_v49, %v866_v47  ;;  %v1243_v47 = vrot.slane %v994_v35, %v5284_v46  ;;  %v1101_v49 = vunpack.c.l.s4 %v4947_v48 }
0x122b   :  { %v875_v52 = vadd.f32 %v874_v51, %v871_v18  ;;  %v1097_v51 = vrot.slane %v995_v24, %v5253_v31  ;;  %v1102_v18 = vunpack.c.0.s8 %v1101_v49 }
0x122d   :  { %v877_v55 = vrot.slane %v875_v52, 4  ;;  %v992_v56 = vsel %vm987_vm3, %v991_v53, %v875_v52  ;;  %v981_v17 = vrot.slane %v875_v52, 6  ;;  %v1105_v52 = vsub.s32 %v1102_v18, %v5234_v22 }
0x122f   :  { %878 = vrot.lane.b32.xlu0 %v877_v55, %s4945_s2 }
0x12a1   :  { %v879_v57 = vpop.permute.xlu0 %878 }
0x12a2   :  { %4848 = vmatmul.mubr.msk.f32.vlgmr.msra.gmra.mxu0 %vm44_vm0, %v879_v57 }
0x1362   :  { %v948_v58 = vpop.f32.mrf.mxu0 }
0x1363   :  { %v962_v59 = vadd.f32 %v948_v58, %v5077_v12  ;;  %v953_v62 = vrot.slane %v948_v58, 2 }
0x1364   :  { %v4849_v60 = vpop.f32.mrf.mxu0 }
0x1365   :  { %v964_v61 = vrot.slane %v962_v59, 2  ;;  %v955_v63 = vadd.f32 %v953_v62, %v5169_v54 }
0x1367   :  { %965 = vrot.lane.b32.xlu1 %v964_v61, %s4946_s0  ;;  %v4696_v0 = vmul.f32 -1.442695, %v955_v63 }
0x1369   :  { %4914 = vpow2.f32 %v4696_v0 }
0x1376   :  { %v4915_v11 = vpop.eup %4914 }
0x1377   :  { %v959_v16 = vadd.f32 1.0, %v4915_v11 }
0x1379   :  { %4916 = vrcp.f32 %v959_v16 }
0x1386   :  { %v4917_v2 = vpop.eup %4916 }
0x1387   :  { %v975_v15 = vsub.f32 1.0, %v4917_v2  ;;  %v983_v4 = vmul.f32 %v4917_v2, %v981_v17 }
0x13d9   :  { %v966_v5 = vpop.permute.xlu1 %965 }
0x13da   :  { %v968_v7 = vmul.f32 %v4917_v2, %v966_v5 }
0x13dc   :  { %970 = vrot.lane.b32.xlu0 %v968_v7, %s4946_s0  ;;  %v4948_v7 = vmov 0  }
0x13dd   :  { %4871 = vset.pattern.permute.xlu1 %v4948_v7  ;;  %4870 = vset.pattern.permute.xlu0 %v4948_v7 }
0x13e0   :  { %1006 = vrot.lane.b32.xlu0 %v5152_v50, %s4945_s2  ;;  %v997_v50 = vld [vmem:[%s7119_s3 + $0x8] sm:$0xff] }
0x13e1   :  { %4854 = vmatprep.subr.mxu1 %v997_v50 }
0x13e2   :  { %4855 = vmatpush3.msra.mxu1 %v997_v50 }
0x144e   :  { %v971_v12 = vpop.permute.xlu0 %970 }
0x144f   :  { %v973_v8 = vadd.f32 %v971_v12, %v5169_v54  ;;  %v996_v54 = vld [vmem:[%s7119_s3] sm:$0xff] }
0x1450   :  { %4856 = vmatprep.subr.mxu1 %v996_v54 }
0x1451   :  { %4918 = vtanh.f32 %v973_v8  ;;  %4857 = vmatpush3.msra.mxu1 %v996_v54 }
0x1452   :  { %v1007_v10 = vpop.permute.xlu0 %1006 }
0x1453   :  { %4858 = vmatprep.mubr.msk.f32.mxu1 %vm44_vm0, %v1007_v10 }
0x145e   :  { %v4919_v1 = vpop.eup %4918 }
0x145f   :  { %977 = vrot.lane.b32.xlu1 %v4919_v1, %s4945_s2 }
0x14d1   :  { %v978_v19 = vpop.permute.xlu1 %977 }
0x14d2   :  { %v980_v20 = vmul.f32 %v978_v19, %v975_v15 }
0x14d4   :  { %v984_v6 = vadd.f32 %v983_v4, %v980_v20 }
0x14d6   :  { %v993_v21 = vsel %vm989_vm4, %v992_v56, %v984_v6 }
0x14d7   :  { %1008 = vrot.lane.b32.xlu1 %v993_v21, %s4945_s2 }
0x1549   :  { %v1009_v3 = vpop.permute.xlu1 %1008 }
0x154a   :  { %4859 = vmatmul.mubr.msk.f32.vlgmr.msra.gmra.mxu1 %vm44_vm0, %v1009_v3 }
0x160a   :  { %v4860_v26 = vpop.f32.mrf.mxu1 }
0x160b   :  { %v5243_v27 = vadd.f32 %v4860_v26, %v1003_v25 }
0x160c   :  { %v1080_v28 = vpop.f32.mrf.mxu1 }
0x160d   :  { %7165 = vst [vmem:[#allocation5_spill] sm:$0xff] %v5243_v27  ;;  %v5245_v29 = vadd.f32 %v1080_v28, %v1003_v25  ;;  %1091 = vst.msk [vmem:[#allocation2 + $0x8] sm:$0xff] %vm1089_vm5, %v5243_v27 }
0x160f   :  { %v1144_v32 = vrot.slane %v5245_v29, %v5248_v30  ;;  %v1137_v33 = vrot.slane %v5245_v29, %v5237_v23  ;;  %1090 = vst.msk [vmem:[#allocation2] sm:$0xff] %vm1089_vm5, %v5245_v29  ;;  %v1098_v53 = vadd.f32 %v1097_v51, %v5245_v29  ;;  %v1281_v12 = vrot.slane %v5245_v29, %v5280_v44 }
0x1610   :  { %v1274_v8 = vrot.slane %v5245_v29, %v5270_v38 }
0x1611   :  { %1146 = vbcast.lane.b32.xlu1 %v1144_v32, 256  ;;  %1139 = vbcast.lane.b32.xlu0 %v1137_v33, 256  ;;  %v1106_v55 = vrot.slane %v1098_v53, %v1105_v52 }
0x1613   :  { %v1107_v56 = vcombine.high %v1106_v55, %v1106_v55  ;;  %v1114_v58 = vrot.slane %v1106_v55, %v1105_v52 }
0x1615   :  { %1196 = vbcast.lane.b32.xlu1 %v1194_v36, 256  ;;  %1203 = vbcast.lane.b32.xlu0 %v1201_v37, 256  ;;  %v1121_v57 = vrot.slane %v1107_v56, %v1105_v52  ;;  %v1125_v60 = vrot.slane %v1114_v58, %v5253_v31 }
0x1617   :  { %v1129_v59 = vrot.slane %v1121_v57, %v5253_v31  ;;  %v1132_v62 = vadd.f32 %v1125_v60, %v994_v35 }
0x1619   :  { %1210 = vbcast.lane.b32.xlu1 %v1208_v39, 256  ;;  %1224 = vbcast.lane.b32.xlu0 %v1222_v40, 256  ;;  %v1133_v61 = vadd.f32 %v1129_v59, %v994_v35 }
0x161d   :  { %1217 = vbcast.lane.b32.xlu1 %v1215_v42, 256  ;;  %1238 = vbcast.lane.b32.xlu0 %v1236_v43, 256 }
0x1621   :  { %1231 = vbcast.lane.b32.xlu1 %v1229_v45, 256 }
0x1625   :  { %1245 = vbcast.lane.b32.xlu1 %v1243_v47, 256 }
0x1683   :  { %v1147_v63 = vpop.permute.xlu1 %1146  ;;  %v1140_v0 = vpop.permute.xlu0 %1139 }
0x1684   :  { %v5292_v11 = vadd.f32 %v1147_v63, %v1133_v61  ;;  %v5294_v16 = vadd.f32 %v1140_v0, %v1132_v62 }
0x1686   :  { %v1150_v2 = vsel %vm1089_vm5, %v5294_v16, -inf  ;;  %v1153_v5 = vsel %vm1089_vm5, %v5292_v11, -inf }
0x1687   :  { %1151 = vmax.xlane.f32.xlu0 %v1150_v2  ;;  %1154 = vmax.xlane.f32.xlu1 %v1153_v5  ;;  %v5304_v10 = vpop.permute.xlu1 %1196  ;;  %v5306_v13 = vpop.permute.xlu0 %1203 }
0x168b   :  { %v5308_v14 = vpop.permute.xlu1 %1210  ;;  %v5310_v50 = vpop.permute.xlu0 %1224 }
0x168f   :  { %v5312_v54 = vpop.permute.xlu1 %1217  ;;  %v5314_v1 = vpop.permute.xlu0 %1238 }
0x1693   :  { %v5316_v15 = vpop.permute.xlu1 %1231 }
0x1697   :  { %v5326_v3 = vpop.permute.xlu1 %1245 }
0x1698   :  { %1283 = vbcast.lane.b32.xlu1 %v1281_v12, 256  ;;  %7166 = vst [vmem:[#allocation6_spill] sm:$0xff] %v5326_v3 }
0x169d   :  { %1276 = vbcast.lane.b32.xlu0 %v1274_v8, 256 }
0x1710   :  { %v5318_v17 = vpop.xlane.xlu0 %1151  ;;  %v5340_v35 = vpop.xlane.xlu1 %1154 }
0x1711   :  { %v1255_v4 = vadd.f32 %v5304_v10, %v5318_v17  ;;  %v1256_v6 = vadd.f32 %v5306_v13, %v5318_v17  ;;  %v1258_v32 = vadd.f32 %v5312_v54, %v5318_v17  ;;  %v1257_v33 = vadd.f32 %v5308_v14, %v5318_v17 }
0x1712   :  { %v1260_v42 = vadd.f32 %v5316_v15, %v5318_v17  ;;  %v1259_v43 = vadd.f32 %v5310_v50, %v5318_v17  ;;  %v1262_v18 = vadd.f32 %v5326_v3, %v5318_v17  ;;  %v1261_v52 = vadd.f32 %v5314_v1, %v5318_v17 }
0x1713   :  { %v1264_v58 = vadd.f32 %v5306_v13, %v5340_v35  ;;  %v1263_v59 = vadd.f32 %v5304_v10, %v5340_v35  ;;  %v1266_v0 = vadd.f32 %v5312_v54, %v5340_v35  ;;  %v1265_v2 = vadd.f32 %v5308_v14, %v5340_v35 }
0x1714   :  { %v1277_v19 = vpop.permute.xlu0 %1276  ;;  %v1284_v51 = vpop.permute.xlu1 %1283  ;;  %vm1156_vm6 = vcmp.eq.f32.partialorder %v5294_v16, %v5318_v17  ;;  %vm1157_vm7 = vcmp.eq.f32.partialorder %v5292_v11, %v5340_v35 }
0x1715   :  { %v1290_v20 = vrot.slane %v1277_v19, %v5253_v31  ;;  %v1294_v21 = vrot.slane %v1277_v19, %v5260_v34  ;;  %v1302_v26 = vrot.slane %v1277_v19, %v5248_v30  ;;  %v1298_v28 = vrot.slane %v1277_v19, %v5237_v23 }
0x1716   :  { %v1310_v39 = vrot.slane %v1277_v19, %v5280_v44  ;;  %v1306_v40 = vrot.slane %v1277_v19, %v5270_v38  ;;  %v1318_v48 = vrot.slane %v1277_v19, %v5284_v46  ;;  %v1314_v49 = vrot.slane %v1277_v19, %v5275_v41 }
0x1717   :  { %v5328_v24 = vadd.f32 %v1290_v20, %v1255_v4  ;;  %v5330_v25 = vadd.f32 %v1294_v21, %v1256_v6  ;;  %v5342_v36 = vadd.f32 %v1302_v26, %v1258_v32  ;;  %v5344_v37 = vadd.f32 %v1298_v28, %v1257_v33 }
0x1718   :  { %v5354_v45 = vadd.f32 %v1310_v39, %v1260_v42  ;;  %v5356_v47 = vadd.f32 %v1306_v40, %v1259_v43  ;;  %v5366_v53 = vadd.f32 %v1318_v48, %v1262_v18  ;;  %v5368_v55 = vadd.f32 %v1314_v49, %v1261_v52 }
0x1719   :  { %1400 = vperm.xlu0 %4870, %v5328_v24   ;;  %1403 = vperm.xlu1 %4871, %v5330_v25   ;;  %v1326_v56 = vrot.slane %v1284_v51, %v5260_v34  ;;  %v1322_v57 = vrot.slane %v1284_v51, %v5253_v31  ;;  %v1334_v62 = vrot.slane %v1284_v51, %v5248_v30  ;;  %v1093_v40 = vand.u32 127, %v1000_v9 }
0x171a   :  { %v1330_v63 = vrot.slane %v1284_v51, %v5237_v23  ;;  %v1342_v12 = vrot.slane %v1284_v51, %v5280_v44  ;;  %v1338_v8 = vrot.slane %v1284_v51, %v5270_v38  ;;  %v1268_v19 = vadd.f32 %v5316_v15, %v5340_v35 }
0x171b   :  { %v5378_v60 = vadd.f32 %v1326_v56, %v1264_v58  ;;  %v5380_v61 = vadd.f32 %v1322_v57, %v1263_v59  ;;  %v5390_v5 = vadd.f32 %v1334_v62, %v1266_v0  ;;  %v1267_v4 = vadd.f32 %v5310_v50, %v5340_v35 }
0x171c   :  { %v5392_v7 = vadd.f32 %v1330_v63, %v1265_v2  ;;  %v5402_v20 = vadd.f32 %v1342_v12, %v1268_v19  ;;  %v1350_v21 = vrot.slane %v1284_v51, %v5284_v46  ;;  %v1346_v26 = vrot.slane %v1284_v51, %v5275_v41 }
0x171d   :  { %1409 = vperm.xlu0 %4870, %v5342_v36   ;;  %1406 = vperm.xlu1 %4871, %v5344_v37   ;;  %v5404_v6 = vadd.f32 %v1338_v8, %v1267_v4  ;;  %v1270_v28 = vadd.f32 %v5326_v3, %v5340_v35  ;;  %v1269_v32 = vadd.f32 %v5314_v1, %v5340_v35  ;;  %v1158_v48 = vsel %vm1156_vm6, %v1093_v40, 8 }
0x171e   :  { %v1832_v42 = vrot.slane %v5245_v29, %v5275_v41  ;;  %v1839_v43 = vrot.slane %v5245_v29, %v5284_v46  ;;  %v5428_v49 = vsel %vm1089_vm5, %v1158_v48, 2147483647  ;;  %v1159_v9 = vsel %vm1157_vm7, %v1093_v40, 8 }
0x171f   :  { %v5414_v33 = vadd.f32 %v1350_v21, %v1270_v28  ;;  %v5416_v39 = vadd.f32 %v1346_v26, %v1269_v32  ;;  %v1162_v51 = vshra.s32 %v5428_v49, 16  ;;  %v5437_v29 = vsel %vm1089_vm5, %v1159_v9, 2147483647 }
0x1720   :  { %v1177_v52 = vshra.s32 %v5437_v29, 16  ;;  %v5444_v17 = vsub.s32 %v1093_v40, %v5234_v22 }
0x1721   :  { %1415 = vperm.xlu0 %4870, %v5354_v45   ;;  %1412 = vperm.xlu1 %4871, %v5356_v47   ;;  %v5433_v18 = vcvt.s32.f32 %v1162_v51 }
0x1722   :  { %v5440_v16 = vcvt.s32.f32 %v1177_v52 }
0x1725   :  { %1421 = vperm.xlu0 %4870, %v5366_v53   ;;  %1418 = vperm.xlu1 %4871, %v5368_v55  }
0x1729   :  { %1427 = vperm.xlu0 %4870, %v5378_v60   ;;  %1424 = vperm.xlu1 %4871, %v5380_v61  }
0x172d   :  { %1433 = vperm.xlu0 %4870, %v5390_v5   ;;  %1430 = vperm.xlu1 %4871, %v5392_v7  }
0x1731   :  { %1439 = vperm.xlu0 %4870, %v5402_v20   ;;  %1436 = vperm.xlu1 %4871, %v5404_v6  }
0x1735   :  { %1445 = vperm.xlu0 %4870, %v5414_v33   ;;  %1442 = vperm.xlu1 %4871, %v5416_v39  }
0x1739   :  { %1639 = vbcast.lane.b32.xlu0 %v1093_v40, 256  ;;  %1834 = vbcast.lane.b32.xlu1 %v1832_v42, 256 }
0x173d   :  { %1841 = vbcast.lane.b32.xlu1 %v1839_v43, 256 }
0x1758   :  { %1165 = vmin.xlane.f32.xlu0 %v5433_v18 }
0x1761   :  { %1180 = vmin.xlane.f32.xlu1 %v5440_v16 }
0x1794   :  { %v1401_v56 = vpop.permute.xlu0 %1400  ;;  %v1404_v57 = vpop.permute.xlu1 %1403 }
0x1795   :  { %v1450_v11 = vrot.slane %v1401_v56, %v5444_v17  ;;  %v1454_v35 = vrot.slane %v1404_v57, %v5444_v17 }
0x1797   :  { %v1512_v63 = vsel %vm1511_vm8, %v1454_v35, %v1450_v11 }
0x1798   :  { %v1410_v58 = vpop.permute.xlu0 %1409  ;;  %v1407_v59 = vpop.permute.xlu1 %1406 }
0x1799   :  { %v1458_v62 = vrot.slane %v1407_v59, %v5444_v17  ;;  %v1462_v0 = vrot.slane %v1410_v58, %v5444_v17 }
0x179b   :  { %v1514_v2 = vsel %vm1513_vm9, %v1458_v62, %v1512_v63 }
0x179c   :  { %v1416_v22 = vpop.permute.xlu0 %1415  ;;  %v1413_v12 = vpop.permute.xlu1 %1412  ;;  %v1516_v4 = vsel %vm1515_vm10, %v1462_v0, %v1514_v2 }
0x179d   :  { %v1466_v8 = vrot.slane %v1413_v12, %v5444_v17  ;;  %v1470_v19 = vrot.slane %v1416_v22, %v5444_v17 }
0x179f   :  { %v1518_v21 = vsel %vm1517_vm11, %v1466_v8, %v1516_v4 }
0x17a0   :  { %v1422_v26 = vpop.permute.xlu0 %1421  ;;  %v1419_v28 = vpop.permute.xlu1 %1418  ;;  %v1520_v42 = vsel %vm1519_vm12, %v1470_v19, %v1518_v21 }
0x17a1   :  { %v1478_v32 = vrot.slane %v1422_v26, %v5444_v17  ;;  %v1474_v40 = vrot.slane %v1419_v28, %v5444_v17 }
0x17a3   :  { %v1522_v43 = vsel %vm1521_vm13, %v1474_v40, %v1520_v42 }
0x17a4   :  { %v1428_v48 = vpop.permute.xlu0 %1427  ;;  %v1425_v51 = vpop.permute.xlu1 %1424  ;;  %v1524_v9 = vsel %vm1523_vm14, %v1478_v32, %v1522_v43 }
0x17a5   :  { %v1534_v52 = vsel %vm1089_vm5, %v1524_v9, -inf  ;;  %v1486_v56 = vrot.slane %v1428_v48, %v5444_v17  ;;  %v1482_v57 = vrot.slane %v1425_v51, %v5444_v17  ;;  %v1161_v51 = vand.u32 65535, %v5428_v49 }
0x17a6   :  { %1535 = vmax.xlane.f32.xlu1 %v1534_v52 }
0x17a7   :  { %v1525_v59 = vsel %vm1511_vm8, %v1486_v56, %v1482_v57  ;;  %v1163_v56 = vcvt.s32.f32 %v1161_v51 }
0x17a8   :  { %v1434_v11 = vpop.permute.xlu0 %1433  ;;  %v1431_v35 = vpop.permute.xlu1 %1430 }
0x17a9   :  { %v1490_v58 = vrot.slane %v1431_v35, %v5444_v17  ;;  %v1494_v62 = vrot.slane %v1434_v11, %v5444_v17  ;;  %v1176_v35 = vand.u32 65535, %v5437_v29 }
0x17ab   :  { %v1526_v63 = vsel %vm1513_vm9, %v1490_v58, %v1525_v59  ;;  %v1178_v59 = vcvt.s32.f32 %v1176_v35 }
0x17ac   :  { %v1440_v0 = vpop.permute.xlu0 %1439  ;;  %v1437_v2 = vpop.permute.xlu1 %1436  ;;  %v1527_v8 = vsel %vm1515_vm10, %v1494_v62, %v1526_v63 }
0x17ad   :  { %v1498_v22 = vrot.slane %v1437_v2, %v5444_v17  ;;  %v1502_v12 = vrot.slane %v1440_v0, %v5444_v17 }
0x17af   :  { %v1528_v19 = vsel %vm1517_vm11, %v1498_v22, %v1527_v8 }
0x17b0   :  { %v1446_v4 = vpop.permute.xlu0 %1445  ;;  %v1443_v21 = vpop.permute.xlu1 %1442  ;;  %v1529_v32 = vsel %vm1519_vm12, %v1502_v12, %v1528_v19 }
0x17b1   :  { %v1510_v26 = vrot.slane %v1446_v4, %v5444_v17  ;;  %v1506_v28 = vrot.slane %v1443_v21, %v5444_v17 }
0x17b3   :  { %v1530_v40 = vsel %vm1521_vm13, %v1506_v28, %v1529_v32 }
0x17b4   :  { %v1531_v42 = vsel %vm1523_vm14, %v1510_v26, %v1530_v40  ;;  %v5478_v48 = vpop.permute.xlu0 %1639  ;;  %v5481_v9 = vpop.permute.xlu1 %1834 }
0x17b5   :  { %v1537_v43 = vsel %vm1089_vm5, %v1531_v42, -inf }
0x17b6   :  { %1538 = vmax.xlane.f32.xlu0 %v1537_v43 }
0x17b8   :  { %v5487_v11 = vpop.permute.xlu1 %1841 }
0x17e1   :  { %v5483_v52 = vpop.xlane.xlu0 %1165 }
0x17e2   :  { %7167 = vst [vmem:[#allocation7_spill] sm:$0xff] %v5483_v52  ;;  %vm1167_vm15 = vcmp.eq.f32.partialorder %v5433_v18, %v5483_v52 }
0x17e3   :  { %v1168_v57 = vsel %vm1167_vm15, %v1163_v56, inf }
0x17e4   :  { %1169 = vmin.xlane.f32.xlu0 %v1168_v57  ;;  %v1848_v57 = vrot.slane %v5481_v9, %v5253_v31 }
0x17ea   :  { %v5490_v58 = vpop.xlane.xlu1 %1180 }
0x17eb   :  { %7168 = vst [vmem:[#allocation8_spill] sm:$0xff] %v5490_v58  ;;  %vm1182_vm0 = vcmp.eq.f32.partialorder %v5440_v16, %v5490_v58 }
0x17ec   :  { %v1183_v49 = vsel %vm1182_vm0, %v1178_v59, inf }
0x17ed   :  { %1184 = vmin.xlane.f32.xlu0 %v1183_v49  ;;  %v1852_v49 = vrot.slane %v5481_v9, %v5260_v34 }
0x182f   :  { %v5494_v62 = vpop.xlane.xlu1 %1535 }
0x1830   :  { %v1553_v63 = vrot.slane %v5494_v62, %v5237_v23  ;;  %v1545_v18 = vrot.slane %v5494_v62, %v5253_v31  ;;  %v1561_v0 = vrot.slane %v5494_v62, %v5270_v38  ;;  %v1549_v29 = vrot.slane %v5494_v62, %v5260_v34 }
0x1831   :  { %v1569_v22 = vrot.slane %v5494_v62, %v5275_v41  ;;  %v1557_v12 = vrot.slane %v5494_v62, %v5248_v30  ;;  %v1565_v8 = vrot.slane %v5494_v62, %v5280_v44  ;;  %v1573_v19 = vrot.slane %v5494_v62, %v5284_v46 }
0x1832   :  { %vm1624_vm1 = vcmp.eq.f32.partialorder %v5344_v37, %v1553_v63  ;;  %vm1622_vm6 = vcmp.eq.f32.partialorder %v5328_v24, %v1545_v18  ;;  %vm1626_vm7 = vcmp.eq.f32.partialorder %v5356_v47, %v1561_v0  ;;  %vm1623_vm15 = vcmp.eq.f32.partialorder %v5330_v25, %v1549_v29 }
0x1833   :  { %v1643_v16 = vsel %vm1624_vm1, %v5478_v48, 8  ;;  %v1641_v2 = vsel %vm1622_vm6, %v5478_v48, 8  ;;  %v1645_v37 = vsel %vm1626_vm7, %v5478_v48, 8  ;;  %v1642_v24 = vsel %vm1623_vm15, %v5478_v48, 8 }
0x1834   :  { %1664 = vperm.xlu0 %4870, %v1643_v16   ;;  %1658 = vperm.xlu1 %4871, %v1641_v2   ;;  %vm1628_vm0 = vcmp.eq.f32.partialorder %v5368_v55, %v1569_v22  ;;  %vm1625_vm1 = vcmp.eq.f32.partialorder %v5342_v36, %v1557_v12  ;;  %vm1627_vm6 = vcmp.eq.f32.partialorder %v5354_v45, %v1565_v8 }
0x1835   :  { %v1647_v47 = vsel %vm1628_vm0, %v5478_v48, 8  ;;  %v1644_v25 = vsel %vm1625_vm1, %v5478_v48, 8  ;;  %v1646_v55 = vsel %vm1627_vm6, %v5478_v48, 8  ;;  %vm1629_vm7 = vcmp.eq.f32.partialorder %v5366_v53, %v1573_v19 }
0x1836   :  { %v1648_v28 = vsel %vm1629_vm7, %v5478_v48, 8  ;;  %v1815_v29 = vadd.f32 %v5494_v62, %v5308_v14  ;;  %v1884_v16 = vrot.slane %v5487_v11, %v5260_v34  ;;  %v1856_v2 = vrot.slane %v5481_v9, %v5237_v23 }
0x1837   :  { %v1888_v8 = vrot.slane %v5487_v11, %v5237_v23 }
0x1838   :  { %1670 = vperm.xlu0 %4870, %v1645_v37   ;;  %1661 = vperm.xlu1 %4871, %v1642_v24   ;;  %v5593_v12 = vadd.f32 %v1856_v2, %v1815_v29  ;;  %v1816_v24 = vadd.f32 %v5494_v62, %v5312_v54 }
0x183c   :  { %1676 = vperm.xlu0 %4870, %v1647_v47   ;;  %1667 = vperm.xlu1 %4871, %v1644_v25   ;;  %v1860_v47 = vrot.slane %v5481_v9, %v5248_v30 }
0x183e   :  { %v5607_v19 = vadd.f32 %v1860_v47, %v1816_v24 }
0x183f   :  { %v5525_v4 = vpop.xlane.xlu0 %1538 }
0x1840   :  { %1673 = vperm.xlu1 %4871, %v1646_v55   ;;  %v1577_v36 = vrot.slane %v5525_v4, %v5253_v31  ;;  %v1585_v21 = vrot.slane %v5525_v4, %v5237_v23  ;;  %v1581_v26 = vrot.slane %v5525_v4, %v5260_v34  ;;  %v1593_v32 = vrot.slane %v5525_v4, %v5270_v38 }
0x1841   :  { %v1589_v53 = vrot.slane %v5525_v4, %v5248_v30  ;;  %v1601_v42 = vrot.slane %v5525_v4, %v5275_v41  ;;  %v1605_v51 = vrot.slane %v5525_v4, %v5284_v46  ;;  %v1821_v35 = vadd.f32 %v5525_v4, %v5304_v10 }
0x1842   :  { %vm1630_vm15 = vcmp.eq.f32.partialorder %v5380_v61, %v1577_v36  ;;  %vm1632_vm0 = vcmp.eq.f32.partialorder %v5392_v7, %v1585_v21  ;;  %vm1631_vm1 = vcmp.eq.f32.partialorder %v5378_v60, %v1581_v26  ;;  %vm1634_vm6 = vcmp.eq.f32.partialorder %v5404_v6, %v1593_v32 }
0x1843   :  { %v1649_v45 = vsel %vm1630_vm15, %v5478_v48, 8  ;;  %v1651_v40 = vsel %vm1632_vm0, %v5478_v48, 8  ;;  %v1650_v61 = vsel %vm1631_vm1, %v5478_v48, 8  ;;  %vm1633_vm7 = vcmp.eq.f32.partialorder %v5390_v5, %v1589_v53 }
0x1844   :  { %1682 = vperm.xlu0 %4870, %v1649_v45   ;;  %1679 = vperm.xlu1 %4871, %v1648_v28   ;;  %v1597_v7 = vrot.slane %v5525_v4, %v5280_v44  ;;  %v1653_v60 = vsel %vm1634_vm6, %v5478_v48, 8  ;;  %v1652_v43 = vsel %vm1633_vm7, %v5478_v48, 8  ;;  %vm1636_vm15 = vcmp.eq.f32.partialorder %v5416_v39, %v1601_v42 }
0x1845   :  { %v1813_v6 = vadd.f32 %v5494_v62, %v5304_v10  ;;  %v1655_v5 = vsel %vm1636_vm15, %v5478_v48, 8  ;;  %vm1637_vm1 = vcmp.eq.f32.partialorder %v5414_v33, %v1605_v51  ;;  %v1880_v33 = vrot.slane %v5487_v11, %v5253_v31 }
0x1846   :  { %vm1635_vm0 = vcmp.eq.f32.partialorder %v5402_v20, %v1597_v7  ;;  %v1814_v20 = vadd.f32 %v5494_v62, %v5306_v13  ;;  %v1656_v59 = vsel %vm1637_vm1, %v5478_v48, 8  ;;  %v1822_v0 = vadd.f32 %v5525_v4, %v5306_v13 }
0x1847   :  { %v1654_v56 = vsel %vm1635_vm0, %v5478_v48, 8  ;;  %v5565_v39 = vadd.f32 %v1848_v57, %v1813_v6  ;;  %v5579_v18 = vadd.f32 %v1880_v33, %v1821_v35  ;;  %v1823_v37 = vadd.f32 %v5525_v4, %v5308_v14 }
0x1848   :  { %1688 = vperm.xlu0 %4870, %v1651_v40   ;;  %1685 = vperm.xlu1 %4871, %v1650_v61   ;;  %v5577_v63 = vadd.f32 %v1852_v49, %v1814_v20  ;;  %v5591_v22 = vadd.f32 %v1884_v16, %v1822_v0  ;;  %v1824_v55 = vadd.f32 %v5525_v4, %v5312_v54 }
0x1849   :  { %v5605_v25 = vadd.f32 %v1888_v8, %v1823_v37  ;;  %v1817_v36 = vadd.f32 %v5494_v62, %v5310_v50  ;;  %v1892_v21 = vrot.slane %v5487_v11, %v5248_v30  ;;  %v1864_v26 = vrot.slane %v5481_v9, %v5270_v38 }
0x184a   :  { %v1825_v32 = vadd.f32 %v5525_v4, %v5310_v50  ;;  %v1818_v53 = vadd.f32 %v5494_v62, %v5316_v15  ;;  %v1896_v40 = vrot.slane %v5487_v11, %v5270_v38  ;;  %v1868_v61 = vrot.slane %v5481_v9, %v5280_v44 }
0x184b   :  { %v5619_v45 = vadd.f32 %v1892_v21, %v1824_v55  ;;  %v5621_v28 = vadd.f32 %v1864_v26, %v1817_v36  ;;  %v1900_v51 = vrot.slane %v5487_v11, %v5280_v44  ;;  %v1872_v6 = vrot.slane %v5481_v9, %v5275_v41 }
0x184c   :  { %1694 = vperm.xlu0 %4870, %v1653_v60   ;;  %1691 = vperm.xlu1 %4871, %v1652_v43   ;;  %v5633_v42 = vadd.f32 %v1896_v40, %v1825_v32  ;;  %v5635_v7 = vadd.f32 %v1868_v61, %v1818_v53  ;;  %v1826_v60 = vadd.f32 %v5525_v4, %v5316_v15 }
0x184d   :  { %v1819_v43 = vadd.f32 %v5494_v62, %v5314_v1  ;;  %v1827_v57 = vadd.f32 %v5525_v4, %v5314_v1  ;;  %v1820_v20 = vadd.f32 %v5494_v62, %v5326_v3  ;;  %v1904_v35 = vrot.slane %v5487_v11, %v5275_v41 }
0x184e   :  { %v1828_v0 = vadd.f32 %v5525_v4, %v5326_v3  ;;  %v1908_v62 = vrot.slane %v5487_v11, %v5284_v46  ;;  %v2387_v16 = vrot.slane %v5243_v27, %v5260_v34 }
0x184f   :  { %v5661_v49 = vadd.f32 %v1904_v35, %v1827_v57 }
0x1850   :  { %1700 = vperm.xlu0 %4870, %v1655_v5   ;;  %1697 = vperm.xlu1 %4871, %v1654_v56   ;;  %v5647_v5 = vadd.f32 %v1900_v51, %v1826_v60  ;;  %v5649_v56 = vadd.f32 %v1872_v6, %v1819_v43  ;;  %v5671_v29 = vadd.f32 %v1908_v62, %v1828_v0 }
0x1851   :  { %7170 = vst [vmem:[#allocation10_spill] sm:$0xff] %v5661_v49 }
0x1852   :  { %7169 = vst [vmem:[#allocation9_spill] sm:$0xff] %v5647_v5  ;;  %7171 = vst [vmem:[#allocation11_spill] sm:$0xff] %v5671_v29 }
0x1854   :  { %1703 = vperm.xlu1 %4871, %v1656_v59   ;;  %1958 = vperm.xlu0 %4870, %v5565_v39   ;;  %v1876_v59 = vrot.slane %v5481_v9, %v5284_v46  ;;  %v2380_v9 = vrot.slane %v5243_v27, %v5253_v31 }
0x1856   :  { %v5663_v33 = vadd.f32 %v1876_v59, %v1820_v20 }
0x1858   :  { %1961 = vperm.xlu1 %4871, %v5577_v63   ;;  %1982 = vperm.xlu0 %4870, %v5579_v18  }
0x185c   :  { %1985 = vperm.xlu1 %4871, %v5591_v22   ;;  %1964 = vperm.xlu0 %4870, %v5593_v12  }
0x1860   :  { %1988 = vperm.xlu1 %4871, %v5605_v25   ;;  %1967 = vperm.xlu0 %4870, %v5607_v19  }
0x1864   :  { %1991 = vperm.xlu1 %4871, %v5619_v45   ;;  %1970 = vperm.xlu0 %4870, %v5621_v28  }
0x1868   :  { %1994 = vperm.xlu1 %4871, %v5633_v42   ;;  %1973 = vperm.xlu0 %4870, %v5635_v7  }
0x186c   :  { %1997 = vperm.xlu1 %4871, %v5647_v5   ;;  %1976 = vperm.xlu0 %4870, %v5649_v56  }
0x186d   :  { %v5678_v4 = vpop.xlane.xlu0 %1169 }
0x186e   :  { %7172 = vst [vmem:[#allocation12_spill] sm:$0xff] %v5678_v4 }
0x1870   :  { %2000 = vperm.xlu1 %4871, %v5661_v49   ;;  %1979 = vperm.xlu0 %4870, %v5663_v33  }
0x1874   :  { %2003 = vperm.xlu1 %4871, %v5671_v29   ;;  %2389 = vbcast.lane.b32.xlu0 %v2387_v16, 256 }
0x1876   :  { %v5680_v2 = vpop.xlane.xlu0 %1184 }
0x1877   :  { %7173 = vst [vmem:[#allocation13_spill] sm:$0xff] %v5680_v2 }
0x1878   :  { %2382 = vbcast.lane.b32.xlu1 %v2380_v9, 256 }
0x18af   :  { %v1665_v37 = vpop.permute.xlu0 %1664  ;;  %v1659_v24 = vpop.permute.xlu1 %1658 }
0x18b0   :  { %v1708_v62 = vrot.slane %v1659_v24, %v5444_v17  ;;  %v1716_v58 = vrot.slane %v1665_v37, %v5444_v17 }
0x18b3   :  { %v1662_v8 = vpop.permute.xlu1 %1661  ;;  %v1671_v11 = vpop.permute.xlu0 %1670 }
0x18b4   :  { %v1712_v0 = vrot.slane %v1662_v8, %v5444_v17 }
0x18b6   :  { %v1769_v2 = vsel %vm1511_vm8, %v1712_v0, %v1708_v62 }
0x18b7   :  { %v1668_v47 = vpop.permute.xlu1 %1667  ;;  %v1677_v55 = vpop.permute.xlu0 %1676  ;;  %v1770_v49 = vsel %vm1513_vm9, %v1716_v58, %v1769_v2 }
0x18b8   :  { %v1720_v52 = vrot.slane %v1668_v47, %v5444_v17  ;;  %v1724_v47 = vrot.slane %v1671_v11, %v5444_v17  ;;  %v1732_v11 = vrot.slane %v1677_v55, %v5444_v17 }
0x18ba   :  { %v1771_v3 = vsel %vm1515_vm10, %v1720_v52, %v1770_v49 }
0x18bb   :  { %v1674_v36 = vpop.permute.xlu1 %1673 }
0x18bc   :  { %v1728_v0 = vrot.slane %v1674_v36, %v5444_v17 }
0x18bf   :  { %v1683_v21 = vpop.permute.xlu0 %1682  ;;  %v1680_v26 = vpop.permute.xlu1 %1679 }
0x18c0   :  { %v1740_v29 = vrot.slane %v1683_v21, %v5444_v17  ;;  %v1736_v52 = vrot.slane %v1680_v26, %v5444_v17 }
0x18c3   :  { %v1689_v32 = vpop.permute.xlu0 %1688  ;;  %v1686_v53 = vpop.permute.xlu1 %1685 }
0x18c4   :  { %v1744_v16 = vrot.slane %v1686_v53, %v5444_v17  ;;  %v1748_v27 = vrot.slane %v1689_v32, %v5444_v17  ;;  %v1772_v32 = vsel %vm1517_vm11, %v1724_v47, %v1771_v3 }
0x18c5   :  { %v1773_v62 = vsel %vm1519_vm12, %v1728_v0, %v1772_v32 }
0x18c6   :  { %v1776_v8 = vsel %vm1511_vm8, %v1744_v16, %v1740_v29  ;;  %v1774_v16 = vsel %vm1521_vm13, %v1732_v11, %v1773_v62 }
0x18c7   :  { %v1695_v40 = vpop.permute.xlu0 %1694  ;;  %v1692_v61 = vpop.permute.xlu1 %1691  ;;  %v1777_v21 = vsel %vm1513_vm9, %v1748_v27, %v1776_v8 }
0x18c8   :  { %v1752_v24 = vrot.slane %v1692_v61, %v5444_v17  ;;  %v1756_v37 = vrot.slane %v1695_v40, %v5444_v17 }
0x18ca   :  { %v1778_v58 = vsel %vm1515_vm10, %v1752_v24, %v1777_v21 }
0x18cb   :  { %v1701_v60 = vpop.permute.xlu0 %1700  ;;  %v1698_v43 = vpop.permute.xlu1 %1697  ;;  %v1779_v3 = vsel %vm1517_vm11, %v1756_v37, %v1778_v58 }
0x18cc   :  { %v1760_v29 = vrot.slane %v1698_v43, %v5444_v17  ;;  %v1764_v27 = vrot.slane %v1701_v60, %v5444_v17 }
0x18ce   :  { %v1780_v8 = vsel %vm1519_vm12, %v1760_v29, %v1779_v3 }
0x18cf   :  { %v1704_v51 = vpop.permute.xlu1 %1703  ;;  %v1959_v6 = vpop.permute.xlu0 %1958 }
0x18d0   :  { %v2008_v40 = vrot.slane %v1959_v6, %v5444_v17  ;;  %v1768_v26 = vrot.slane %v1704_v51, %v5444_v17  ;;  %v1781_v51 = vsel %vm1521_vm13, %v1764_v27, %v1780_v8 }
0x18d2   :  { %v1782_v58 = vsel %vm1523_vm14, %v1768_v26, %v1781_v51 }
0x18d3   :  { %v1962_v57 = vpop.permute.xlu1 %1961  ;;  %v1983_v20 = vpop.permute.xlu0 %1982  ;;  %v5744_v26 = vsel %vm1089_vm5, %v1782_v58, 2147483647 }
0x18d4   :  { %v2012_v49 = vrot.slane %v1962_v57, %v5444_v17 }
0x18d6   :  { %v2069_v60 = vsel %vm1511_vm8, %v2012_v49, %v2008_v40 }
0x18d7   :  { %v1986_v35 = vpop.permute.xlu1 %1985  ;;  %v1965_v59 = vpop.permute.xlu0 %1964 }
0x18d8   :  { %v2016_v36 = vrot.slane %v1965_v59, %v5444_v17  ;;  %v1775_v59 = vsel %vm1523_vm14, %v1736_v52, %v1774_v16  ;;  %v2044_v0 = vrot.slane %v1986_v35, %v5444_v17 }
0x18db   :  { %v1989_v9 = vpop.permute.xlu1 %1988  ;;  %v1968_v4 = vpop.permute.xlu0 %1967 }
0x18dc   :  { %v2020_v43 = vrot.slane %v1968_v4, %v5444_v17  ;;  %v2070_v4 = vsel %vm1513_vm9, %v2016_v36, %v2069_v60  ;;  %v2048_v47 = vrot.slane %v1989_v9, %v5444_v17  ;;  %v5729_v9 = vsel %vm1089_vm5, %v1775_v59, 2147483647 }
0x18dd   :  { %v1785_v40 = vshra.s32 %v5729_v9, 16 }
0x18de   :  { %v2071_v21 = vsel %vm1515_vm10, %v2020_v43, %v2070_v4 }
0x18df   :  { %v1992_v5 = vpop.permute.xlu1 %1991  ;;  %v1971_v53 = vpop.permute.xlu0 %1970  ;;  %v5750_v60 = vcvt.s32.f32 %v1785_v40 }
0x18e0   :  { %v2024_v57 = vrot.slane %v1971_v53, %v5444_v17  ;;  %v2040_v53 = vrot.slane %v1983_v20, %v5444_v17  ;;  %v2052_v32 = vrot.slane %v1992_v5, %v5444_v17 }
0x18e2   :  { %v2072_v35 = vsel %vm1517_vm11, %v2024_v57, %v2071_v21  ;;  %v2076_v52 = vsel %vm1511_vm8, %v2044_v0, %v2040_v53  ;;  %v1800_v0 = vshra.s32 %v5744_v26, 16 }
0x18e3   :  { %v1995_v2 = vpop.permute.xlu1 %1994  ;;  %v1974_v61 = vpop.permute.xlu0 %1973  ;;  %v2077_v5 = vsel %vm1513_vm9, %v2048_v47, %v2076_v52 }
0x18e4   :  { %v2028_v6 = vrot.slane %v1974_v61, %v5444_v17  ;;  %v2056_v29 = vrot.slane %v1995_v2, %v5444_v17  ;;  %v2078_v2 = vsel %vm1515_vm10, %v2052_v32, %v2077_v5  ;;  %v5755_v4 = vcvt.s32.f32 %v1800_v0 }
0x18e6   :  { %v2073_v49 = vsel %vm1519_vm12, %v2028_v6, %v2072_v35  ;;  %v2079_v43 = vsel %vm1517_vm11, %v2056_v29, %v2078_v2 }
0x18e7   :  { %v1998_v24 = vpop.permute.xlu1 %1997  ;;  %v1977_v55 = vpop.permute.xlu0 %1976 }
0x18e8   :  { %v2032_v37 = vrot.slane %v1977_v55, %v5444_v17  ;;  %v2060_v20 = vrot.slane %v1998_v24, %v5444_v17 }
0x18ea   :  { %v2074_v27 = vsel %vm1521_vm13, %v2032_v37, %v2073_v49  ;;  %v2080_v57 = vsel %vm1519_vm12, %v2060_v20, %v2079_v43 }
0x18eb   :  { %v2001_v61 = vpop.permute.xlu1 %2000  ;;  %v1980_v62 = vpop.permute.xlu0 %1979 }
0x18ec   :  { %v2036_v11 = vrot.slane %v1980_v62, %v5444_v17  ;;  %v2064_v36 = vrot.slane %v2001_v61, %v5444_v17 }
0x18ee   :  { %v2075_v3 = vsel %vm1523_vm14, %v2036_v11, %v2074_v27  ;;  %v2081_v55 = vsel %vm1521_vm13, %v2064_v36, %v2080_v57 }
0x18ef   :  { %v2004_v16 = vpop.permute.xlu1 %2003  ;;  %v2085_v8 = vsel %vm1089_vm5, %v2075_v3, -inf  ;;  %v5758_v47 = vpop.permute.xlu0 %2389 }
0x18f0   :  { %v2068_v24 = vrot.slane %v2004_v16, %v5444_v17  ;;  %2086 = vmax.xlane.f32.xlu0 %v2085_v8  ;;  %v2432_v0 = vrot.slane %v5758_v47, %v5260_v34 }
0x18f2   :  { %v2082_v59 = vsel %vm1523_vm14, %v2068_v24, %v2081_v55 }
0x18f3   :  { %v2088_v6 = vsel %vm1089_vm5, %v2082_v59, -inf  ;;  %v5780_v62 = vpop.permute.xlu1 %2382 }
0x18f4   :  { %2089 = vmax.xlane.f32.xlu1 %v2088_v6  ;;  %1788 = vmin.xlane.f32.xlu0 %v5750_v60  ;;  %v2396_v40 = vrot.slane %v5780_v62, %v5253_v31  ;;  %v2400_v8 = vrot.slane %v5780_v62, %v5260_v34  ;;  %v2404_v6 = vrot.slane %v5780_v62, %v5237_v23 }
0x18f8   :  { %1803 = vmin.xlane.f32.xlu0 %v5755_v4 }
0x1979   :  { %v5760_v37 = vpop.xlane.xlu0 %2086 }
0x197a   :  { %v2100_v51 = vrot.slane %v5760_v37, %v5260_v34  ;;  %v2096_v53 = vrot.slane %v5760_v37, %v5253_v31  ;;  %v2108_v21 = vrot.slane %v5760_v37, %v5248_v30  ;;  %v2104_v32 = vrot.slane %v5760_v37, %v5237_v23 }
0x197b   :  { %v2116_v29 = vrot.slane %v5760_v37, %v5280_v44  ;;  %v2112_v61 = vrot.slane %v5760_v37, %v5270_v38  ;;  %v2124_v52 = vrot.slane %v5760_v37, %v5284_v46  ;;  %v2363_v59 = vadd.f32 %v5760_v37, %v5308_v14 }
0x197c   :  { %vm2174_vm6 = vcmp.eq.f32.partialorder %v5577_v63, %v2100_v51  ;;  %vm2173_vm7 = vcmp.eq.f32.partialorder %v5565_v39, %v2096_v53  ;;  %vm2176_vm15 = vcmp.eq.f32.partialorder %v5607_v19, %v2108_v21  ;;  %vm2175_vm0 = vcmp.eq.f32.partialorder %v5593_v12, %v2104_v32 }
0x197d   :  { %v2190_v58 = vsel %vm2174_vm6, %v5478_v48, 8  ;;  %v2189_v35 = vsel %vm2173_vm7, %v5478_v48, 8  ;;  %v2192_v39 = vsel %vm2176_vm15, %v5478_v48, 8  ;;  %v2191_v63 = vsel %vm2175_vm0, %v5478_v48, 8  ;;  %v5790_v19 = vpop.xlane.xlu1 %2089 }
0x197e   :  { %2209 = vperm.xlu1 %4871, %v2190_v58   ;;  %2206 = vperm.xlu0 %4870, %v2189_v35   ;;  %vm2178_vm1 = vcmp.eq.f32.partialorder %v5635_v7, %v2116_v29  ;;  %vm2177_vm6 = vcmp.eq.f32.partialorder %v5621_v28, %v2112_v61  ;;  %v2120_v12 = vrot.slane %v5760_v37, %v5275_v41 }
0x197f   :  { %v2194_v49 = vsel %vm2178_vm1, %v5478_v48, 8  ;;  %v2193_v20 = vsel %vm2177_vm6, %v5478_v48, 8  ;;  %vm2180_vm7 = vcmp.eq.f32.partialorder %v5663_v33, %v2124_v52  ;;  %v2132_v7 = vrot.slane %v5790_v19, %v5260_v34 }
0x1980   :  { %vm2179_vm15 = vcmp.eq.f32.partialorder %v5649_v56, %v2120_v12  ;;  %v2128_v28 = vrot.slane %v5790_v19, %v5253_v31  ;;  %v2196_v11 = vsel %vm2180_vm7, %v5478_v48, 8  ;;  %v2140_v36 = vrot.slane %v5790_v19, %v5248_v30 }
0x1981   :  { %v2195_v5 = vsel %vm2179_vm15, %v5478_v48, 8  ;;  %vm2182_vm0 = vcmp.eq.f32.partialorder %v5591_v22, %v2132_v7  ;;  %v2136_v56 = vrot.slane %v5790_v19, %v5237_v23  ;;  %v2144_v2 = vrot.slane %v5790_v19, %v5270_v38 }
0x1982   :  { %2215 = vperm.xlu1 %4871, %v2192_v39   ;;  %2212 = vperm.xlu0 %4870, %v2191_v63   ;;  %vm2181_vm1 = vcmp.eq.f32.partialorder %v5579_v18, %v2128_v28  ;;  %v2198_v33 = vsel %vm2182_vm0, %v5478_v48, 8  ;;  %vm2184_vm6 = vcmp.eq.f32.partialorder %v5619_v45, %v2140_v36  ;;  %v2361_v22 = vadd.f32 %v5760_v37, %v5304_v10 }
0x1983   :  { %v2197_v27 = vsel %vm2181_vm1, %v5478_v48, 8  ;;  %vm2183_vm7 = vcmp.eq.f32.partialorder %v5605_v25, %v2136_v56  ;;  %v2200_v18 = vsel %vm2184_vm6, %v5478_v48, 8  ;;  %vm2185_vm15 = vcmp.eq.f32.partialorder %v5633_v42, %v2144_v2 }
0x1984   :  { %v2199_v3 = vsel %vm2183_vm7, %v5478_v48, 8  ;;  %v5821_v45 = vadd.f32 %v2396_v40, %v2361_v22  ;;  %v2362_v25 = vadd.f32 %v5760_v37, %v5306_v13  ;;  %v2369_v43 = vadd.f32 %v5790_v19, %v5304_v10 }
0x1985   :  { %v2201_v16 = vsel %vm2185_vm15, %v5478_v48, 8  ;;  %v2428_v42 = vrot.slane %v5758_v47, %v5253_v31  ;;  %v2370_v55 = vadd.f32 %v5790_v19, %v5306_v13  ;;  %v5849_v53 = vadd.f32 %v2404_v6, %v2363_v59  ;;  %v7181_v6 = vld [vmem:[#allocation9_spill] sm:$0xff] }
0x1986   :  { %2221 = vperm.xlu1 %4871, %v2194_v49   ;;  %2218 = vperm.xlu0 %4870, %v2193_v20   ;;  %v5833_v57 = vadd.f32 %v2400_v8, %v2362_v25  ;;  %v2371_v21 = vadd.f32 %v5790_v19, %v5308_v14  ;;  %v2364_v32 = vadd.f32 %v5760_v37, %v5312_v54  ;;  %v7178_v25 = vld [vmem:[#allocation6_spill] sm:$0xff] }
0x1987   :  { %v5835_v24 = vadd.f32 %v2428_v42, %v2369_v43  ;;  %v5847_v51 = vadd.f32 %v2432_v0, %v2370_v55  ;;  %v2436_v58 = vrot.slane %v5758_v47, %v5237_v23  ;;  %v2408_v35 = vrot.slane %v5780_v62, %v5248_v30 }
0x1988   :  { %v2372_v39 = vadd.f32 %v5790_v19, %v5312_v54  ;;  %v2365_v63 = vadd.f32 %v5760_v37, %v5310_v50  ;;  %v2440_v52 = vrot.slane %v5758_v47, %v5248_v30  ;;  %v2412_v12 = vrot.slane %v5780_v62, %v5270_v38 }
0x1989   :  { %7174 = vst [vmem:[#allocation14_spill] sm:$0xff] %v5847_v51  ;;  %v5861_v29 = vadd.f32 %v2436_v58, %v2371_v21  ;;  %v5863_v61 = vadd.f32 %v2408_v35, %v2364_v32  ;;  %v2373_v7 = vadd.f32 %v5790_v19, %v5310_v50  ;;  %v2366_v28 = vadd.f32 %v5760_v37, %v5316_v15  ;;  %v7183_v58 = vld [vmem:[#allocation10_spill] sm:$0xff] }
0x198a   :  { %2227 = vperm.xlu1 %4871, %v2196_v11   ;;  %2224 = vperm.xlu0 %4870, %v2195_v5   ;;  %v5875_v49 = vadd.f32 %v2440_v52, %v2372_v39  ;;  %v5877_v20 = vadd.f32 %v2412_v12, %v2365_v63  ;;  %v2444_v11 = vrot.slane %v5758_v47, %v5270_v38  ;;  %v5938_v39 = vpop.xlane.xlu0 %1788  ;;  %v1799_v63 = vand.u32 65535, %v5744_v26 }
0x198b   :  { %v2416_v5 = vrot.slane %v5780_v62, %v5280_v44  ;;  %v2448_v2 = vrot.slane %v5758_v47, %v5280_v44  ;;  %v2420_v22 = vrot.slane %v5780_v62, %v5275_v41  ;;  %v2375_v40 = vadd.f32 %v5790_v19, %v5314_v1  ;;  %7184 = vst [vmem:[#allocation10_spill] sm:$0xff] %v5938_v39 }
0x198c   :  { %7175 = vst [vmem:[#allocation15_spill] sm:$0xff] %v5875_v49  ;;  %v5889_v36 = vadd.f32 %v2444_v11, %v2373_v7  ;;  %v2368_v43 = vadd.f32 %v5760_v37, %v7178_v25  ;;  %v2424_v8 = vrot.slane %v5780_v62, %v5284_v46  ;;  %v2148_v42 = vrot.slane %v5790_v19, %v5280_v44 }
0x198d   :  { %v5891_v56 = vadd.f32 %v2416_v5, %v2366_v28  ;;  %v2456_v0 = vrot.slane %v5758_v47, %v5284_v46  ;;  %v2152_v62 = vrot.slane %v5790_v19, %v5275_v41  ;;  %v1784_v52 = vand.u32 65535, %v5729_v9 }
0x198e   :  { %2233 = vperm.xlu1 %4871, %v2198_v33   ;;  %2230 = vperm.xlu0 %4870, %v2197_v27   ;;  %7176 = vst [vmem:[#allocation16_spill] sm:$0xff] %v5889_v36  ;;  %v2374_v33 = vadd.f32 %v5790_v19, %v5316_v15  ;;  %v2367_v27 = vadd.f32 %v5760_v37, %v5314_v1  ;;  %v1801_v12 = vcvt.s32.f32 %v1799_v63 }
0x198f   :  { %v5921_v59 = vadd.f32 %v2424_v8, %v2368_v43  ;;  %v2376_v37 = vadd.f32 %v5790_v19, %v7178_v25  ;;  %vm2186_vm0 = vcmp.eq.f32.partialorder %v7181_v6, %v2148_v42  ;;  %vm2187_vm1 = vcmp.eq.f32.partialorder %v7183_v58, %v2152_v62 }
0x1990   :  { %v2202_v32 = vsel %vm2186_vm0, %v5478_v48, 8  ;;  %v2203_v35 = vsel %vm2187_vm1, %v5478_v48, 8  ;;  %vm1790_vm7 = vcmp.eq.f32.partialorder %v5750_v60, %v5938_v39  ;;  %v1786_v7 = vcvt.s32.f32 %v1784_v52 }
0x1991   :  { %7180 = vst [vmem:[#allocation18_spill] sm:$0xff] %v5921_v59  ;;  %v5932_v21 = vadd.f32 %v2456_v0, %v2376_v37 }
0x1992   :  { %2239 = vperm.xlu1 %4871, %v2200_v18   ;;  %2236 = vperm.xlu0 %4870, %v2199_v3   ;;  %v5903_v18 = vadd.f32 %v2448_v2, %v2374_v33  ;;  %v5905_v3 = vadd.f32 %v2420_v22, %v2367_v27  ;;  %v1791_v11 = vsel %vm1790_vm7, %v1786_v7, inf }
0x1993   :  { %7182 = vst [vmem:[#allocation9_spill] sm:$0xff] %v5932_v21 }
0x1994   :  { %7177 = vst [vmem:[#allocation17_spill] sm:$0xff] %v5903_v18 }
0x1996   :  { %2242 = vperm.xlu0 %4870, %v2201_v16   ;;  %2506 = vperm.xlu1 %4871, %v5821_v45   ;;  %v2452_v16 = vrot.slane %v5758_v47, %v5275_v41  ;;  %v5940_v47 = vpop.xlane.xlu0 %1803 }
0x1997   :  { %7185 = vst [vmem:[#allocation19_spill] sm:$0xff] %v5940_v47  ;;  %vm1805_vm6 = vcmp.eq.f32.partialorder %v5755_v4, %v5940_v47 }
0x1998   :  { %v5919_v55 = vadd.f32 %v2452_v16, %v2375_v40  ;;  %v1806_v28 = vsel %vm1805_vm6, %v1801_v12, inf }
0x199a   :  { %2509 = vperm.xlu0 %4870, %v5833_v57   ;;  %2530 = vperm.xlu1 %4871, %v5835_v24   ;;  %7179 = vst [vmem:[#allocation6_spill] sm:$0xff] %v5919_v55 }
0x199e   :  { %2533 = vperm.xlu0 %4870, %v5847_v51   ;;  %2512 = vperm.xlu1 %4871, %v5849_v53  }
0x19a2   :  { %2536 = vperm.xlu0 %4870, %v5861_v29   ;;  %2515 = vperm.xlu1 %4871, %v5863_v61  }
0x19a6   :  { %2539 = vperm.xlu0 %4870, %v5875_v49   ;;  %2518 = vperm.xlu1 %4871, %v5877_v20  }
0x19aa   :  { %2542 = vperm.xlu0 %4870, %v5889_v36   ;;  %2521 = vperm.xlu1 %4871, %v5891_v56  }
0x19ae   :  { %2545 = vperm.xlu0 %4870, %v5903_v18   ;;  %2524 = vperm.xlu1 %4871, %v5905_v3  }
0x19b2   :  { %2548 = vperm.xlu0 %4870, %v5919_v55   ;;  %2527 = vperm.xlu1 %4871, %v5921_v59  }
0x19b6   :  { %2551 = vperm.xlu0 %4870, %v5932_v21   ;;  %2245 = vperm.xlu1 %4871, %v2202_v32  }
0x19ba   :  { %2248 = vperm.xlu0 %4870, %v2203_v35  }
0x19d9   :  { %1807 = vmin.xlane.f32.xlu0 %v1806_v28 }
0x19da   :  { %1792 = vmin.xlane.f32.xlu1 %v1791_v11 }
0x19f9   :  { %v5948_v5 = vpop.permute.xlu1 %2209  ;;  %v5950_v33 = vpop.permute.xlu0 %2206 }
0x19fd   :  { %v5952_v27 = vpop.permute.xlu1 %2215  ;;  %v5954_v26 = vpop.permute.xlu0 %2212 }
0x1a01   :  { %v5956_v9 = vpop.permute.xlu1 %2221  ;;  %v5958_v4 = vpop.permute.xlu0 %2218 }
0x1a05   :  { %v5960_v2 = vpop.permute.xlu1 %2227  ;;  %v5962_v60 = vpop.permute.xlu0 %2224 }
0x1a09   :  { %v5964_v22 = vpop.permute.xlu1 %2233  ;;  %v5966_v40 = vpop.permute.xlu0 %2230 }
0x1a0d   :  { %v5968_v43 = vpop.permute.xlu1 %2239  ;;  %v5970_v16 = vpop.permute.xlu0 %2236 }
0x1a11   :  { %v2507_v8 = vpop.permute.xlu1 %2506  ;;  %v5972_v42 = vpop.permute.xlu0 %2242 }
0x1a12   :  { %v2556_v11 = vrot.slane %v2507_v8, %v5444_v17 }
0x1a15   :  { %v2531_v37 = vpop.permute.xlu1 %2530  ;;  %v2510_v0 = vpop.permute.xlu0 %2509 }
0x1a16   :  { %v2560_v7 = vrot.slane %v2510_v0, %v5444_v17  ;;  %v2588_v8 = vrot.slane %v2531_v37, %v5444_v17 }
0x1a18   :  { %v2617_v39 = vsel %vm1511_vm8, %v2560_v7, %v2556_v11 }
0x1a19   :  { %v2513_v6 = vpop.permute.xlu1 %2512  ;;  %v2534_v62 = vpop.permute.xlu0 %2533 }
0x1a1a   :  { %v2564_v28 = vrot.slane %v2513_v6, %v5444_v17  ;;  %v2592_v49 = vrot.slane %v2534_v62, %v5444_v17 }
0x1a1c   :  { %v2618_v59 = vsel %vm1513_vm9, %v2564_v28, %v2617_v39 }
0x1a1d   :  { %v2516_v32 = vpop.permute.xlu1 %2515  ;;  %v2537_v58 = vpop.permute.xlu0 %2536 }
0x1a1e   :  { %v2568_v21 = vrot.slane %v2516_v32, %v5444_v17  ;;  %v2596_v0 = vrot.slane %v2537_v58, %v5444_v17 }
0x1a20   :  { %v2619_v32 = vsel %vm1515_vm10, %v2568_v21, %v2618_v59 }
0x1a21   :  { %v2519_v35 = vpop.permute.xlu1 %2518  ;;  %v2540_v63 = vpop.permute.xlu0 %2539 }
0x1a22   :  { %v2572_v18 = vrot.slane %v2519_v35, %v5444_v17  ;;  %v2600_v35 = vrot.slane %v2540_v63, %v5444_v17 }
0x1a24   :  { %v2620_v36 = vsel %vm1517_vm11, %v2572_v18, %v2619_v32  ;;  %v7186_v32 = vld [vmem:[#allocation5_spill] sm:$0xff] }
0x1a25   :  { %v2522_v52 = vpop.permute.xlu1 %2521  ;;  %v2543_v12 = vpop.permute.xlu0 %2542 }
0x1a26   :  { %v2576_v51 = vrot.slane %v2522_v52, %v5444_v17  ;;  %v2604_v7 = vrot.slane %v2543_v12, %v5444_v17  ;;  %v2624_v52 = vsel %vm1511_vm8, %v2592_v49, %v2588_v8  ;;  %v2156_v8 = vrot.slane %v5790_v19, %v5284_v46 }
0x1a27   :  { %v2625_v37 = vsel %vm1513_vm9, %v2596_v0, %v2624_v52  ;;  %v2260_v52 = vrot.slane %v5948_v5, %v5444_v17  ;;  %v2264_v19 = vrot.slane %v5954_v26, %v5444_v17  ;;  %v2280_v26 = vrot.slane %v5962_v60, %v5444_v17 }
0x1a28   :  { %v2621_v39 = vsel %vm1519_vm12, %v2576_v51, %v2620_v36  ;;  %v2626_v18 = vsel %vm1515_vm10, %v2600_v35, %v2625_v37  ;;  %v2935_v35 = vrot.slane %v7186_v32, %v5248_v30 }
0x1a29   :  { %v2525_v55 = vpop.permute.xlu1 %2524  ;;  %v2546_v47 = vpop.permute.xlu0 %2545  ;;  %v2627_v12 = vsel %vm1517_vm11, %v2604_v7, %v2626_v18  ;;  %v7187_v7 = vld [vmem:[#allocation11_spill] sm:$0xff]  ;;  %v2284_v18 = vrot.slane %v5960_v2, %v5444_v17  ;;  %v2292_v2 = vrot.slane %v5964_v22, %v5444_v17 }
0x1a2a   :  { %v2580_v6 = vrot.slane %v2525_v55, %v5444_v17  ;;  %v2608_v58 = vrot.slane %v2546_v47, %v5444_v17  ;;  %vm2188_vm15 = vcmp.eq.f32.partialorder %v7187_v7, %v2156_v8  ;;  %v2300_v7 = vrot.slane %v5968_v43, %v5444_v17 }
0x1a2c   :  { %v2622_v21 = vsel %vm1521_vm13, %v2580_v6, %v2621_v39  ;;  %v2628_v51 = vsel %vm1519_vm12, %v2608_v58, %v2627_v12  ;;  %v2256_v39 = vrot.slane %v5950_v33, %v5444_v17 }
0x1a2d   :  { %v2528_v11 = vpop.permute.xlu1 %2527  ;;  %v2549_v62 = vpop.permute.xlu0 %2548 }
0x1a2e   :  { %v2584_v55 = vrot.slane %v2528_v11, %v5444_v17  ;;  %v2612_v59 = vrot.slane %v2549_v62, %v5444_v17  ;;  %v2204_v11 = vsel %vm2188_vm15, %v5478_v48, 8  ;;  %v2928_v62 = vrot.slane %v7186_v32, %v5237_v23 }
0x1a2f   :  { %v2317_v58 = vsel %vm1511_vm8, %v2260_v52, %v2256_v39 }
0x1a30   :  { %v2623_v63 = vsel %vm1523_vm14, %v2584_v55, %v2622_v21  ;;  %v2629_v47 = vsel %vm1521_vm13, %v2612_v59, %v2628_v51  ;;  %v2268_v55 = vrot.slane %v5952_v27, %v5444_v17  ;;  %v2318_v37 = vsel %vm1513_vm9, %v2264_v19, %v2317_v58 }
0x1a31   :  { %v2552_v28 = vpop.permute.xlu0 %2551  ;;  %v2633_v49 = vsel %vm1089_vm5, %v2623_v63, -inf  ;;  %v2272_v59 = vrot.slane %v5958_v4, %v5444_v17  ;;  %v2276_v21 = vrot.slane %v5956_v9, %v5444_v17 }
0x1a32   :  { %v2616_v36 = vrot.slane %v2552_v28, %v5444_v17  ;;  %2634 = vmax.xlane.f32.xlu1 %v2633_v49  ;;  %v2319_v5 = vsel %vm1515_vm10, %v2268_v55, %v2318_v37  ;;  %v2246_v49 = vpop.permute.xlu1 %2245 }
0x1a33   :  { %v2320_v33 = vsel %vm1517_vm11, %v2272_v59, %v2319_v5  ;;  %v2308_v52 = vrot.slane %v2246_v49, %v5444_v17 }
0x1a34   :  { %v2630_v0 = vsel %vm1523_vm14, %v2616_v36, %v2629_v47  ;;  %v2321_v27 = vsel %vm1519_vm12, %v2276_v21, %v2320_v33  ;;  %v2288_v36 = vrot.slane %v5966_v40, %v5444_v17  ;;  %v2296_v47 = vrot.slane %v5970_v16, %v5444_v17 }
0x1a35   :  { %v2636_v6 = vsel %vm1089_vm5, %v2630_v0, -inf  ;;  %v2322_v63 = vsel %vm1521_vm13, %v2280_v26, %v2321_v27  ;;  %v2249_v60 = vpop.permute.xlu0 %2248  ;;  %v2304_v40 = vrot.slane %v5972_v42, %v5444_v17 }
0x1a36   :  { %2637 = vmax.xlane.f32.xlu0 %v2636_v6  ;;  %v2323_v12 = vsel %vm1523_vm14, %v2284_v18, %v2322_v63  ;;  %v2312_v39 = vrot.slane %v2249_v60, %v5444_v17 }
0x1a37   :  { %v6038_v4 = vsel %vm1089_vm5, %v2323_v12, 2147483647 }
0x1a38   :  { %v2333_v9 = vshra.s32 %v6038_v4, 16 }
0x1a3a   :  { %v6041_v28 = vcvt.s32.f32 %v2333_v9 }
0x1a43   :  { %2937 = vbcast.lane.b32.xlu1 %v2935_v35, 256  ;;  %v2324_v35 = vsel %vm1511_vm8, %v2292_v2, %v2288_v36 }
0x1a44   :  { %v2325_v22 = vsel %vm1513_vm9, %v2296_v47, %v2324_v35 }
0x1a45   :  { %v2326_v43 = vsel %vm1515_vm10, %v2300_v7, %v2325_v22 }
0x1a47   :  { %2251 = vperm.xlu1 %4871, %v2204_v11  }
0x1a4c   :  { %2930 = vbcast.lane.b32.xlu0 %v2928_v62, 256 }
0x1a62   :  { %v6052_v0 = vpop.xlane.xlu0 %1807 }
0x1a63   :  { %v6044_v51 = vpop.xlane.xlu1 %1792 }
0x1a6b   :  { %2336 = vmin.xlane.f32.xlu0 %v6041_v28 }
0x1abb   :  { %v6054_v6 = vpop.xlane.xlu1 %2634 }
0x1abc   :  { %v2644_v8 = vrot.slane %v6054_v6, %v5253_v31  ;;  %v2910_v37 = vadd.f32 %v6054_v6, %v5306_v13  ;;  %v2911_v60 = vadd.f32 %v6054_v6, %v5308_v14  ;;  %v2912_v47 = vadd.f32 %v6054_v6, %v5312_v54 }
0x1abd   :  { %v2913_v7 = vadd.f32 %v6054_v6, %v5310_v50 }
0x1abe   :  { %vm2721_vm0 = vcmp.eq.f32.partialorder %v5821_v45, %v2644_v8  ;;  %v2327_v45 = vsel %vm1517_vm11, %v2304_v40, %v2326_v43  ;;  %v2915_v43 = vadd.f32 %v6054_v6, %v5314_v1 }
0x1abf   :  { %v6065_v16 = vpop.permute.xlu1 %2937  ;;  %v6067_v11 = vpop.xlane.xlu0 %2637  ;;  %v2737_v62 = vsel %vm2721_vm0, %v5478_v48, 8  ;;  %v2328_v55 = vsel %vm1519_vm12, %v2308_v52, %v2327_v45 }
0x1ac0   :  { %2754 = vperm.xlu1 %4871, %v2737_v62   ;;  %v2329_v21 = vsel %vm1521_vm13, %v2312_v39, %v2328_v55  ;;  %v2917_v26 = vadd.f32 %v6067_v11, %v5304_v10  ;;  %v2976_v18 = vrot.slane %v6065_v16, %v5253_v31  ;;  %v2914_v62 = vadd.f32 %v6054_v6, %v5316_v15 }
0x1ac1   :  { %v2909_v55 = vadd.f32 %v6054_v6, %v5304_v10 }
0x1ac2   :  { %v6094_v9 = vadd.f32 %v2976_v18, %v2917_v26  ;;  %v2919_v18 = vadd.f32 %v6067_v11, %v5308_v14 }
0x1ac3   :  { %v2252_v19 = vpop.permute.xlu1 %2251  ;;  %v2931_v58 = vpop.permute.xlu0 %2930 }
0x1ac4   :  { %v2316_v42 = vrot.slane %v2252_v19, %v5444_v17  ;;  %v2948_v59 = vrot.slane %v2931_v58, %v5260_v34  ;;  %7188 = vst [vmem:[#allocation5_spill] sm:$0xff] %v6094_v9  ;;  %v2952_v49 = vrot.slane %v2931_v58, %v5237_v23  ;;  %v2956_v36 = vrot.slane %v2931_v58, %v5248_v30 }
0x1ac5   :  { %v2960_v35 = vrot.slane %v2931_v58, %v5270_v38  ;;  %v2964_v40 = vrot.slane %v2931_v58, %v5280_v44  ;;  %v2968_v39 = vrot.slane %v2931_v58, %v5275_v41  ;;  %v2944_v45 = vrot.slane %v2931_v58, %v5253_v31 }
0x1ac6   :  { %v2330_v5 = vsel %vm1523_vm14, %v2316_v42, %v2329_v21  ;;  %v6081_v33 = vadd.f32 %v2948_v59, %v2910_v37  ;;  %v6101_v2 = vadd.f32 %v2952_v49, %v2911_v60  ;;  %v6107_v8 = vadd.f32 %v2956_v36, %v2912_v47 }
0x1ac7   :  { %v6088_v27 = vsel %vm1089_vm5, %v2330_v5, 2147483647  ;;  %v6113_v22 = vadd.f32 %v2960_v35, %v2913_v7  ;;  %v6119_v52 = vadd.f32 %v2964_v40, %v2914_v62  ;;  %v6126_v19 = vadd.f32 %v2968_v39, %v2915_v43 }
0x1ac8   :  { %3057 = vperm.xlu1 %4871, %v6081_v33   ;;  %v2348_v63 = vshra.s32 %v6088_v27, 16  ;;  %7189 = vst [vmem:[#allocation11_spill] sm:$0xff] %v6101_v2  ;;  %v2972_v42 = vrot.slane %v2931_v58, %v5284_v46  ;;  %v6132_v37 = vadd.f32 %v2944_v45, %v2909_v55  ;;  %v2916_v59 = vadd.f32 %v6054_v6, %v7178_v25 }
0x1ac9   :  { %7190 = vst [vmem:[#allocation20_spill] sm:$0xff] %v6113_v22  ;;  %7191 = vst [vmem:[#allocation21_spill] sm:$0xff] %v6126_v19  ;;  %v2918_v21 = vadd.f32 %v6067_v11, %v5306_v13  ;;  %v2980_v5 = vrot.slane %v6065_v16, %v5260_v34  ;;  %v2648_v49 = vrot.slane %v6054_v6, %v5260_v34 }
0x1aca   :  { %v6092_v12 = vcvt.s32.f32 %v2348_v63  ;;  %v6141_v26 = vadd.f32 %v2972_v42, %v2916_v59  ;;  %v2984_v63 = vrot.slane %v6065_v16, %v5237_v23  ;;  %v3483_v60 = vrot.slane %v7186_v32, %v5280_v44 }
0x1acb   :  { %v6144_v58 = vadd.f32 %v2980_v5, %v2918_v21  ;;  %vm2722_vm1 = vcmp.eq.f32.partialorder %v5833_v57, %v2648_v49  ;;  %v2920_v47 = vadd.f32 %v6067_v11, %v5312_v54  ;;  %v2988_v35 = vrot.slane %v6065_v16, %v5248_v30 }
0x1acc   :  { %2351 = vmin.xlane.f32.xlu0 %v6092_v12  ;;  %3078 = vperm.xlu1 %4871, %v6094_v9   ;;  %v6155_v36 = vadd.f32 %v2984_v63, %v2919_v18  ;;  %v2738_v7 = vsel %vm2722_vm1, %v5478_v48, 8  ;;  %v2921_v62 = vadd.f32 %v6067_v11, %v5310_v50  ;;  %v2992_v39 = vrot.slane %v6065_v16, %v5270_v38 }
0x1acd   :  { %v6164_v40 = vadd.f32 %v2988_v35, %v2920_v47  ;;  %v2922_v43 = vadd.f32 %v6067_v11, %v5316_v15  ;;  %v2996_v45 = vrot.slane %v6065_v16, %v5280_v44  ;;  %v2923_v42 = vadd.f32 %v6067_v11, %v5314_v1 }
0x1ace   :  { %7192 = vst [vmem:[#allocation22_spill] sm:$0xff] %v6155_v36  ;;  %v6171_v57 = vadd.f32 %v2992_v39, %v2921_v62  ;;  %v3000_v59 = vrot.slane %v6065_v16, %v5275_v41  ;;  %v2924_v5 = vadd.f32 %v6067_v11, %v7178_v25  ;;  %v3004_v18 = vrot.slane %v6065_v16, %v5284_v46 }
0x1acf   :  { %v6178_v55 = vadd.f32 %v2996_v45, %v2922_v43  ;;  %v3476_v49 = vrot.slane %v7186_v32, %v5270_v38  ;;  %v2332_v47 = vand.u32 65535, %v6038_v4  ;;  %v2656_v16 = vrot.slane %v6054_v6, %v5248_v30 }
0x1ad0   :  { %3060 = vperm.xlu1 %4871, %v6101_v2   ;;  %7193 = vst [vmem:[#allocation23_spill] sm:$0xff] %v6171_v57  ;;  %v6185_v21 = vadd.f32 %v3000_v59, %v2923_v42  ;;  %v6192_v63 = vadd.f32 %v3004_v18, %v2924_v5  ;;  %v2347_v59 = vand.u32 65535, %v6088_v27 }
0x1ad1   :  { %7194 = vst [vmem:[#allocation24_spill] sm:$0xff] %v6178_v55  ;;  %v2334_v35 = vcvt.s32.f32 %v2332_v47  ;;  %vm2724_vm7 = vcmp.eq.f32.partialorder %v5863_v61, %v2656_v16 }
0x1ad2   :  { %7195 = vst [vmem:[#allocation25_spill] sm:$0xff] %v6185_v21  ;;  %7196 = vst [vmem:[#allocation26_spill] sm:$0xff] %v6192_v63  ;;  %v2740_v62 = vsel %vm2724_vm7, %v5478_v48, 8  ;;  %v2349_v18 = vcvt.s32.f32 %v2347_v59 }
0x1ad4   :  { %3063 = vperm.xlu1 %4871, %v6107_v8  }
0x1ad8   :  { %3066 = vperm.xlu1 %4871, %v6113_v22  }
0x1adc   :  { %3069 = vperm.xlu1 %4871, %v6119_v52  }
0x1ae0   :  { %3072 = vperm.xlu1 %4871, %v6126_v19  }
0x1ae2   :  { %3054 = vperm.xlu0 %4870, %v6132_v37  }
0x1ae4   :  { %3075 = vperm.xlu1 %4871, %v6141_v26  }
0x1ae6   :  { %3081 = vperm.xlu0 %4870, %v6144_v58  }
0x1ae8   :  { %3485 = vbcast.lane.b32.xlu1 %v3483_v60, 256 }
0x1aea   :  { %3084 = vperm.xlu0 %4870, %v6155_v36  }
0x1aec   :  { %2757 = vperm.xlu1 %4871, %v2738_v7  }
0x1aee   :  { %3087 = vperm.xlu0 %4870, %v6164_v40  }
0x1af2   :  { %3090 = vperm.xlu0 %4870, %v6171_v57  }
0x1af4   :  { %v6197_v60 = vpop.xlane.xlu0 %2336 }
0x1af5   :  { %vm2338_vm6 = vcmp.eq.f32.partialorder %v6041_v28, %v6197_v60 }
0x1af6   :  { %3093 = vperm.xlu0 %4870, %v6178_v55   ;;  %v2339_v7 = vsel %vm2338_vm6, %v2334_v35, inf }
0x1afa   :  { %3096 = vperm.xlu0 %4870, %v6185_v21  }
0x1afe   :  { %3099 = vperm.xlu0 %4870, %v6192_v63  }
0x1b02   :  { %3478 = vbcast.lane.b32.xlu0 %v3476_v49, 256 }
0x1b10   :  { %2340 = vmin.xlane.f32.xlu1 %v2339_v7 }
0x1b21   :  { %2763 = vperm.xlu1 %4871, %v2740_v62  }
0x1b3b   :  { %v6206_v39 = vpop.permute.xlu1 %2754 }
0x1b43   :  { %v3058_v43 = vpop.permute.xlu1 %3057 }
0x1b44   :  { %v3108_v7 = vrot.slane %v3058_v43, %v5444_v17 }
0x1b47   :  { %v3079_v45 = vpop.permute.xlu1 %3078 }
0x1b4b   :  { %v3061_v42 = vpop.permute.xlu1 %3060 }
0x1b4c   :  { %v3112_v62 = vrot.slane %v3061_v42, %v5444_v17 }
0x1b4f   :  { %v3064_v4 = vpop.permute.xlu1 %3063 }
0x1b50   :  { %v3116_v27 = vrot.slane %v3064_v4, %v5444_v17 }
0x1b53   :  { %v3067_v28 = vpop.permute.xlu1 %3066 }
0x1b54   :  { %v3120_v59 = vrot.slane %v3067_v28, %v5444_v17 }
0x1b55   :  { %v6209_v5 = vpop.xlane.xlu0 %2351 }
0x1b56   :  { %vm2353_vm15 = vcmp.eq.f32.partialorder %v6092_v12, %v6209_v5 }
0x1b57   :  { %v3070_v49 = vpop.permute.xlu1 %3069  ;;  %v2354_v61 = vsel %vm2353_vm15, %v2349_v18, inf }
0x1b58   :  { %2355 = vmin.xlane.f32.xlu0 %v2354_v61  ;;  %v3124_v18 = vrot.slane %v3070_v49, %v5444_v17 }
0x1b5b   :  { %v3073_v47 = vpop.permute.xlu1 %3072 }
0x1b5c   :  { %v3128_v43 = vrot.slane %v3073_v47, %v5444_v17 }
0x1b5d   :  { %v3055_v35 = vpop.permute.xlu0 %3054 }
0x1b5e   :  { %v3104_v16 = vrot.slane %v3055_v35, %v5444_v17 }
0x1b5f   :  { %v3076_v12 = vpop.permute.xlu1 %3075 }
0x1b60   :  { %v3165_v63 = vsel %vm1511_vm8, %v3108_v7, %v3104_v16  ;;  %v3132_v42 = vrot.slane %v3076_v12, %v5444_v17 }
0x1b61   :  { %v3166_v21 = vsel %vm1513_vm9, %v3112_v62, %v3165_v63  ;;  %v3082_v57 = vpop.permute.xlu0 %3081 }
0x1b62   :  { %v3167_v61 = vsel %vm1515_vm10, %v3116_v27, %v3166_v21  ;;  %v3140_v21 = vrot.slane %v3082_v57, %v5444_v17  ;;  %v3136_v27 = vrot.slane %v3079_v45, %v5444_v17 }
0x1b63   :  { %v3168_v35 = vsel %vm1517_vm11, %v3120_v59, %v3167_v61 }
0x1b64   :  { %v3169_v4 = vsel %vm1519_vm12, %v3124_v18, %v3168_v35  ;;  %v3172_v61 = vsel %vm1511_vm8, %v3140_v21, %v3136_v27  ;;  %v2652_v35 = vrot.slane %v6054_v6, %v5237_v23  ;;  %v2676_v27 = vrot.slane %v6067_v11, %v5253_v31 }
0x1b65   :  { %v3085_v36 = vpop.permute.xlu0 %3084  ;;  %v3170_v7 = vsel %vm1521_vm13, %v3128_v43, %v3169_v4 }
0x1b66   :  { %v3171_v28 = vsel %vm1523_vm14, %v3132_v42, %v3170_v7  ;;  %v3144_v47 = vrot.slane %v3085_v36, %v5444_v17  ;;  %vm2723_vm0 = vcmp.eq.f32.partialorder %v5849_v53, %v2652_v35  ;;  %vm2729_vm7 = vcmp.eq.f32.partialorder %v5835_v24, %v2676_v27  ;;  %v7197_v35 = vld [vmem:[#allocation16_spill] sm:$0xff]  ;;  %v7204_v27 = vld [vmem:[#allocation7_spill] sm:$0xff] }
0x1b67   :  { %v3181_v63 = vsel %vm1089_vm5, %v3171_v28, -inf }
0x1b68   :  { %3182 = vmax.xlane.f32.xlu0 %v3181_v63  ;;  %v3173_v42 = vsel %vm1513_vm9, %v3144_v47, %v3172_v61  ;;  %v2660_v63 = vrot.slane %v6054_v6, %v5270_v38  ;;  %v2668_v47 = vrot.slane %v6054_v6, %v5275_v41  ;;  %v2672_v61 = vrot.slane %v6054_v6, %v5284_v46 }
0x1b69   :  { %v3088_v16 = vpop.permute.xlu0 %3087 }
0x1b6a   :  { %v3148_v59 = vrot.slane %v3088_v16, %v5444_v17  ;;  %vm2725_vm1 = vcmp.eq.f32.partialorder %v5877_v20, %v2660_v63  ;;  %vm2727_vm6 = vcmp.eq.f32.partialorder %v5905_v3, %v2668_v47  ;;  %v2664_v20 = vrot.slane %v6054_v6, %v5280_v44  ;;  %v7199_v6 = vld [vmem:[#allocation14_spill] sm:$0xff]  ;;  %v7201_v63 = vld [vmem:[#allocation8_spill] sm:$0xff] }
0x1b6b   :  { %v2741_v53 = vsel %vm2725_vm1, %v5478_v48, 8  ;;  %v2692_v3 = vrot.slane %v6067_v11, %v5270_v38 }
0x1b6c   :  { %v3174_v36 = vsel %vm1515_vm10, %v3148_v59, %v3173_v42  ;;  %v2743_v59 = vsel %vm2727_vm6, %v5478_v48, 8  ;;  %v7198_v42 = vld [vmem:[#allocation18_spill] sm:$0xff] }
0x1b6d   :  { %v3091_v49 = vpop.permute.xlu0 %3090  ;;  %vm2733_vm1 = vcmp.eq.f32.partialorder %v7197_v35, %v2692_v3  ;;  %vm2728_vm6 = vcmp.eq.f32.partialorder %v7198_v42, %v2672_v61  ;;  %v1794_v3 = vcvt.f32.s32 %v6044_v51 }
0x1b6e   :  { %v3152_v12 = vrot.slane %v3091_v49, %v5444_v17 }
0x1b70   :  { %v3175_v45 = vsel %vm1517_vm11, %v3152_v12, %v3174_v36  ;;  %v2684_v12 = vrot.slane %v6067_v11, %v5237_v23  ;;  %v2688_v36 = vrot.slane %v6067_v11, %v5248_v30 }
0x1b71   :  { %v3094_v62 = vpop.permute.xlu0 %3093 }
0x1b72   :  { %v3156_v43 = vrot.slane %v3094_v62, %v5444_v17  ;;  %v2739_v62 = vsel %vm2723_vm0, %v5478_v48, 8  ;;  %vm2731_vm15 = vcmp.eq.f32.partialorder %v5861_v29, %v2684_v12  ;;  %vm2726_vm0 = vcmp.eq.f32.partialorder %v5891_v56, %v2664_v20  ;;  %v7205_v12 = vld [vmem:[#allocation13_spill] sm:$0xff] }
0x1b73   :  { %v2747_v24 = vsel %vm2731_vm15, %v5478_v48, 8  ;;  %v2680_v29 = vrot.slane %v6067_v11, %v5260_v34  ;;  %v2744_v56 = vsel %vm2728_vm6, %v5478_v48, 8  ;;  %v1186_v20 = vcvt.f32.s32 %v7205_v12 }
0x1b74   :  { %v3176_v7 = vsel %vm1519_vm12, %v3156_v43, %v3175_v45  ;;  %v2742_v43 = vsel %vm2726_vm0, %v5478_v48, 8 }
0x1b75   :  { %v3097_v18 = vpop.permute.xlu0 %3096 }
0x1b76   :  { %v3160_v57 = vrot.slane %v3097_v18, %v5444_v17  ;;  %v2745_v18 = vsel %vm2729_vm7, %v5478_v48, 8  ;;  %vm2730_vm7 = vcmp.eq.f32.partialorder %v7199_v6, %v2680_v29  ;;  %v2343_v6 = vcvt.f32.s32 %v6197_v60 }
0x1b77   :  { %v2746_v45 = vsel %vm2730_vm7, %v5478_v48, 8 }
0x1b78   :  { %v3177_v16 = vsel %vm1521_vm13, %v3160_v57, %v3176_v7  ;;  %v2749_v57 = vsel %vm2733_vm1, %v5478_v48, 8 }
0x1b79   :  { %v3100_v4 = vpop.permute.xlu0 %3099 }
0x1b7a   :  { %v3164_v28 = vrot.slane %v3100_v4, %v5444_v17  ;;  %v7200_v4 = vld [vmem:[#allocation15_spill] sm:$0xff] }
0x1b7b   :  { %vm2732_vm15 = vcmp.eq.f32.partialorder %v7200_v4, %v2688_v36 }
0x1b7c   :  { %v3178_v49 = vsel %vm1523_vm14, %v3164_v28, %v3177_v16  ;;  %v2748_v7 = vsel %vm2732_vm15, %v5478_v48, 8  ;;  %v6285_v28 = vpop.permute.xlu1 %3485  ;;  %v1187_v16 = vcvt.f32.s32 %v7201_v63  ;;  %v2358_v63 = vcvt.f32.s32 %v6209_v5 }
0x1b7d   :  { %v3184_v21 = vsel %vm1089_vm5, %v3178_v49, -inf  ;;  %v7202_v49 = vld [vmem:[#allocation10_spill] sm:$0xff]  ;;  %v6298_v4 = vpop.permute.xlu0 %3478 }
0x1b7e   :  { %2760 = vperm.xlu0 %4870, %v2739_v62   ;;  %3185 = vmax.xlane.f32.xlu1 %v3184_v21  ;;  %v1795_v62 = vcvt.f32.s32 %v7202_v49  ;;  %v7203_v21 = vld [vmem:[#allocation19_spill] sm:$0xff]  ;;  %v1188_v61 = vshll.u32 %v1187_v16, 16  ;;  %v2344_v16 = vshll.u32 %v2343_v6, 16  ;;  %v3492_v6 = vrot.slane %v6298_v4, %v5253_v31 }
0x1b7f   :  { %v1810_v47 = vcvt.f32.s32 %v7203_v21 }
0x1b80   :  { %v1796_v35 = vshll.u32 %v1795_v62, 16 }
0x1b81   :  { %v1811_v42 = vshll.u32 %v1810_v47, 16 }
0x1b82   :  { %2766 = vperm.xlu0 %4870, %v2741_v53   ;;  %v6290_v53 = vpop.permute.xlu1 %2757 }
0x1b86   :  { %2772 = vperm.xlu0 %4870, %v2743_v59   ;;  %v1172_v59 = vcvt.f32.s32 %v7204_v27  ;;  %v2359_v27 = vshll.u32 %v2358_v63, 16 }
0x1b8a   :  { %2778 = vperm.xlu0 %4870, %v2745_v18   ;;  %v1809_v18 = vcvt.f32.s32 %v6052_v0 }
0x1b8c   :  { %v1812_v36 = vadd.s32 %v1811_v42, %v1809_v18 }
0x1b8e   :  { %2784 = vperm.xlu0 %4870, %v2747_v24   ;;  %v7206_v24 = vld [vmem:[#allocation12_spill] sm:$0xff]  ;;  %v4569_v49 = vrot.slane %v1812_v36, %v5444_v17 }
0x1b8f   :  { %2769 = vperm.xlu1 %4871, %v2742_v43   ;;  %v1171_v43 = vcvt.f32.s32 %v7206_v24 }
0x1b92   :  { %2790 = vperm.xlu0 %4870, %v2749_v57   ;;  %v1173_v57 = vshll.u32 %v1172_v59, 16 }
0x1b93   :  { %2775 = vperm.xlu1 %4871, %v2744_v56   ;;  %v1189_v56 = vadd.s32 %v1188_v61, %v1186_v20 }
0x1b95   :  { %v4560_v51 = vrot.slane %v1189_v56, %v5444_v17 }
0x1b97   :  { %2781 = vperm.xlu1 %4871, %v2746_v45   ;;  %v1797_v45 = vadd.s32 %v1796_v35, %v1794_v3 }
0x1b99   :  { %v2341_v29 = vpop.xlane.xlu1 %2340  ;;  %v4565_v62 = vrot.slane %v1797_v45, %v5444_v17 }
0x1b9a   :  { %v2342_v0 = vcvt.f32.s32 %v2341_v29 }
0x1b9b   :  { %2787 = vperm.xlu1 %4871, %v2748_v7   ;;  %v1174_v7 = vadd.s32 %v1173_v57, %v1171_v43  ;;  %v4570_v18 = vsel %vm1519_vm12, %v4569_v49, %v4565_v62  ;;  %v3496_v57 = vrot.slane %v6298_v4, %v5260_v34  ;;  %v3524_v49 = vrot.slane %v6285_v28, %v5253_v31 }
0x1b9c   :  { %v2345_v60 = vadd.s32 %v2344_v16, %v2342_v0 }
0x1b9d   :  { %v4556_v47 = vrot.slane %v1174_v7, %v5444_v17  ;;  %v6333_v7 = vpop.permute.xlu1 %2763 }
0x1b9e   :  { %v4574_v5 = vrot.slane %v2345_v60, %v5444_v17  ;;  %v3532_v60 = vrot.slane %v6285_v28, %v5237_v23 }
0x1b9f   :  { %v4561_v12 = vsel %vm1515_vm10, %v4560_v51, %v4556_v47  ;;  %v3528_v51 = vrot.slane %v6285_v28, %v5260_v34 }
0x1ba0   :  { %v4616_v61 = vsel %vm985_vm2, 0, %v4561_v12 }
0x1ba1   :  { %v4617_v24 = vsel %vm987_vm3, %v4616_v61, %v4570_v18  ;;  %v3504_v61 = vrot.slane %v6298_v4, %v5248_v30 }
0x1be1   :  { %v2356_v21 = vpop.xlane.xlu0 %2355 }
0x1be2   :  { %v2357_v59 = vcvt.f32.s32 %v2356_v21 }
0x1be4   :  { %v2360_v20 = vadd.s32 %v2359_v27, %v2357_v59  ;;  %v3500_v59 = vrot.slane %v6298_v4, %v5237_v23 }
0x1be6   :  { %v4578_v3 = vrot.slane %v2360_v20, %v5444_v17 }
0x1be8   :  { %v4579_v43 = vsel %vm1523_vm14, %v4578_v3, %v4574_v5  ;;  %v3536_v3 = vrot.slane %v6285_v28, %v5248_v30 }
0x1be9   :  { %v4618_v35 = vsel %vm989_vm4, %v4617_v24, %v4579_v43 }
0x1bea   :  { %4622 = vst.msk [vmem:[%s7123_s7] sm:$0xff] %vm1089_vm5, %v4618_v35 }
0x1bf1   :  { %v6317_v42 = vpop.xlane.xlu0 %3182 }
0x1bf2   :  { %v3458_v29 = vadd.f32 %v6317_v42, %v5306_v13  ;;  %v3457_v56 = vadd.f32 %v6317_v42, %v5304_v10  ;;  %v3459_v27 = vadd.f32 %v6317_v42, %v5308_v14  ;;  %v3460_v5 = vadd.f32 %v6317_v42, %v5312_v54 }
0x1bf4   :  { %v6327_v36 = vadd.f32 %v3496_v57, %v3458_v29  ;;  %v6329_v45 = vadd.f32 %v3492_v6, %v3457_v56  ;;  %v6361_v20 = vadd.f32 %v3500_v59, %v3459_v27  ;;  %v6375_v43 = vadd.f32 %v3504_v61, %v3460_v5 }
0x1bf5   :  { %v3461_v29 = vadd.f32 %v6317_v42, %v5310_v50  ;;  %v3540_v57 = vrot.slane %v6285_v28, %v5270_v38  ;;  %v3508_v56 = vrot.slane %v6298_v4, %v5270_v38  ;;  %v3548_v5 = vrot.slane %v6285_v28, %v5275_v41 }
0x1bf6   :  { %7207 = vst [vmem:[#allocation16_spill] sm:$0xff] %v6327_v36  ;;  %3605 = vperm.xlu0 %4870, %v6327_v36   ;;  %3602 = vperm.xlu1 %4871, %v6329_v45   ;;  %7209 = vst [vmem:[#allocation14_spill] sm:$0xff] %v6361_v20 }
0x1bf7   :  { %7211 = vst [vmem:[#allocation8_spill] sm:$0xff] %v6375_v43 }
0x1c07   :  { %v6335_v63 = vpop.xlane.xlu1 %3185 }
0x1c08   :  { %v3466_v0 = vadd.f32 %v6335_v63, %v5306_v13  ;;  %v3465_v16 = vadd.f32 %v6335_v63, %v5304_v10  ;;  %v3467_v47 = vadd.f32 %v6335_v63, %v5308_v14  ;;  %v3468_v18 = vadd.f32 %v6335_v63, %v5312_v54 }
0x1c09   :  { %v3469_v35 = vadd.f32 %v6335_v63, %v5310_v50  ;;  %v3471_v59 = vadd.f32 %v6335_v63, %v5314_v1 }
0x1c0a   :  { %v6345_v62 = vadd.f32 %v3528_v51, %v3466_v0  ;;  %v6347_v21 = vadd.f32 %v3524_v49, %v3465_v16  ;;  %v6359_v12 = vadd.f32 %v3532_v60, %v3467_v47  ;;  %v6373_v24 = vadd.f32 %v3536_v3, %v3468_v18 }
0x1c0b   :  { %v6387_v6 = vadd.f32 %v3540_v57, %v3469_v35  ;;  %v6389_v0 = vadd.f32 %v3508_v56, %v3461_v29  ;;  %v3470_v51 = vadd.f32 %v6335_v63, %v5316_v15  ;;  %v3462_v16 = vadd.f32 %v6317_v42, %v5316_v15 }
0x1c0c   :  { %7208 = vst [vmem:[#allocation18_spill] sm:$0xff] %v6345_v62  ;;  %3629 = vperm.xlu0 %4870, %v6345_v62   ;;  %3626 = vperm.xlu1 %4871, %v6347_v21   ;;  %7210 = vst [vmem:[#allocation15_spill] sm:$0xff] %v6373_v24  ;;  %v3544_v49 = vrot.slane %v6285_v28, %v5280_v44  ;;  %v3512_v47 = vrot.slane %v6298_v4, %v5280_v44 }
0x1c0d   :  { %7212 = vst [vmem:[#allocation10_spill] sm:$0xff] %v6387_v6  ;;  %7213 = vst [vmem:[#allocation19_spill] sm:$0xff] %v6389_v0  ;;  %v3463_v18 = vadd.f32 %v6317_v42, %v5314_v1  ;;  %v3516_v3 = vrot.slane %v6298_v4, %v5275_v41  ;;  %v6415_v61 = vadd.f32 %v3548_v5, %v3471_v59  ;;  %v7220_v59 = vld [vmem:[#allocation6_spill] sm:$0xff] }
0x1c0e   :  { %v6401_v27 = vadd.f32 %v3544_v49, %v3470_v51  ;;  %v6403_v60 = vadd.f32 %v3512_v47, %v3462_v16  ;;  %v3472_v29 = vadd.f32 %v6335_v63, %v7178_v25  ;;  %v3464_v57 = vadd.f32 %v6317_v42, %v7178_v25 }
0x1c0f   :  { %7216 = vst [vmem:[#allocation12_spill] sm:$0xff] %v6415_v61  ;;  %v6417_v35 = vadd.f32 %v3516_v3, %v3463_v18  ;;  %v3552_v56 = vrot.slane %v6285_v28, %v5284_v46  ;;  %v3520_v51 = vrot.slane %v6298_v4, %v5284_v46  ;;  %v2700_v16 = vrot.slane %v6067_v11, %v5275_v41  ;;  %v6439_v28 = vpop.permute.xlu0 %2760  ;;  %v6445_v3 = vpop.permute.xlu1 %2769 }
0x1c10   :  { %3632 = vperm.xlu0 %4870, %v6359_v12   ;;  %3608 = vperm.xlu1 %4871, %v6361_v20   ;;  %7214 = vst [vmem:[#allocation7_spill] sm:$0xff] %v6401_v27  ;;  %7215 = vst [vmem:[#allocation13_spill] sm:$0xff] %v6403_v60 }
0x1c11   :  { %7217 = vst [vmem:[#allocation27_spill] sm:$0xff] %v6417_v35  ;;  %v6431_v49 = vadd.f32 %v3552_v56, %v3472_v29  ;;  %v6433_v47 = vadd.f32 %v3520_v51, %v3464_v57  ;;  %vm2735_vm0 = vcmp.eq.f32.partialorder %v7220_v59, %v2700_v16 }
0x1c12   :  { %v2751_v18 = vsel %vm2735_vm0, %v5478_v48, 8 }
0x1c13   :  { %7218 = vst [vmem:[#allocation28_spill] sm:$0xff] %v6431_v49  ;;  %7219 = vst [vmem:[#allocation29_spill] sm:$0xff] %v6433_v47  ;;  %v6441_v5 = vpop.permute.xlu0 %2766  ;;  %v6449_v57 = vpop.permute.xlu1 %2775 }
0x1c14   :  { %3635 = vperm.xlu0 %4870, %v6373_v24   ;;  %3611 = vperm.xlu1 %4871, %v6375_v43  }
0x1c17   :  { %v6443_v4 = vpop.permute.xlu0 %2772  ;;  %v6453_v51 = vpop.permute.xlu1 %2781 }
0x1c18   :  { %3638 = vperm.xlu0 %4870, %v6387_v6   ;;  %3614 = vperm.xlu1 %4871, %v6389_v0   ;;  %7223 = vst [vmem:[#allocation31_spill] sm:$0xff] %v6453_v51 }
0x1c1b   :  { %v6447_v29 = vpop.permute.xlu0 %2778  ;;  %v6457_v59 = vpop.permute.xlu1 %2787 }
0x1c1c   :  { %3641 = vperm.xlu0 %4870, %v6401_v27   ;;  %3617 = vperm.xlu1 %4871, %v6403_v60   ;;  %7221 = vst [vmem:[#allocation6_spill] sm:$0xff] %v6447_v29  ;;  %7225 = vst [vmem:[#allocation33_spill] sm:$0xff] %v6457_v59 }
0x1c1f   :  { %v6451_v56 = vpop.permute.xlu0 %2784 }
0x1c20   :  { %3644 = vperm.xlu0 %4870, %v6415_v61   ;;  %3620 = vperm.xlu1 %4871, %v6417_v35   ;;  %7222 = vst [vmem:[#allocation30_spill] sm:$0xff] %v6451_v56 }
0x1c23   :  { %v6455_v16 = vpop.permute.xlu0 %2790 }
0x1c24   :  { %3647 = vperm.xlu0 %4870, %v6431_v49   ;;  %3623 = vperm.xlu1 %4871, %v6433_v47   ;;  %7224 = vst [vmem:[#allocation32_spill] sm:$0xff] %v6455_v16 }
0x1c28   :  { %2796 = vperm.xlu0 %4870, %v2751_v18  }
0x1c71   :  { %v3603_v18 = vpop.permute.xlu1 %3602  ;;  %v3606_v49 = vpop.permute.xlu0 %3605 }
0x1c72   :  { %v3652_v9 = vrot.slane %v3603_v18, %v5444_v17  ;;  %v3656_v19 = vrot.slane %v3606_v49, %v5444_v17 }
0x1c74   :  { %v3713_v49 = vsel %vm1511_vm8, %v3656_v19, %v3652_v9 }
0x1c87   :  { %v3627_v61 = vpop.permute.xlu1 %3626  ;;  %v3630_v47 = vpop.permute.xlu0 %3629 }
0x1c88   :  { %v3684_v22 = vrot.slane %v3627_v61, %v5444_v17  ;;  %v3688_v2 = vrot.slane %v3630_v47, %v5444_v17 }
0x1c8a   :  { %v3720_v61 = vsel %vm1511_vm8, %v3688_v2, %v3684_v22 }
0x1c8b   :  { %v3609_v60 = vpop.permute.xlu1 %3608  ;;  %v3633_v35 = vpop.permute.xlu0 %3632 }
0x1c8c   :  { %v3660_v16 = vrot.slane %v3609_v60, %v5444_v17  ;;  %v3692_v56 = vrot.slane %v3633_v35, %v5444_v17 }
0x1c8e   :  { %v3714_v35 = vsel %vm1513_vm9, %v3660_v16, %v3713_v49  ;;  %v4024_v49 = vrot.slane %v7186_v32, %v5275_v41 }
0x1c8f   :  { %v3612_v27 = vpop.permute.xlu1 %3611  ;;  %v3636_v0 = vpop.permute.xlu0 %3635 }
0x1c90   :  { %v3664_v59 = vrot.slane %v3612_v27, %v5444_v17  ;;  %v3696_v29 = vrot.slane %v3636_v0, %v5444_v17  ;;  %v3721_v27 = vsel %vm1513_vm9, %v3692_v56, %v3720_v61  ;;  %v2808_v61 = vrot.slane %v6290_v53, %v5444_v17 }
0x1c92   :  { %v3722_v43 = vsel %vm1515_vm10, %v3696_v29, %v3721_v27 }
0x1c93   :  { %v3615_v24 = vpop.permute.xlu1 %3614  ;;  %v3639_v20 = vpop.permute.xlu0 %3638 }
0x1c94   :  { %v3668_v51 = vrot.slane %v3615_v24, %v5444_v17  ;;  %v3700_v6 = vrot.slane %v3639_v20, %v5444_v17  ;;  %v3715_v20 = vsel %vm1515_vm10, %v3664_v59, %v3714_v35 }
0x1c96   :  { %v3716_v9 = vsel %vm1517_vm11, %v3668_v51, %v3715_v20  ;;  %v3723_v2 = vsel %vm1517_vm11, %v3700_v6, %v3722_v43 }
0x1c97   :  { %v3618_v62 = vpop.permute.xlu1 %3617  ;;  %v3642_v36 = vpop.permute.xlu0 %3641 }
0x1c98   :  { %v3672_v47 = vrot.slane %v3618_v62, %v5444_v17  ;;  %v3704_v60 = vrot.slane %v3642_v36, %v5444_v17 }
0x1c9a   :  { %v3717_v36 = vsel %vm1519_vm12, %v3672_v47, %v3716_v9  ;;  %v3724_v62 = vsel %vm1519_vm12, %v3704_v60, %v3723_v2  ;;  %v2812_v47 = vrot.slane %v6439_v28, %v5444_v17  ;;  %v2804_v60 = vrot.slane %v6206_v39, %v5444_v17 }
0x1c9b   :  { %v3621_v55 = vpop.permute.xlu1 %3620  ;;  %v3645_v18 = vpop.permute.xlu0 %3644  ;;  %v2832_v39 = vrot.slane %v6449_v57, %v5444_v17  ;;  %v2828_v9 = vrot.slane %v6443_v4, %v5444_v17 }
0x1c9c   :  { %v3676_v0 = vrot.slane %v3621_v55, %v5444_v17  ;;  %v3708_v24 = vrot.slane %v3645_v18, %v5444_v17  ;;  %v4031_v18 = vrot.slane %v7186_v32, %v5284_v46  ;;  %v2865_v35 = vsel %vm1511_vm8, %v2808_v61, %v2804_v60  ;;  %v7227_v61 = vld [vmem:[#allocation9_spill] sm:$0xff] }
0x1c9d   :  { %v2866_v27 = vsel %vm1513_vm9, %v2812_v47, %v2865_v35  ;;  %v2816_v32 = vrot.slane %v6333_v7, %v5444_v17  ;;  %v3192_v47 = vrot.slane %v6317_v42, %v5253_v31 }
0x1c9e   :  { %v3718_v16 = vsel %vm1521_vm13, %v3676_v0, %v3717_v36  ;;  %v3725_v59 = vsel %vm1521_vm13, %v3708_v24, %v3724_v62  ;;  %v2820_v0 = vrot.slane %v6441_v5, %v5444_v17  ;;  %v2824_v24 = vrot.slane %v6445_v3, %v5444_v17 }
0x1c9f   :  { %v3624_v22 = vpop.permute.xlu1 %3623  ;;  %v3648_v19 = vpop.permute.xlu0 %3647  ;;  %v2867_v53 = vsel %vm1515_vm10, %v2816_v32, %v2866_v27  ;;  %vm3269_vm15 = vcmp.eq.f32.partialorder %v6132_v37, %v3192_v47 }
0x1ca0   :  { %v3680_v56 = vrot.slane %v3624_v22, %v5444_v17  ;;  %v3712_v55 = vrot.slane %v3648_v19, %v5444_v17  ;;  %v2868_v28 = vsel %vm1517_vm11, %v2820_v0, %v2867_v53  ;;  %v3285_v0 = vsel %vm3269_vm15, %v5478_v48, 8 }
0x1ca1   :  { %v2869_v20 = vsel %vm1519_vm12, %v2824_v24, %v2868_v28 }
0x1ca2   :  { %v3719_v29 = vsel %vm1523_vm14, %v3680_v56, %v3718_v16  ;;  %v3726_v51 = vsel %vm1523_vm14, %v3712_v55, %v3725_v59  ;;  %v2870_v5 = vsel %vm1521_vm13, %v2828_v9, %v2869_v20 }
0x1ca3   :  { %v3729_v43 = vsel %vm1089_vm5, %v3719_v29, -inf  ;;  %v3732_v6 = vsel %vm1089_vm5, %v3726_v51, -inf  ;;  %v2871_v2 = vsel %vm1523_vm14, %v2832_v39, %v2870_v5  ;;  %v6519_v19 = vpop.permute.xlu0 %2796 }
0x1ca4   :  { %3730 = vmax.xlane.f32.xlu1 %v3729_v43  ;;  %3733 = vmax.xlane.f32.xlu0 %v3732_v6  ;;  %v2879_v7 = vsel %vm1089_vm5, %v2871_v2, 2147483647  ;;  %v2696_v43 = vrot.slane %v6067_v11, %v5280_v44  ;;  %v7226_v6 = vld [vmem:[#allocation17_spill] sm:$0xff] }
0x1ca5   :  { %v2881_v22 = vshra.s32 %v2879_v7, 16  ;;  %v2880_v16 = vand.u32 65535, %v2879_v7 }
0x1ca6   :  { %vm2734_vm6 = vcmp.eq.f32.partialorder %v7226_v6, %v2696_v43 }
0x1ca7   :  { %v2883_v3 = vcvt.s32.f32 %v2881_v22  ;;  %v2882_v29 = vcvt.s32.f32 %v2880_v16 }
0x1cb5   :  { %4033 = vbcast.lane.b32.xlu1 %v4031_v18, 256  ;;  %v2704_v18 = vrot.slane %v6067_v11, %v5284_v46 }
0x1cb7   :  { %vm2736_vm7 = vcmp.eq.f32.partialorder %v7227_v61, %v2704_v18  ;;  %v3196_v18 = vrot.slane %v6317_v42, %v5260_v34  ;;  %v3204_v61 = vrot.slane %v6317_v42, %v5248_v30 }
0x1cb8   :  { %v2752_v60 = vsel %vm2736_vm7, %v5478_v48, 8 }
0x1cb9   :  { %vm3270_vm0 = vcmp.eq.f32.partialorder %v6081_v33, %v3196_v18 }
0x1cba   :  { %4026 = vbcast.lane.b32.xlu0 %v4024_v49, 256  ;;  %v2750_v49 = vsel %vm2734_vm6, %v5478_v48, 8  ;;  %v3286_v47 = vsel %vm3270_vm0, %v5478_v48, 8 }
0x1cd9   :  { %2884 = vmin.xlane.f32.xlu0 %v2883_v3 }
0x1d2d   :  { %v6521_v36 = vpop.xlane.xlu0 %3733  ;;  %v6523_v62 = vpop.xlane.xlu1 %3730 }
0x1d2e   :  { %v4005_v57 = vadd.f32 %v6523_v62, %v5304_v10  ;;  %v4006_v11 = vadd.f32 %v6523_v62, %v5306_v13  ;;  %v4013_v37 = vadd.f32 %v6521_v36, %v5304_v10  ;;  %v4007_v20 = vadd.f32 %v6523_v62, %v5308_v14 }
0x1d2f   :  { %v4008_v5 = vadd.f32 %v6523_v62, %v5312_v54  ;;  %v4009_v7 = vadd.f32 %v6523_v62, %v5310_v50  ;;  %v4012_v6 = vadd.f32 %v6523_v62, %v7178_v25 }
0x1d31   :  { %v4027_v56 = vpop.permute.xlu0 %4026  ;;  %v6545_v27 = vpop.permute.xlu1 %4033 }
0x1d32   :  { %v4040_v4 = vrot.slane %v4027_v56, %v5253_v31  ;;  %v4044_v35 = vrot.slane %v4027_v56, %v5260_v34  ;;  %v4072_v24 = vrot.slane %v6545_v27, %v5253_v31  ;;  %v4048_v28 = vrot.slane %v4027_v56, %v5237_v23 }
0x1d33   :  { %v4052_v9 = vrot.slane %v4027_v56, %v5248_v30  ;;  %v4056_v10 = vrot.slane %v4027_v56, %v5270_v38  ;;  %v4064_v16 = vrot.slane %v4027_v56, %v5275_v41  ;;  %v4068_v43 = vrot.slane %v4027_v56, %v5284_v46 }
0x1d34   :  { %v6528_v55 = vadd.f32 %v4040_v4, %v4005_v57  ;;  %v6550_v32 = vadd.f32 %v4044_v35, %v4006_v11  ;;  %v6557_v53 = vadd.f32 %v4072_v24, %v4013_v37  ;;  %v6563_v39 = vadd.f32 %v4048_v28, %v4007_v20 }
0x1d35   :  { %v6569_v2 = vadd.f32 %v4052_v9, %v4008_v5  ;;  %v6575_v22 = vadd.f32 %v4056_v10, %v4009_v7  ;;  %v4010_v57 = vadd.f32 %v6523_v62, %v5316_v15  ;;  %v3220_v35 = vrot.slane %v6317_v42, %v5284_v46  ;;  %v7228_v9 = vld [vmem:[#allocation8_spill] sm:$0xff] }
0x1d36   :  { %v3236_v11 = vrot.slane %v6335_v63, %v5248_v30  ;;  %v3740_v24 = vrot.slane %v6523_v62, %v5253_v31  ;;  %v3772_v37 = vrot.slane %v6521_v36, %v5253_v31  ;;  %v3780_v28 = vrot.slane %v6521_v36, %v5237_v23  ;;  %v7229_v10 = vld [vmem:[#allocation24_spill] sm:$0xff] }
0x1d37   :  { %vm3276_vm7 = vcmp.eq.f32.partialorder %v6141_v26, %v3220_v35  ;;  %v3752_v20 = vrot.slane %v6523_v62, %v5248_v30  ;;  %v3244_v5 = vrot.slane %v6335_v63, %v5280_v44  ;;  %v3788_v7 = vrot.slane %v6521_v36, %v5270_v38 }
0x1d38   :  { %vm3280_vm0 = vcmp.eq.f32.partialorder %v6164_v40, %v3236_v11 }
0x1d39   :  { %v3296_v26 = vsel %vm3280_vm0, %v5478_v48, 8  ;;  %vm3282_vm0 = vcmp.eq.f32.partialorder %v7229_v10, %v3244_v5 }
0x1d62   :  { %v6530_v59 = vpop.xlane.xlu0 %2884 }
0x1d63   :  { %vm2886_vm1 = vcmp.eq.f32.partialorder %v2883_v3, %v6530_v59  ;;  %v4060_v3 = vrot.slane %v4027_v56, %v5280_v44  ;;  %v3212_v56 = vrot.slane %v6317_v42, %v5280_v44 }
0x1d64   :  { %v2887_v51 = vsel %vm2886_vm1, %v2882_v29, inf  ;;  %v4011_v29 = vadd.f32 %v6523_v62, %v5314_v1  ;;  %vm3272_vm1 = vcmp.eq.f32.partialorder %v6107_v8, %v3204_v61  ;;  %v3292_v8 = vsel %vm3276_vm7, %v5478_v48, 8  ;;  %v7233_v61 = vld [vmem:[#allocation33_spill] sm:$0xff] }
0x1d65   :  { %2888 = vmin.xlane.f32.xlu1 %v2887_v51  ;;  %v6581_v4 = vadd.f32 %v4060_v3, %v4010_v57  ;;  %vm3274_vm6 = vcmp.eq.f32.partialorder %v6119_v52, %v3212_v56  ;;  %vm3827_vm7 = vcmp.eq.f32.partialorder %v6359_v12, %v3780_v28  ;;  %v3298_v12 = vsel %vm3282_vm0, %v5478_v48, 8  ;;  %v7230_v3 = vld [vmem:[#allocation10_spill] sm:$0xff] }
0x1d66   :  { %v6587_v51 = vadd.f32 %v4064_v16, %v4011_v29  ;;  %v3290_v33 = vsel %vm3274_vm6, %v5478_v48, 8  ;;  %vm3825_vm6 = vcmp.eq.f32.partialorder %v6347_v21, %v3772_v37  ;;  %v7231_v16 = vld [vmem:[#allocation31_spill] sm:$0xff]  ;;  %v7234_v56 = vld [vmem:[#allocation30_spill] sm:$0xff] }
0x1d67   :  { %v3841_v40 = vsel %vm3825_vm6, %v5478_v48, 8  ;;  %v2840_v29 = vrot.slane %v7231_v16, %v5444_v17 }
0x1d76   :  { %2793 = vperm.xlu1 %4871, %v2750_v49   ;;  %v6595_v49 = vadd.f32 %v4068_v43, %v4012_v6  ;;  %v7232_v43 = vld [vmem:[#allocation6_spill] sm:$0xff] }
0x1d77   :  { %v2836_v6 = vrot.slane %v7232_v43, %v5444_v17 }
0x1d79   :  { %v2872_v18 = vsel %vm1511_vm8, %v2840_v29, %v2836_v6 }
0x1d7a   :  { %2799 = vperm.xlu1 %4871, %v2752_v60   ;;  %v3288_v60 = vsel %vm3272_vm1, %v5478_v48, 8  ;;  %vm3817_vm1 = vcmp.eq.f32.partialorder %v6329_v45, %v3740_v24  ;;  %v3843_v45 = vsel %vm3827_vm7, %v5478_v48, 8 }
0x1d7e   :  { %3302 = vperm.xlu1 %4871, %v3285_v0   ;;  %v3228_v0 = vrot.slane %v6335_v63, %v5260_v34 }
0x1d80   :  { %vm3278_vm15 = vcmp.eq.f32.partialorder %v6144_v58, %v3228_v0  ;;  %v3833_v58 = vsel %vm3817_vm1, %v5478_v48, 8  ;;  %vm3829_vm1 = vcmp.eq.f32.partialorder %v7230_v3, %v3788_v7 }
0x1d81   :  { %v3294_v52 = vsel %vm3278_vm15, %v5478_v48, 8  ;;  %vm3820_vm15 = vcmp.eq.f32.partialorder %v7228_v9, %v3752_v20  ;;  %v3845_v57 = vsel %vm3829_vm1, %v5478_v48, 8 }
0x1d82   :  { %4153 = vperm.xlu1 %4871, %v6550_v32   ;;  %v3836_v21 = vsel %vm3820_vm15, %v5478_v48, 8 }
0x1d86   :  { %4174 = vperm.xlu1 %4871, %v6557_v53  }
0x1d8a   :  { %4156 = vperm.xlu1 %4871, %v6563_v39  }
0x1d8e   :  { %4159 = vperm.xlu1 %4871, %v6569_v2  }
0x1d92   :  { %4162 = vperm.xlu1 %4871, %v6575_v22  }
0x1d96   :  { %4165 = vperm.xlu1 %4871, %v6581_v4  }
0x1d9a   :  { %4168 = vperm.xlu1 %4871, %v6587_v51  }
0x1d9e   :  { %4171 = vperm.xlu1 %4871, %v6595_v49  }
0x1da2   :  { %3305 = vperm.xlu1 %4871, %v3286_v47   ;;  %v2848_v47 = vrot.slane %v7233_v61, %v5444_v17 }
0x1da6   :  { %3311 = vperm.xlu1 %4871, %v3288_v60   ;;  %v2844_v60 = vrot.slane %v7234_v56, %v5444_v17 }
0x1daa   :  { %3317 = vperm.xlu1 %4871, %v3290_v33   ;;  %v2873_v33 = vsel %vm1513_vm9, %v2844_v60, %v2872_v18 }
0x1dab   :  { %v2874_v0 = vsel %vm1515_vm10, %v2848_v47, %v2873_v33 }
0x1dae   :  { %3323 = vperm.xlu1 %4871, %v3292_v8   ;;  %v7235_v8 = vld [vmem:[#allocation32_spill] sm:$0xff] }
0x1daf   :  { %v2852_v11 = vrot.slane %v7235_v8, %v5444_v17  ;;  %v4076_v8 = vrot.slane %v6545_v27, %v5260_v34 }
0x1db2   :  { %3329 = vperm.xlu1 %4871, %v3294_v52  }
0x1db6   :  { %3335 = vperm.xlu1 %4871, %v3296_v26   ;;  %v2875_v26 = vsel %vm1517_vm11, %v2852_v11, %v2874_v0  ;;  %v4014_v11 = vadd.f32 %v6521_v36, %v5306_v13  ;;  %v4016_v13 = vadd.f32 %v6521_v36, %v5312_v54  ;;  %v4018_v54 = vadd.f32 %v6521_v36, %v5316_v15 }
0x1db7   :  { %v4020_v15 = vadd.f32 %v6521_v36, %v7178_v25  ;;  %v3216_v25 = vrot.slane %v6317_v42, %v5275_v41 }
0x1dba   :  { %3850 = vperm.xlu1 %4871, %v3833_v58   ;;  %v2860_v58 = vrot.slane %v6519_v19, %v5444_v17 }
0x1dbe   :  { %3874 = vperm.xlu1 %4871, %v3841_v40  }
0x1dc2   :  { %3880 = vperm.xlu1 %4871, %v3843_v45  }
0x1dc6   :  { %3859 = vperm.xlu1 %4871, %v3836_v21  }
0x1dca   :  { %3341 = vperm.xlu1 %4871, %v3298_v12  }
0x1dce   :  { %3886 = vperm.xlu1 %4871, %v3845_v57  }
0x1dee   :  { %v6653_v35 = vpop.xlane.xlu1 %2888 }
0x1df2   :  { %v2794_v52 = vpop.permute.xlu1 %2793 }
0x1df3   :  { %v2856_v24 = vrot.slane %v2794_v52, %v5444_v17  ;;  %v6697_v52 = vadd.f32 %v4076_v8, %v4014_v11  ;;  %v3224_v8 = vrot.slane %v6335_v63, %v5253_v31 }
0x1df5   :  { %v2876_v37 = vsel %vm1519_vm12, %v2856_v24, %v2875_v26  ;;  %v4080_v24 = vrot.slane %v6545_v27, %v5237_v23  ;;  %v4015_v26 = vadd.f32 %v6521_v36, %v5308_v14  ;;  %v4017_v14 = vadd.f32 %v6521_v36, %v5310_v50 }
0x1df6   :  { %v2800_v28 = vpop.permute.xlu1 %2799  ;;  %v2877_v20 = vsel %vm1521_vm13, %v2860_v58, %v2876_v37  ;;  %v4084_v58 = vrot.slane %v6545_v27, %v5248_v30  ;;  %v4019_v50 = vadd.f32 %v6521_v36, %v5314_v1  ;;  %v3208_v1 = vrot.slane %v6317_v42, %v5270_v38 }
0x1df7   :  { %v2864_v40 = vrot.slane %v2800_v28, %v5444_v17  ;;  %v6704_v37 = vadd.f32 %v4080_v24, %v4015_v26  ;;  %v7239_v24 = vld [vmem:[#allocation5_spill] sm:$0xff]  ;;  %v3232_v26 = vrot.slane %v6335_v63, %v5237_v23 }
0x1df8   :  { %v6711_v28 = vadd.f32 %v4084_v58, %v4016_v13  ;;  %vm3277_vm1 = vcmp.eq.f32.partialorder %v7239_v24, %v3224_v8  ;;  %v3240_v13 = vrot.slane %v6335_v63, %v5270_v38 }
0x1df9   :  { %v2878_v45 = vsel %vm1523_vm14, %v2864_v40, %v2877_v20  ;;  %v4088_v40 = vrot.slane %v6545_v27, %v5270_v38  ;;  %v3293_v58 = vsel %vm3277_vm1, %v5478_v48, 8 }
0x1dfa   :  { %v3303_v9 = vpop.permute.xlu1 %3302  ;;  %v2894_v5 = vsel %vm1089_vm5, %v2878_v45, 2147483647  ;;  %v4092_v45 = vrot.slane %v6545_v27, %v5280_v44 }
0x1dfb   :  { %v2896_v21 = vshra.s32 %v2894_v5, 16  ;;  %v3352_v18 = vrot.slane %v3303_v9, %v5444_v17  ;;  %v2895_v56 = vand.u32 65535, %v2894_v5  ;;  %v6718_v20 = vadd.f32 %v4088_v40, %v4017_v14  ;;  %v7241_v14 = vld [vmem:[#allocation23_spill] sm:$0xff] }
0x1dfc   :  { %v6725_v9 = vadd.f32 %v4092_v45, %v4018_v54  ;;  %v4096_v5 = vrot.slane %v6545_v27, %v5275_v41  ;;  %v3744_v45 = vrot.slane %v6523_v62, %v5260_v34 }
0x1dfd   :  { %v2898_v10 = vcvt.s32.f32 %v2896_v21  ;;  %v2897_v33 = vcvt.s32.f32 %v2895_v56 }
0x1dfe   :  { %v6668_v7 = vpop.permute.xlu1 %4153  ;;  %v6732_v21 = vadd.f32 %v4096_v5, %v4019_v50  ;;  %v7242_v5 = vld [vmem:[#allocation16_spill] sm:$0xff]  ;;  %v3776_v50 = vrot.slane %v6521_v36, %v5260_v34 }
0x1dff   :  { %2899 = vmin.xlane.f32.xlu0 %v2898_v10 }
0x1e02   :  { %v6670_v12 = vpop.permute.xlu1 %4174 }
0x1e06   :  { %v6672_v3 = vpop.permute.xlu1 %4156 }
0x1e0a   :  { %v6674_v19 = vpop.permute.xlu1 %4159 }
0x1e0e   :  { %v6676_v57 = vpop.permute.xlu1 %4162 }
0x1e12   :  { %v6678_v16 = vpop.permute.xlu1 %4165 }
0x1e16   :  { %v6680_v29 = vpop.permute.xlu1 %4168 }
0x1e1a   :  { %v6682_v43 = vpop.permute.xlu1 %4171 }
0x1e1e   :  { %v3306_v6 = vpop.permute.xlu1 %3305 }
0x1e1f   :  { %v3356_v61 = vrot.slane %v3306_v6, %v5444_v17  ;;  %v3200_v6 = vrot.slane %v6317_v42, %v5237_v23  ;;  %v7240_v42 = vld [vmem:[#allocation22_spill] sm:$0xff] }
0x1e21   :  { %v6687_v47 = vsel %vm1511_vm8, %v3356_v61, %v3352_v18  ;;  %v7236_v61 = vld [vmem:[#allocation11_spill] sm:$0xff] }
0x1e22   :  { %vm3271_vm7 = vcmp.eq.f32.partialorder %v7236_v61, %v3200_v6  ;;  %v3748_v6 = vrot.slane %v6523_v62, %v5237_v23 }
0x1e23   :  { %v3287_v56 = vsel %vm3271_vm7, %v5478_v48, 8  ;;  %vm3281_vm7 = vcmp.eq.f32.partialorder %v7241_v14, %v3240_v13 }
0x1e24   :  { %v3297_v54 = vsel %vm3281_vm7, %v5478_v48, 8 }
0x1e88   :  { %v6689_v60 = vpop.xlane.xlu0 %2899 }
0x1e89   :  { %vm2901_vm6 = vcmp.eq.f32.partialorder %v2898_v10, %v6689_v60  ;;  %v4100_v10 = vrot.slane %v6545_v27, %v5284_v46  ;;  %v7237_v27 = vld [vmem:[#allocation20_spill] sm:$0xff] }
0x1e8a   :  { %v2902_v0 = vsel %vm2901_vm6, %v2897_v33, inf  ;;  %vm3273_vm15 = vcmp.eq.f32.partialorder %v7237_v27, %v3208_v1  ;;  %vm3279_vm6 = vcmp.eq.f32.partialorder %v7240_v42, %v3232_v26  ;;  %v7244_v1 = vld [vmem:[#allocation14_spill] sm:$0xff]  ;;  %v2891_v27 = vcvt.f32.s32 %v6530_v59 }
0x1e8b   :  { %2903 = vmin.xlane.f32.xlu0 %v2902_v0  ;;  %v6741_v18 = vadd.f32 %v4100_v10, %v4020_v15  ;;  %v3289_v33 = vsel %vm3273_vm15, %v5478_v48, 8  ;;  %v7238_v0 = vld [vmem:[#allocation21_spill] sm:$0xff]  ;;  %v3295_v40 = vsel %vm3279_vm6, %v5478_v48, 8  ;;  %vm3818_vm15 = vcmp.eq.f32.partialorder %v7242_v5, %v3744_v45  ;;  %v7243_v15 = vld [vmem:[#allocation18_spill] sm:$0xff] }
0x1e8c   :  { %vm3275_vm0 = vcmp.eq.f32.partialorder %v7238_v0, %v3216_v25  ;;  %v3834_v10 = vsel %vm3818_vm15, %v5478_v48, 8  ;;  %vm3819_vm1 = vcmp.eq.f32.partialorder %v7244_v1, %v3748_v6  ;;  %v2890_v25 = vcvt.f32.s32 %v6653_v35 }
0x1e8d   :  { %v3291_v11 = vsel %vm3275_vm0, %v5478_v48, 8  ;;  %vm3826_vm0 = vcmp.eq.f32.partialorder %v7243_v15, %v3776_v50  ;;  %v2892_v0 = vshll.u32 %v2891_v27, 16  ;;  %v4204_v59 = vrot.slane %v6668_v7, %v5444_v17 }
0x1e8e   :  { %v3842_v61 = vsel %vm3826_vm0, %v5478_v48, 8  ;;  %v4212_v45 = vrot.slane %v6674_v19, %v5444_v17  ;;  %v4216_v5 = vrot.slane %v6676_v57, %v5444_v17  ;;  %v4220_v15 = vrot.slane %v6678_v16, %v5444_v17 }
0x1e8f   :  { %v4224_v6 = vrot.slane %v6680_v29, %v5444_v17  ;;  %v4228_v19 = vrot.slane %v6682_v43, %v5444_v17  ;;  %v4232_v43 = vrot.slane %v6670_v12, %v5444_v17 }
0x1ea1   :  { %4150 = vperm.xlu0 %4870, %v6528_v55  }
0x1ea5   :  { %4177 = vperm.xlu0 %4870, %v6697_v52  }
0x1ea9   :  { %4180 = vperm.xlu0 %4870, %v6704_v37  }
0x1ead   :  { %4183 = vperm.xlu0 %4870, %v6711_v28  }
0x1eb1   :  { %4186 = vperm.xlu0 %4870, %v6718_v20  }
0x1eb5   :  { %4189 = vperm.xlu0 %4870, %v6725_v9  }
0x1eb9   :  { %4192 = vperm.xlu0 %4870, %v6732_v21  }
0x1ebd   :  { %4195 = vperm.xlu0 %4870, %v6741_v18  }
0x1ec1   :  { %3308 = vperm.xlu0 %4870, %v3287_v56   ;;  %v3835_v56 = vsel %vm3819_vm1, %v5478_v48, 8 }
0x1ec5   :  { %3314 = vperm.xlu0 %4870, %v3289_v33   ;;  %v2906_v33 = vcvt.f32.s32 %v6689_v60  ;;  %v4208_v60 = vrot.slane %v6672_v3, %v5444_v17 }
0x1ec7   :  { %v2907_v24 = vshll.u32 %v2906_v33, 16  ;;  %v3312_v33 = vpop.permute.xlu1 %3311 }
0x1ec9   :  { %3320 = vperm.xlu0 %4870, %v3291_v11   ;;  %v2893_v11 = vadd.s32 %v2892_v0, %v2890_v25 }
0x1ecb   :  { %v4583_v42 = vrot.slane %v2893_v11, %v5444_v17  ;;  %v3318_v11 = vpop.permute.xlu1 %3317 }
0x1ecd   :  { %3326 = vperm.xlu0 %4870, %v3293_v58  }
0x1ed1   :  { %3332 = vperm.xlu0 %4870, %v3295_v40  }
0x1ed5   :  { %3338 = vperm.xlu0 %4870, %v3297_v54  }
0x1ed9   :  { %3853 = vperm.xlu0 %4870, %v3834_v10  }
0x1edd   :  { %3877 = vperm.xlu0 %4870, %v3842_v61  }
0x1ee1   :  { %3856 = vperm.xlu0 %4870, %v3835_v56  }
0x1f14   :  { %v2904_v8 = vpop.xlane.xlu0 %2903 }
0x1f15   :  { %v2905_v26 = vcvt.f32.s32 %v2904_v8 }
0x1f17   :  { %v2908_v58 = vadd.s32 %v2907_v24, %v2905_v26 }
0x1f19   :  { %v4587_v13 = vrot.slane %v2908_v58, %v5444_v17 }
0x1f1b   :  { %v6784_v40 = vsel %vm1511_vm8, %v4587_v13, %v4583_v42 }
0x1f1c   :  { %v4151_v14 = vpop.permute.xlu0 %4150 }
0x1f1d   :  { %v4200_v35 = vrot.slane %v4151_v14, %v5444_v17  ;;  %v3784_v14 = vrot.slane %v6521_v36, %v5248_v30 }
0x1f1f   :  { %v4261_v54 = vsel %vm1511_vm8, %v4204_v59, %v4200_v35 }
0x1f20   :  { %v4262_v50 = vsel %vm1513_vm9, %v4208_v60, %v4261_v54  ;;  %v4178_v10 = vpop.permute.xlu0 %4177  ;;  %v3324_v54 = vpop.permute.xlu1 %3323 }
0x1f21   :  { %v4263_v7 = vsel %vm1515_vm10, %v4212_v45, %v4262_v50  ;;  %v4236_v29 = vrot.slane %v4178_v10, %v5444_v17  ;;  %v7245_v10 = vld [vmem:[#allocation15_spill] sm:$0xff] }
0x1f22   :  { %v4264_v3 = vsel %vm1517_vm11, %v4216_v5, %v4263_v7  ;;  %vm3828_vm6 = vcmp.eq.f32.partialorder %v7245_v10, %v3784_v14 }
0x1f23   :  { %v4265_v61 = vsel %vm1519_vm12, %v4220_v15, %v4264_v3  ;;  %v4268_v42 = vsel %vm1511_vm8, %v4236_v29, %v4232_v43  ;;  %v3756_v15 = vrot.slane %v6523_v62, %v5270_v38 }
0x1f24   :  { %v4181_v1 = vpop.permute.xlu0 %4180  ;;  %v4266_v57 = vsel %vm1521_vm13, %v4224_v6, %v4265_v61  ;;  %v3844_v61 = vsel %vm3828_vm6, %v5478_v48, 8 }
0x1f25   :  { %v4267_v56 = vsel %vm1523_vm14, %v4228_v19, %v4266_v57  ;;  %v4240_v8 = vrot.slane %v4181_v1, %v5444_v17  ;;  %v7246_v57 = vld [vmem:[#allocation19_spill] sm:$0xff] }
0x1f26   :  { %v4277_v27 = vsel %vm1089_vm5, %v4267_v56, -inf  ;;  %vm3821_vm7 = vcmp.eq.f32.partialorder %v7246_v57, %v3756_v15  ;;  %v3248_v56 = vrot.slane %v6335_v63, %v5275_v41 }
0x1f27   :  { %4278 = vmax.xlane.f32.xlu0 %v4277_v27  ;;  %v4269_v59 = vsel %vm1513_vm9, %v4240_v8, %v4268_v42  ;;  %v3364_v27 = vrot.slane %v3312_v33, %v5444_v17  ;;  %v3837_v8 = vsel %vm3821_vm7, %v5478_v48, 8 }
0x1f28   :  { %v4184_v16 = vpop.permute.xlu0 %4183 }
0x1f29   :  { %v4244_v24 = vrot.slane %v4184_v16, %v5444_v17  ;;  %v3330_v16 = vpop.permute.xlu1 %3329 }
0x1f2a   :  { %v3388_v15 = vrot.slane %v3330_v16, %v5444_v17 }
0x1f2b   :  { %v4270_v60 = vsel %vm1515_vm10, %v4244_v24, %v4269_v59  ;;  %v7247_v24 = vld [vmem:[#allocation25_spill] sm:$0xff] }
0x1f2c   :  { %v4187_v25 = vpop.permute.xlu0 %4186  ;;  %vm3283_vm15 = vcmp.eq.f32.partialorder %v7247_v24, %v3248_v56 }
0x1f2d   :  { %v4248_v26 = vrot.slane %v4187_v25, %v5444_v17  ;;  %v3336_v14 = vpop.permute.xlu1 %3335 }
0x1f2f   :  { %v4271_v12 = vsel %vm1517_vm11, %v4248_v26, %v4270_v60  ;;  %v3792_v26 = vrot.slane %v6521_v36, %v5280_v44  ;;  %v3764_v60 = vrot.slane %v6523_v62, %v5275_v41 }
0x1f30   :  { %v4190_v0 = vpop.permute.xlu0 %4189 }
0x1f31   :  { %v4252_v13 = vrot.slane %v4190_v0, %v5444_v17 }
0x1f33   :  { %v4272_v5 = vsel %vm1519_vm12, %v4252_v13, %v4271_v12  ;;  %v3299_v13 = vsel %vm3283_vm15, %v5478_v48, 8  ;;  %v3380_v12 = vrot.slane %v3324_v54, %v5444_v17  ;;  %v3768_v54 = vrot.slane %v6523_v62, %v5284_v46 }
0x1f34   :  { %v4193_v58 = vpop.permute.xlu0 %4192 }
0x1f35   :  { %v4256_v35 = vrot.slane %v4193_v58, %v5444_v17  ;;  %v3372_v58 = vrot.slane %v3318_v11, %v5444_v17  ;;  %v3760_v11 = vrot.slane %v6523_v62, %v5280_v44  ;;  %v3396_v62 = vrot.slane %v3336_v14, %v5444_v17 }
0x1f37   :  { %v4273_v7 = vsel %vm1521_vm13, %v4256_v35, %v4272_v5  ;;  %v7248_v35 = vld [vmem:[#allocation7_spill] sm:$0xff] }
0x1f38   :  { %v4196_v45 = vpop.permute.xlu0 %4195  ;;  %vm3830_vm0 = vcmp.eq.f32.partialorder %v7248_v35, %v3792_v26 }
0x1f39   :  { %v4260_v50 = vrot.slane %v4196_v45, %v5444_v17 }
0x1f3b   :  { %v4274_v6 = vsel %vm1523_vm14, %v4260_v50, %v4273_v7  ;;  %v3846_v50 = vsel %vm3830_vm0, %v5478_v48, 8 }
0x1f3c   :  { %v3309_v3 = vpop.permute.xlu0 %3308  ;;  %v4280_v19 = vsel %vm1089_vm5, %v4274_v6, -inf  ;;  %v7249_v6 = vld [vmem:[#allocation27_spill] sm:$0xff] }
0x1f3d   :  { %v3360_v1 = vrot.slane %v3309_v3, %v5444_v17  ;;  %4281 = vmax.xlane.f32.xlu1 %v4280_v19  ;;  %3883 = vperm.xlu0 %4870, %v3844_v61   ;;  %vm3823_vm1 = vcmp.eq.f32.partialorder %v7249_v6, %v3764_v60  ;;  %v7250_v3 = vld [vmem:[#allocation13_spill] sm:$0xff]  ;;  %v3252_v19 = vrot.slane %v6335_v63, %v5284_v46  ;;  %v3851_v61 = vpop.permute.xlu1 %3850 }
0x1f3e   :  { %vm3822_vm6 = vcmp.eq.f32.partialorder %v7250_v3, %v3760_v11  ;;  %v3839_v56 = vsel %vm3823_vm1, %v5478_v48, 8  ;;  %v3796_v63 = vrot.slane %v6521_v36, %v5275_v41 }
0x1f3f   :  { %v3414_v25 = vsel %vm1513_vm9, %v3360_v1, %v6687_v47  ;;  %v3838_v16 = vsel %vm3822_vm6, %v5478_v48, 8 }
0x1f40   :  { %v3315_v0 = vpop.permute.xlu0 %3314  ;;  %v3415_v29 = vsel %vm1515_vm10, %v3364_v27, %v3414_v25  ;;  %v7251_v25 = vld [vmem:[#allocation29_spill] sm:$0xff] }
0x1f41   :  { %v3368_v43 = vrot.slane %v3315_v0, %v5444_v17  ;;  %3862 = vperm.xlu0 %4870, %v3837_v8   ;;  %vm3824_vm7 = vcmp.eq.f32.partialorder %v7251_v25, %v3768_v54  ;;  %v7252_v0 = vld [vmem:[#allocation26_spill] sm:$0xff]  ;;  %v3875_v26 = vpop.permute.xlu1 %3874 }
0x1f42   :  { %vm3284_vm15 = vcmp.eq.f32.partialorder %v7252_v0, %v3252_v19  ;;  %v3840_v24 = vsel %vm3824_vm7, %v5478_v48, 8 }
0x1f43   :  { %v3416_v33 = vsel %vm1517_vm11, %v3368_v43, %v3415_v29 }
0x1f44   :  { %v3321_v42 = vpop.permute.xlu0 %3320  ;;  %v3417_v47 = vsel %vm1519_vm12, %v3372_v58, %v3416_v33  ;;  %v3300_v33 = vsel %vm3284_vm15, %v5478_v48, 8 }
0x1f45   :  { %v3376_v59 = vrot.slane %v3321_v42, %v5444_v17  ;;  %3344 = vperm.xlu0 %4870, %v3299_v13   ;;  %v7253_v42 = vld [vmem:[#allocation12_spill] sm:$0xff]  ;;  %v3881_v11 = vpop.permute.xlu1 %3880 }
0x1f46   :  { %vm3831_vm0 = vcmp.eq.f32.partialorder %v7253_v42, %v3796_v63 }
0x1f47   :  { %v3418_v45 = vsel %vm1521_vm13, %v3376_v59, %v3417_v47  ;;  %v3800_v47 = vrot.slane %v6521_v36, %v5284_v46  ;;  %v3900_v59 = vrot.slane %v3851_v61, %v5444_v17  ;;  %v3847_v60 = vsel %vm3831_vm0, %v5478_v48, 8 }
0x1f48   :  { %v3327_v5 = vpop.permute.xlu0 %3326  ;;  %v6859_v10 = vsel %vm1523_vm14, %v3380_v12, %v3418_v45  ;;  %v7254_v12 = vld [vmem:[#allocation28_spill] sm:$0xff]  ;;  %v3932_v36 = vrot.slane %v3875_v26, %v5444_v17 }
0x1f49   :  { %v3384_v7 = vrot.slane %v3327_v5, %v5444_v17  ;;  %3889 = vperm.xlu0 %4870, %v3846_v50   ;;  %vm3832_vm1 = vcmp.eq.f32.partialorder %v7254_v12, %v3800_v47 }
0x1f4b   :  { %v3420_v1 = vsel %vm1511_vm8, %v3388_v15, %v3384_v7  ;;  %v3848_v15 = vsel %vm3832_vm1, %v5478_v48, 8  ;;  %v3940_v7 = vrot.slane %v3881_v11, %v5444_v17 }
0x1f4c   :  { %v3333_v57 = vpop.permute.xlu0 %3332 }
0x1f4d   :  { %v3392_v27 = vrot.slane %v3333_v57, %v5444_v17  ;;  %3868 = vperm.xlu0 %4870, %v3839_v56  }
0x1f4e   :  { %3865 = vperm.xlu1 %4871, %v3838_v16  }
0x1f4f   :  { %v3421_v29 = vsel %vm1513_vm9, %v3392_v27, %v3420_v1  ;;  %v6916_v27 = vpop.permute.xlu1 %3859 }
0x1f50   :  { %v3339_v8 = vpop.permute.xlu0 %3338  ;;  %v3422_v43 = vsel %vm1515_vm10, %v3396_v62, %v3421_v29 }
0x1f51   :  { %v3400_v58 = vrot.slane %v3339_v8, %v5444_v17  ;;  %3871 = vperm.xlu0 %4870, %v3840_v24  }
0x1f52   :  { %3347 = vperm.xlu1 %4871, %v3300_v33  }
0x1f53   :  { %v6887_v13 = vsel %vm1517_vm11, %v3400_v58, %v3422_v43  ;;  %v6918_v16 = vpop.permute.xlu1 %3341 }
0x1f54   :  { %v3854_v14 = vpop.permute.xlu0 %3853 }
0x1f55   :  { %v3904_v35 = vrot.slane %v3854_v14, %v5444_v17 }
0x1f56   :  { %3892 = vperm.xlu1 %4871, %v3847_v60  }
0x1f57   :  { %v6894_v45 = vsel %vm1511_vm8, %v3904_v35, %v3900_v59  ;;  %v6920_v25 = vpop.permute.xlu1 %3886 }
0x1f58   :  { %v3878_v5 = vpop.permute.xlu0 %3877 }
0x1f59   :  { %v3936_v50 = vrot.slane %v3878_v5, %v5444_v17 }
0x1f5a   :  { %3895 = vperm.xlu1 %4871, %v3848_v15  }
0x1f5b   :  { %v3968_v6 = vsel %vm1511_vm8, %v3936_v50, %v3932_v36 }
0x1f5c   :  { %v6902_v54 = vsel %vm1513_vm9, %v3940_v7, %v3968_v6  ;;  %v6904_v3 = vpop.permute.xlu0 %3856 }
0x1fb0   :  { %v6906_v19 = vpop.xlane.xlu0 %4278 }
0x1fb1   :  { %v4292_v61 = vrot.slane %v6906_v19, %v5260_v34  ;;  %v4288_v1 = vrot.slane %v6906_v19, %v5253_v31  ;;  %v4300_v43 = vrot.slane %v6906_v19, %v5248_v30  ;;  %v4308_v24 = vrot.slane %v6906_v19, %v5280_v44 }
0x1fb2   :  { %v4312_v58 = vrot.slane %v6906_v19, %v5275_v41  ;;  %v4316_v33 = vrot.slane %v6906_v19, %v5284_v46 }
0x1fb3   :  { %vm4366_vm6 = vcmp.eq.f32.partialorder %v6550_v32, %v4292_v61  ;;  %vm4365_vm7 = vcmp.eq.f32.partialorder %v6528_v55, %v4288_v1  ;;  %v4296_v32 = vrot.slane %v6906_v19, %v5237_v23  ;;  %v3404_v61 = vrot.slane %v6918_v16, %v5444_v17 }
0x1fb4   :  { %v4382_v57 = vsel %vm4366_vm6, %v5478_v48, 8  ;;  %v4381_v56 = vsel %vm4365_vm7, %v5478_v48, 8  ;;  %v7009_v16 = vsel %vm1089_vm5, %v6859_v10, 2147483647 }
0x1fb5   :  { %4401 = vperm.xlu1 %4871, %v4382_v57   ;;  %4398 = vperm.xlu0 %4870, %v4381_v56   ;;  %vm4367_vm1 = vcmp.eq.f32.partialorder %v6563_v39, %v4296_v32  ;;  %v3424_v32 = vsel %vm1519_vm12, %v3404_v61, %v6887_v13  ;;  %v3429_v13 = vshra.s32 %v7009_v16, 16 }
0x1fc6   :  { %v6922_v62 = vpop.xlane.xlu1 %4281 }
0x1fc7   :  { %v4324_v0 = vrot.slane %v6922_v62, %v5260_v34  ;;  %v4320_v55 = vrot.slane %v6922_v62, %v5253_v31  ;;  %v4328_v63 = vrot.slane %v6922_v62, %v5237_v23  ;;  %v4332_v23 = vrot.slane %v6922_v62, %v5248_v30 }
0x1fc8   :  { %v4383_v31 = vsel %vm4367_vm1, %v5478_v48, 8  ;;  %v4336_v39 = vrot.slane %v6922_v62, %v5270_v38 }
0x1fc9   :  { %vm4374_vm15 = vcmp.eq.f32.partialorder %v6697_v52, %v4324_v0  ;;  %vm4373_vm0 = vcmp.eq.f32.partialorder %v6557_v53, %v4320_v55  ;;  %vm4375_vm6 = vcmp.eq.f32.partialorder %v6704_v37, %v4328_v63  ;;  %v4304_v52 = vrot.slane %v6906_v19, %v5270_v38 }
0x1fca   :  { %v4390_v29 = vsel %vm4374_vm15, %v5478_v48, 8  ;;  %v4389_v8 = vsel %vm4373_vm0, %v5478_v48, 8  ;;  %v4391_v53 = vsel %vm4375_vm6, %v5478_v48, 8  ;;  %vm4376_vm7 = vcmp.eq.f32.partialorder %v6711_v28, %v4332_v23 }
0x1fcb   :  { %4425 = vperm.xlu1 %4871, %v4390_v29   ;;  %4422 = vperm.xlu0 %4870, %v4389_v8   ;;  %vm4368_vm15 = vcmp.eq.f32.partialorder %v6569_v2, %v4300_v43  ;;  %v4392_v37 = vsel %vm4376_vm7, %v5478_v48, 8  ;;  %vm4369_vm0 = vcmp.eq.f32.partialorder %v6575_v22, %v4304_v52  ;;  %vm4377_vm1 = vcmp.eq.f32.partialorder %v6718_v20, %v4336_v39  ;;  %v3884_v2 = vpop.permute.xlu0 %3883 }
0x1fcc   :  { %v4384_v30 = vsel %vm4368_vm15, %v5478_v48, 8  ;;  %v4340_v28 = vrot.slane %v6922_v62, %v5280_v44  ;;  %v4385_v26 = vsel %vm4369_vm0, %v5478_v48, 8  ;;  %v4393_v38 = vsel %vm4377_vm1, %v5478_v48, 8 }
0x1fcd   :  { %vm4370_vm7 = vcmp.eq.f32.partialorder %v6581_v4, %v4308_v24  ;;  %v4344_v22 = vrot.slane %v6922_v62, %v5275_v41  ;;  %vm4371_vm0 = vcmp.eq.f32.partialorder %v6587_v51, %v4312_v58  ;;  %v4348_v4 = vrot.slane %v6922_v62, %v5284_v46  ;;  %v3866_v51 = vpop.permute.xlu1 %3865 }
0x1fce   :  { %vm4378_vm6 = vcmp.eq.f32.partialorder %v6725_v9, %v4340_v28  ;;  %v4386_v44 = vsel %vm4370_vm7, %v5478_v48, 8  ;;  %v4387_v41 = vsel %vm4371_vm0, %v5478_v48, 8  ;;  %v3908_v46 = vrot.slane %v6904_v3, %v5444_v17 }
0x1fcf   :  { %4404 = vperm.xlu1 %4871, %v4383_v31   ;;  %4428 = vperm.xlu0 %4870, %v4391_v53   ;;  %v4394_v20 = vsel %vm4378_vm6, %v5478_v48, 8  ;;  %v3863_v42 = vpop.permute.xlu0 %3862  ;;  %vm4379_vm15 = vcmp.eq.f32.partialorder %v6732_v21, %v4344_v22  ;;  %vm4380_vm1 = vcmp.eq.f32.partialorder %v6741_v18, %v4348_v4  ;;  %vm4372_vm6 = vcmp.eq.f32.partialorder %v6595_v49, %v4316_v33 }
0x1fd0   :  { %v4395_v9 = vsel %vm4379_vm15, %v5478_v48, 8  ;;  %v4396_v14 = vsel %vm4380_vm1, %v5478_v48, 8  ;;  %v4388_v21 = vsel %vm4372_vm6, %v5478_v48, 8  ;;  %v3962_v12 = vsel %vm1513_vm9, %v3908_v46, %v6894_v45 }
0x1fd1   :  { %v3348_v35 = vpop.permute.xlu1 %3347  ;;  %v3916_v18 = vrot.slane %v3863_v42, %v5444_v17  ;;  %v3912_v49 = vrot.slane %v6916_v27, %v5444_v17  ;;  %v3920_v11 = vrot.slane %v3866_v51, %v5444_v17  ;;  %v3944_v15 = vrot.slane %v3884_v2, %v5444_v17 }
0x1fd2   :  { %v3412_v57 = vrot.slane %v3348_v35, %v5444_v17  ;;  %v3948_v55 = vrot.slane %v6920_v25, %v5444_v17  ;;  %v7026_v39 = vcvt.s32.f32 %v3429_v13 }
0x1fd3   :  { %4431 = vperm.xlu1 %4871, %v4392_v37   ;;  %4407 = vperm.xlu0 %4870, %v4384_v30   ;;  %v3345_v47 = vpop.permute.xlu0 %3344  ;;  %v3963_v5 = vsel %vm1515_vm10, %v3912_v49, %v3962_v12  ;;  %v3970_v27 = vsel %vm1515_vm10, %v3944_v15, %v6902_v54 }
0x1fd4   :  { %v3964_v36 = vsel %vm1517_vm11, %v3916_v18, %v3963_v5  ;;  %v3408_v45 = vrot.slane %v3345_v47, %v5444_v17  ;;  %v3971_v43 = vsel %vm1517_vm11, %v3948_v55, %v3970_v27 }
0x1fd5   :  { %v3893_v48 = vpop.permute.xlu1 %3892  ;;  %v3965_v7 = vsel %vm1519_vm12, %v3920_v11, %v3964_v36 }
0x1fd6   :  { %v3956_v63 = vrot.slane %v3893_v48, %v5444_v17  ;;  %v3425_v29 = vsel %vm1521_vm13, %v3408_v45, %v3424_v32 }
0x1fd7   :  { %4410 = vperm.xlu1 %4871, %v4385_v26   ;;  %4434 = vperm.xlu0 %4870, %v4393_v38   ;;  %v3890_v59 = vpop.permute.xlu0 %3889  ;;  %v3426_v23 = vsel %vm1523_vm14, %v3412_v57, %v3425_v29 }
0x1fd8   :  { %v3952_v0 = vrot.slane %v3890_v59, %v5444_v17  ;;  %v7024_v52 = vsel %vm1089_vm5, %v3426_v23, 2147483647 }
0x1fd9   :  { %v3896_v56 = vpop.permute.xlu1 %3895  ;;  %v3444_v30 = vshra.s32 %v7024_v52, 16 }
0x1fda   :  { %v3960_v54 = vrot.slane %v3896_v56, %v5444_v17  ;;  %v3972_v25 = vsel %vm1519_vm12, %v3952_v0, %v3971_v43 }
0x1fdb   :  { %4437 = vperm.xlu1 %4871, %v4394_v20   ;;  %4413 = vperm.xlu0 %4870, %v4386_v44   ;;  %v3869_v60 = vpop.permute.xlu0 %3868  ;;  %v3973_v31 = vsel %vm1521_vm13, %v3956_v63, %v3972_v25  ;;  %v7037_v26 = vcvt.s32.f32 %v3444_v30  ;;  %v3428_v25 = vand.u32 65535, %v7009_v16 }
0x1fdc   :  { %v3924_v6 = vrot.slane %v3869_v60, %v5444_v17  ;;  %v3974_v10 = vsel %vm1523_vm14, %v3960_v54, %v3973_v31 }
0x1fdd   :  { %v7031_v24 = vsel %vm1089_vm5, %v3974_v10, 2147483647  ;;  %v3430_v31 = vcvt.s32.f32 %v3428_v25 }
0x1fde   :  { %v3966_v1 = vsel %vm1521_vm13, %v3924_v6, %v3965_v7  ;;  %v3992_v2 = vshra.s32 %v7031_v24, 16 }
0x1fdf   :  { %4440 = vperm.xlu1 %4871, %v4395_v9   ;;  %4416 = vperm.xlu0 %4870, %v4387_v41   ;;  %v3872_v50 = vpop.permute.xlu0 %3871 }
0x1fe0   :  { %v3928_v3 = vrot.slane %v3872_v50, %v5444_v17  ;;  %v7041_v38 = vcvt.s32.f32 %v3992_v2 }
0x1fe2   :  { %v3967_v8 = vsel %vm1523_vm14, %v3928_v3, %v3966_v1 }
0x1fe3   :  { %4443 = vperm.xlu1 %4871, %v4396_v14   ;;  %4419 = vperm.xlu0 %4870, %v4388_v21   ;;  %v7020_v53 = vsel %vm1089_vm5, %v3967_v8, 2147483647  ;;  %v4920_v8 = vld [vmem:[%s7121_s5 + $0x8] sm:$0x7]  ;;  %s4949_s5 = smov [#allocation2]  }
0x1fe4   :  { %v3977_v37 = vshra.s32 %v7020_v53, 16  ;;  %v4627_v54 = vrot.slane %v4920_v8, %v5260_v34  ;;  %v3976_v16 = vand.u32 65535, %v7020_v53  ;;  %s4660_s18 = sshll.u32 %s4949_s5, 4  ;;  %s4661_s18 = int_to_ptr.vmem [resolvable:$true] %s4660_s18 }
0x1fe5   :  { %s4921_s19 = scalar_lea.vmem %s4661_s18, 256  ;;  %p4926_p1 = scmp.lt.s32.totalorder %s4661_s18, %s4661_s18 }
0x1fe6   :  { %v7034_v28 = vcvt.s32.f32 %v3977_v37  ;;  %v3443_v37 = vand.u32 65535, %v7024_v52  ;;  %p4922_p0 = scmp.ne.s32.totalorder %s4661_s18, %s4921_s19  ;;  %p4927_p2 = scmp.lt.s32.totalorder %s4921_s19, %s4921_s19 }
0x1fe8   :  { %p4928_p3 = por %p4927_p2, %p4926_p1 }
0x1fea   :  { %p4929_p4 = pnand %p4928_p3, %p4922_p0 }
0x2002   :  { %3432 = vmin.xlane.f32.xlu0 %v7026_v39 }
0x2006   :  { %3980 = vmin.xlane.f32.xlu0 %v7034_v28 }
0x2007   :  { %3447 = vmin.xlane.f32.xlu1 %v7037_v26 }
0x200a   :  { %3995 = vmin.xlane.f32.xlu0 %v7041_v38 }
0x2030   :  { %v4399_v58 = vpop.permute.xlu0 %4398  ;;  %v4402_v22 = vpop.permute.xlu1 %4401 }
0x2031   :  { %v4448_v49 = vrot.slane %v4399_v58, %v5444_v17  ;;  %v4452_v11 = vrot.slane %v4402_v22, %v5444_v17 }
0x2033   :  { %v4509_v7 = vsel %vm1511_vm8, %v4452_v11, %v4448_v49 }
0x2046   :  { %v4423_v20 = vpop.permute.xlu0 %4422  ;;  %v4426_v44 = vpop.permute.xlu1 %4425 }
0x2047   :  { %v4480_v33 = vrot.slane %v4423_v20, %v5444_v17  ;;  %v4484_v42 = vrot.slane %v4426_v44, %v5444_v17  ;;  %v3445_v44 = vcvt.s32.f32 %v3443_v37 }
0x2049   :  { %v4516_v4 = vsel %vm1511_vm8, %v4484_v42, %v4480_v33 }
0x204a   :  { %v4429_v9 = vpop.permute.xlu0 %4428  ;;  %v4405_v41 = vpop.permute.xlu1 %4404 }
0x204b   :  { %v4488_v47 = vrot.slane %v4429_v9, %v5444_v17  ;;  %v4456_v5 = vrot.slane %v4405_v41, %v5444_v17  ;;  %v3978_v9 = vcvt.s32.f32 %v3976_v16  ;;  %v3991_v41 = vand.u32 65535, %v7031_v24 }
0x204d   :  { %v4517_v14 = vsel %vm1513_vm9, %v4488_v47, %v4516_v4  ;;  %v4510_v45 = vsel %vm1513_vm9, %v4456_v5, %v4509_v7  ;;  %v3993_v53 = vcvt.s32.f32 %v3991_v41 }
0x204e   :  { %v4408_v21 = vpop.permute.xlu0 %4407  ;;  %v4432_v51 = vpop.permute.xlu1 %4431 }
0x204f   :  { %v4492_v59 = vrot.slane %v4432_v51, %v5444_v17  ;;  %v4460_v36 = vrot.slane %v4408_v21, %v5444_v17 }
0x2051   :  { %v4518_v60 = vsel %vm1515_vm10, %v4492_v59, %v4517_v14  ;;  %v4511_v61 = vsel %vm1515_vm10, %v4460_v36, %v4510_v45 }
0x2052   :  { %v4435_v46 = vpop.permute.xlu0 %4434  ;;  %v4411_v48 = vpop.permute.xlu1 %4410 }
0x2053   :  { %v4496_v35 = vrot.slane %v4435_v46, %v5444_v17  ;;  %v4464_v50 = vrot.slane %v4411_v48, %v5444_v17 }
0x2055   :  { %v4519_v12 = vsel %vm1517_vm11, %v4496_v35, %v4518_v60  ;;  %v4512_v1 = vsel %vm1517_vm11, %v4464_v50, %v4511_v61 }
0x2056   :  { %v4414_v18 = vpop.permute.xlu0 %4413  ;;  %v4438_v43 = vpop.permute.xlu1 %4437 }
0x2057   :  { %v4468_v6 = vrot.slane %v4414_v18, %v5444_v17  ;;  %v4500_v30 = vrot.slane %v4438_v43, %v5444_v17 }
0x2059   :  { %v4513_v56 = vsel %vm1519_vm12, %v4468_v6, %v4512_v1  ;;  %v4520_v33 = vsel %vm1519_vm12, %v4500_v30, %v4519_v12 }
0x205a   :  { %v4417_v15 = vpop.permute.xlu0 %4416  ;;  %v4441_v23 = vpop.permute.xlu1 %4440 }
0x205b   :  { %v4472_v3 = vrot.slane %v4417_v15, %v5444_v17  ;;  %v4504_v58 = vrot.slane %v4441_v23, %v5444_v17 }
0x205d   :  { %v4514_v0 = vsel %vm1521_vm13, %v4472_v3, %v4513_v56 }
0x205e   :  { %v4420_v57 = vpop.permute.xlu0 %4419  ;;  %v4444_v10 = vpop.permute.xlu1 %4443 }
0x205f   :  { %v4476_v27 = vrot.slane %v4420_v57, %v5444_v17  ;;  %v4508_v34 = vrot.slane %v4444_v10, %v5444_v17 }
0x2061   :  { %v4515_v55 = vsel %vm1523_vm14, %v4476_v27, %v4514_v0 }
0x2062   :  { %v4523_v32 = vsel %vm1089_vm5, %v4515_v55, 2147483647 }
0x2063   :  { %v4525_v63 = vshra.s32 %v4523_v32, 16  ;;  %v4524_v59 = vand.u32 65535, %v4523_v32 }
0x2065   :  { %v4527_v29 = vcvt.s32.f32 %v4525_v63 }
0x2067   :  { %4528 = vmin.xlane.f32.xlu1 %v4527_v29 }
0x2078   :  { %4630 = vbcast.lane.b32.xlu1 %v4627_v54, 256 }
0x208b   :  { %v3433_v13 = vpop.xlane.xlu0 %3432 }
0x208c   :  { %vm3434_vm9 = vcmp.eq.f32.partialorder %v7026_v39, %v3433_v13  ;;  %v4521_v39 = vsel %vm1521_vm13, %v4504_v58, %v4520_v33  ;;  %v3439_v12 = vcvt.f32.s32 %v3433_v13 }
0x208d   :  { %v3435_v2 = vsel %vm3434_vm9, %v3430_v31, inf  ;;  %v4522_v42 = vsel %vm1523_vm14, %v4508_v34, %v4521_v39 }
0x208e   :  { %3436 = vmin.xlane.f32.xlu0 %v3435_v2  ;;  %v4538_v14 = vsel %vm1089_vm5, %v4522_v42, 2147483647 }
0x208f   :  { %v3981_v22 = vpop.xlane.xlu0 %3980  ;;  %v4539_v55 = vand.u32 65535, %v4538_v14 }
0x2090   :  { %v3448_v20 = vpop.xlane.xlu1 %3447  ;;  %vm3982_vm7 = vcmp.eq.f32.partialorder %v7034_v28, %v3981_v22  ;;  %v4526_v28 = vcvt.s32.f32 %v4524_v59  ;;  %v3987_v5 = vcvt.f32.s32 %v3981_v22 }
0x2091   :  { %vm3449_vm11 = vcmp.eq.f32.partialorder %v7037_v26, %v3448_v20  ;;  %v3983_v47 = vsel %vm3982_vm7, %v3978_v9, inf  ;;  %v4540_v26 = vshra.s32 %v4538_v14, 16  ;;  %v3454_v11 = vcvt.f32.s32 %v3448_v20 }
0x2092   :  { %v3450_v52 = vsel %vm3449_vm11, %v3445_v44, inf  ;;  %v3988_v6 = vshll.u32 %v3987_v5, 16  ;;  %v4541_v54 = vcvt.s32.f32 %v4539_v55 }
0x2093   :  { %3451 = vmin.xlane.f32.xlu0 %v3450_v52  ;;  %v3996_v4 = vpop.xlane.xlu0 %3995  ;;  %v4542_v51 = vcvt.s32.f32 %v4540_v26  ;;  %v3455_v50 = vshll.u32 %v3454_v11, 16 }
0x2094   :  { %vm3997_vm15 = vcmp.eq.f32.partialorder %v7041_v38, %v3996_v4  ;;  %v3440_v38 = vshll.u32 %v3439_v12, 16  ;;  %v4002_v3 = vcvt.f32.s32 %v3996_v4 }
0x2095   :  { %v3998_v21 = vsel %vm3997_vm15, %v3993_v53, inf }
0x2096   :  { %v4003_v32 = vshll.u32 %v4002_v3, 16 }
0x2097   :  { %3984 = vmin.xlane.f32.xlu0 %v3983_v47 }
0x209b   :  { %3999 = vmin.xlane.f32.xlu0 %v3998_v21 }
0x209f   :  { %4543 = vmin.xlane.f32.xlu0 %v4542_v51 }
0x20f0   :  { %v4529_v46 = vpop.xlane.xlu1 %4528 }
0x20f1   :  { %vm4530_vm13 = vcmp.eq.f32.partialorder %v4527_v29, %v4529_v46 }
0x20f2   :  { %v4531_v35 = vsel %vm4530_vm13, %v4526_v28, inf }
0x20f3   :  { %4532 = vmin.xlane.f32.xlu1 %v4531_v35 }
0x20f4   :  { %v4631_v60 = vpop.permute.xlu1 %4630 }
0x20f5   :  { %v4633_v24 = vadd.f32 %v4631_v60, %v6906_v19 }
0x20f7   :  { %4638 = vperm.xlu0 %4870, %v4633_v24  }
0x2117   :  { %v3437_v18 = vpop.xlane.xlu0 %3436 }
0x2118   :  { %v3438_v49 = vcvt.f32.s32 %v3437_v18 }
0x211a   :  { %v3441_v48 = vadd.s32 %v3440_v38, %v3438_v49 }
0x211c   :  { %v3452_v36 = vpop.xlane.xlu0 %3451  ;;  %v4592_v61 = vrot.slane %v3441_v48, %v5444_v17 }
0x211d   :  { %v3453_v15 = vcvt.f32.s32 %v3452_v36 }
0x211f   :  { %v3456_v7 = vadd.s32 %v3455_v50, %v3453_v15 }
0x2120   :  { %v3985_v45 = vpop.xlane.xlu0 %3984 }
0x2121   :  { %v4596_v1 = vrot.slane %v3456_v7, %v5444_v17  ;;  %v3986_v19 = vcvt.f32.s32 %v3985_v45 }
0x2123   :  { %v4597_v57 = vsel %vm1515_vm10, %v4596_v1, %v4592_v61  ;;  %v3989_v56 = vadd.s32 %v3988_v6, %v3986_v19 }
0x2124   :  { %v4619_v27 = vsel %vm985_vm2, %v6784_v40, %v4597_v57  ;;  %v4000_v0 = vpop.xlane.xlu0 %3999  ;;  %v4634_v40 = vadd.f32 %v4631_v60, %v6922_v62 }
0x2125   :  { %v4001_v63 = vcvt.f32.s32 %v4000_v0  ;;  %v4601_v43 = vrot.slane %v3989_v56, %v5444_v17 }
0x2127   :  { %v4004_v29 = vadd.s32 %v4003_v32, %v4001_v63 }
0x2128   :  { %v4544_v8 = vpop.xlane.xlu0 %4543 }
0x2129   :  { %v4605_v23 = vrot.slane %v4004_v29, %v5444_v17  ;;  %vm4545_vm0 = vcmp.eq.f32.partialorder %v4542_v51, %v4544_v8 }
0x212a   :  { %v4546_v25 = vsel %vm4545_vm0, %v4541_v54, inf }
0x212b   :  { %v4606_v13 = vsel %vm1519_vm12, %v4605_v23, %v4601_v43  ;;  %4547 = vmin.xlane.f32.xlu0 %v4546_v25 }
0x212c   :  { %v4620_v31 = vsel %vm987_vm3, %v4619_v27, %v4606_v13 }
0x2141   :  { %4641 = vperm.xlu0 %4870, %v4634_v40  }
0x2142   :  { %4932 = shalt.err (!%p4929_p4)
}
0x2143   :  { %s4950_s20 = smov 128   ;;  %s4951_s21 = smov 8   ;;  %v4535_v37 = vcvt.f32.s32 %v4529_v46  ;;  %v4550_v30 = vcvt.f32.s32 %v4544_v8  ;;  %vm4653_vm2 = vcmask 58368  }
0x2144   :  { %4666 = dma.vmem_to_hbm [thread:$0]  %s4661_s18, 256, %s7122_s6, [#allocation3], %s4950_s20, %s4950_s20, %s4951_s21  }
0x2145   :  { %v4536_v58 = vshll.u32 %v4535_v37, 16  ;;  %v4551_v22 = vshll.u32 %v4550_v30, 16 }
0x2172   :  { %v4639_v62 = vpop.permute.xlu0 %4638 }
0x2173   :  { %v4646_v9 = vrot.slane %v4639_v62, %v5444_v17 }
0x217c   :  { %v4533_v10 = vpop.xlane.xlu1 %4532 }
0x217d   :  { %v4534_v2 = vcvt.f32.s32 %v4533_v10 }
0x217f   :  { %v4537_v20 = vadd.s32 %v4536_v58, %v4534_v2 }
0x2181   :  { %v4610_v33 = vrot.slane %v4537_v20, %v5444_v17 }
0x21b4   :  { %v4548_v34 = vpop.xlane.xlu0 %4547 }
0x21b5   :  { %v4549_v44 = vcvt.f32.s32 %v4548_v34 }
0x21b7   :  { %v4552_v16 = vadd.s32 %v4551_v22, %v4549_v44 }
0x21b9   :  { %v4614_v39 = vrot.slane %v4552_v16, %v5444_v17 }
0x21bb   :  { %v4615_v52 = vsel %vm1523_vm14, %v4614_v39, %v4610_v33 }
0x21bc   :  { %v4621_v42 = vsel %vm989_vm4, %v4620_v31, %v4615_v52  ;;  %v4642_v4 = vpop.permute.xlu0 %4641 }
0x21bd   :  { %4623 = vst.msk [vmem:[%s7123_s7 + $0x8] sm:$0xff] %vm1089_vm5, %v4621_v42  ;;  %v4650_v41 = vrot.slane %v4642_v4, %v5444_v17 }
0x21bf   :  { %v4651_v47 = vsel %vm1511_vm8, %v4650_v41, %v4646_v9 }
0x21c0   :  { %4654 = vst.msk [vmem:[%s7124_s8] sm:$0x3] %vm4653_vm2, %v4651_v47 }
0x21c1   :  { %4941 = dma.done.wait [#allocation3], 256  }
0x21c2   :  { %4942 = vsyncadd [#allocation3], 4294967040 }
0x21c3   :  { %4678 = vsyncpa [#allocation3], 1 }

</bundles_post_ra>
